<compile_context>
chip_gen: v5e
topology: v5e:2x2
jax: 0.10.0
libtpu: 0.0.40
codegen_flags: <defaults>
</compile_context>

<pallas_src>
import math
import jax
import jax.numpy as jnp
from jax import lax
from jax.experimental import pallas as pl
from jax.experimental.pallas import tpu as pltpu

EMBED = 512
NUM_HEADS = 8
HEAD_DIM = EMBED // NUM_HEADS      # 64
COMPUTE_DTYPE = jnp.bfloat16       # MXU input dtype (accumulation stays f32)


def _cross_attn_kernel(ir_ref, txt_ref,
                       wq_ref, bq_ref, wk_ref, bk_ref, wv_ref, bv_ref,
                       wo_ref, bo_ref, o_ref,
                       q_scr, k_scr, v_scr, ho_scr):
    # ir_ref : (L, 512)   txt_ref : (S, 512)   o_ref : (L, 512)
    # q_scr/ho_scr : (L, 512) bf16   k_scr/v_scr : (S, 512) bf16
    ir = ir_ref[...].astype(COMPUTE_DTYPE)
    txt = txt_ref[...].astype(COMPUTE_DTYPE)

    # Fused projections (Linear_q∘in_proj_q etc.).  The 1/sqrt(head_dim)
    # attention scale is already folded into wq_ref / bq_ref by the wrapper.
    # Bias add + bf16 cast happen exactly once; results land in VMEM scratch
    # so the head loop reads aligned 64-lane slices instead of spilled f32.
    q_scr[...] = (jnp.dot(ir, wq_ref[...], preferred_element_type=jnp.float32)
                  + bq_ref[...]).astype(COMPUTE_DTYPE)
    k_scr[...] = (jnp.dot(txt, wk_ref[...], preferred_element_type=jnp.float32)
                  + bk_ref[...]).astype(COMPUTE_DTYPE)
    v_scr[...] = (jnp.dot(txt, wv_ref[...], preferred_element_type=jnp.float32)
                  + bv_ref[...]).astype(COMPUTE_DTYPE)

    for h in range(NUM_HEADS):          # static 8-way; static lane slices are free
        lo = h * HEAD_DIM
        hi = lo + HEAD_DIM
        qh = q_scr[:, lo:hi]            # (L, 64) bf16, already scaled + biased
        kh = k_scr[:, lo:hi]            # (S, 64) bf16
        vh = v_scr[:, lo:hi]            # (S, 64) bf16

        # q @ k^T without materializing a transpose.
        scores = lax.dot_general(
            qh, kh, (((1,), (1,)), ((), ())),
            preferred_element_type=jnp.float32)            # (L, S) f32

        m = jnp.max(scores, axis=-1, keepdims=True)
        e = jnp.exp(scores - m)
        denom = jnp.sum(e, axis=-1, keepdims=True)
        p = e * pl.reciprocal(denom, approx=True)

        oh = jnp.dot(p.astype(COMPUTE_DTYPE), vh,
                     preferred_element_type=jnp.float32)   # (L, 64) f32

        # Head-concat staged in VMEM: write this head's 64-lane slice; the
        # out-projection below runs once with full K=512 contraction depth.
        ho_scr[:, lo:hi] = oh.astype(COMPUTE_DTYPE)

    out = jnp.dot(ho_scr[...], wo_ref[...],
                  preferred_element_type=jnp.float32) + bo_ref[...]
    o_ref[...] = out.astype(o_ref.dtype)


def fuse_params(params):
    """Fold self.query/key/value Linears into the MHA in-projections, and the
    1/sqrt(head_dim) scale into the query path.  Weights are stored as
    (in_features, out_features) and cast to bf16; biases stay f32."""
    (wq, bq, wk, bk, wv, bv,
     wiq, biq, wik, bik, wiv, biv, wo, bo) = params
    scale = 1.0 / math.sqrt(HEAD_DIM)
    wq_eff = (wq @ wiq) * scale
    bq_eff = (bq @ wiq + biq) * scale
    wk_eff = wk @ wik
    bk_eff = bk @ wik + bik
    wv_eff = wv @ wiv
    bv_eff = bv @ wiv + biv
    cd = COMPUTE_DTYPE
    return (wq_eff.astype(cd), bq_eff.astype(jnp.float32),
            wk_eff.astype(cd), bk_eff.astype(jnp.float32),
            wv_eff.astype(cd), bv_eff.astype(jnp.float32),
            wo.astype(cd), bo.astype(jnp.float32))


def cross_attention_fusion(ir_features, vis_features, text_features, params,
                           out_dtype=jnp.float32):
    """Matches CrossAttentionFusion.forward(ir, vis, text); vis is unused.

    ir_features: (L, N, 512), text_features: (S, N, 512)  — PyTorch seq-first.
    `out_dtype` can be set to bf16 by callers that tolerate it (halves
    output writeback); f32 by default to match the PyTorch module.
    """
    del vis_features  # unused by the reference module as well
    L, N, E = ir_features.shape
    S, N2, E2 = text_features.shape
    assert E == EMBED and E2 == EMBED and N2 == N

    fused = fuse_params(params)

    # Free row-major reshapes (no data movement): the kernel grids over the
    # batch dim by selecting 512-wide lane windows of these 2-D views, so no
    # HBM transpose of the activations is ever materialized.
    ir_2d = ir_features.reshape(L, N * EMBED)
    txt_2d = text_features.reshape(S, N * EMBED)

    mat_spec = pl.BlockSpec((EMBED, EMBED), lambda n: (0, 0))   # resident weights
    bias_spec = pl.BlockSpec((1, EMBED), lambda n: (0, 0))

    out2d = pl.pallas_call(
        _cross_attn_kernel,
        out_shape=jax.ShapeDtypeStruct((L, N * EMBED), out_dtype),
        grid_spec=pltpu.PrefetchScalarGridSpec(
            num_scalar_prefetch=0,
            grid=(N,),
            in_specs=[
                pl.BlockSpec((L, EMBED), lambda n: (0, n)),   # ir, batch n
                pl.BlockSpec((S, EMBED), lambda n: (0, n)),   # text, batch n
                mat_spec, bias_spec,   # fused q (scale folded in)
                mat_spec, bias_spec,   # fused k
                mat_spec, bias_spec,   # fused v
                mat_spec, bias_spec,   # out proj
            ],
            out_specs=pl.BlockSpec((L, EMBED), lambda n: (0, n)),
            scratch_shapes=[
                pltpu.VMEM((L, EMBED), COMPUTE_DTYPE),   # q
                pltpu.VMEM((S, EMBED), COMPUTE_DTYPE),   # k
                pltpu.VMEM((S, EMBED), COMPUTE_DTYPE),   # v
                pltpu.VMEM((L, EMBED), COMPUTE_DTYPE),   # concatenated heads
            ],
        ),
        compiler_params=pltpu.CompilerParams(
            dimension_semantics=("parallel",),   # grid=(N,) → both v7x TCs busy
            vmem_limit_bytes=48 << 20,           # fits v7x's 64 MiB VMEM
        ),
    )(ir_2d, txt_2d, *fused)

    return out2d.reshape(L, N, EMBED)            # free reshape back to (L, N, E)


def make_params(key):
    """Deterministic synthetic parameters, stored as (in_features, out_features)
    (the transpose of PyTorch's nn.Linear weight)."""
    keys = jax.random.split(key, 14)
    s = 0.02

    def w(k):
        return jax.random.normal(k, (EMBED, EMBED), jnp.float32) * s

    def b(k):
        return jax.random.normal(k, (1, EMBED), jnp.float32) * s

    return (
        w(keys[0]),  b(keys[1]),    # self.query
        w(keys[2]),  b(keys[3]),    # self.key
        w(keys[4]),  b(keys[5]),    # self.value
        w(keys[6]),  b(keys[7]),    # MHA in-proj q
        w(keys[8]),  b(keys[9]),    # MHA in-proj k
        w(keys[10]), b(keys[11]),   # MHA in-proj v
        w(keys[12]), b(keys[13]),   # MHA out_proj
    )


def reference_forward(ir, text, params):
    """Pure-JAX f32 reference mirroring the PyTorch forward (unfused weights)."""
    (wq, bq, wk, bk, wv, bv,
     wiq, biq, wik, bik, wiv, biv, wo, bo) = params
    q0 = ir @ wq + bq[0]
    k0 = text @ wk + bk[0]
    v0 = text @ wv + bv[0]
    q = q0 @ wiq + biq[0]
    k = k0 @ wik + bik[0]
    v = v0 @ wiv + biv[0]
    L, N, _ = q.shape
    S = k.shape[0]

    def split_heads(x, T):
        return x.reshape(T, N, NUM_HEADS, HEAD_DIM).transpose(1, 2, 0, 3)  # (N,H,T,D)

    qh = split_heads(q, L) / math.sqrt(HEAD_DIM)
    kh = split_heads(k, S)
    vh = split_heads(v, S)
    scores = jnp.einsum("nhld,nhsd->nhls", qh, kh)
    p = jax.nn.softmax(scores, axis=-1)
    o = jnp.einsum("nhls,nhsd->nhld", p, vh)          # (N,H,L,D)
    o = o.transpose(2, 0, 1, 3).reshape(L, N, EMBED)  # (L,N,E)
    return o @ wo + bo[0]


if __name__ == "__main__":
    key = jax.random.PRNGKey(0)
    k_ir, k_vis, k_txt, k_params = jax.random.split(key, 4)

    L, S, N = 8, 8, 2  # small seq lens / batch; embed fixed at 512 by the module
    ir_features = jax.random.normal(k_ir, (L, N, EMBED), jnp.float32)
    vis_features = jax.random.normal(k_vis, (L, N, EMBED), jnp.float32)  # unused
    text_features = jax.random.normal(k_txt, (S, N, EMBED), jnp.float32)
    params = make_params(k_params)

    out = cross_attention_fusion(ir_features, vis_features, text_features, params)
    out = jax.block_until_ready(out)

    ref = reference_forward(ir_features, text_features, params)
    assert out.shape == (L, N, EMBED)
    # Tolerance loosened vs a pure-f32 kernel because the matmuls run in bf16
    # (f32 accumulation), the projection chains are algebraically fused, and
    # the softmax denominator uses the approximate EUP reciprocal.
    assert jnp.allclose(out, ref, atol=1e-2, rtol=1e-2), (
        float(jnp.max(jnp.abs(out - ref))))

    print("KERNEL_OK")
</pallas_src>

<mosaic_0001>
module attributes {stable_mosaic.version = 11 : i64} {
  func.func @_cross_attn_kernel(%arg0: i32, %arg1: memref<8x512xf32, #tpu.memory_space<vmem>>, %arg2: memref<8x512xf32, #tpu.memory_space<vmem>>, %arg3: memref<512x512xbf16, #tpu.memory_space<vmem>>, %arg4: memref<1x512xf32, #tpu.memory_space<vmem>>, %arg5: memref<512x512xbf16, #tpu.memory_space<vmem>>, %arg6: memref<1x512xf32, #tpu.memory_space<vmem>>, %arg7: memref<512x512xbf16, #tpu.memory_space<vmem>>, %arg8: memref<1x512xf32, #tpu.memory_space<vmem>>, %arg9: memref<512x512xbf16, #tpu.memory_space<vmem>>, %arg10: memref<1x512xf32, #tpu.memory_space<vmem>>, %arg11: memref<8x512xf32, #tpu.memory_space<vmem>>, %arg12: memref<8x512xbf16, #tpu.memory_space<vmem>>, %arg13: memref<8x512xbf16, #tpu.memory_space<vmem>>, %arg14: memref<8x512xbf16, #tpu.memory_space<vmem>>, %arg15: memref<8x512xbf16, #tpu.memory_space<vmem>>) attributes {dimension_semantics = [#tpu.dimension_semantics<parallel>], iteration_bounds = array<i64: 2>, scalar_prefetch = 0 : i64, scratch_operands = 4 : i64, tpu.core_type = #tpu.core_type<tc>, window_params = [{transform_indices = @transform_0, window_bounds = array<i64: 8, 512>}, {transform_indices = @transform_1, window_bounds = array<i64: 8, 512>}, {pipeline_mode = #tpu.pipeline_mode<synchronous>, transform_indices = @transform_2, window_bounds = array<i64: 512, 512>}, {pipeline_mode = #tpu.pipeline_mode<synchronous>, transform_indices = @transform_3, window_bounds = array<i64: 1, 512>}, {pipeline_mode = #tpu.pipeline_mode<synchronous>, transform_indices = @transform_4, window_bounds = array<i64: 512, 512>}, {pipeline_mode = #tpu.pipeline_mode<synchronous>, transform_indices = @transform_5, window_bounds = array<i64: 1, 512>}, {pipeline_mode = #tpu.pipeline_mode<synchronous>, transform_indices = @transform_6, window_bounds = array<i64: 512, 512>}, {pipeline_mode = #tpu.pipeline_mode<synchronous>, transform_indices = @transform_7, window_bounds = array<i64: 1, 512>}, {pipeline_mode = #tpu.pipeline_mode<synchronous>, transform_indices = @transform_8, window_bounds = array<i64: 512, 512>}, {pipeline_mode = #tpu.pipeline_mode<synchronous>, transform_indices = @transform_9, window_bounds = array<i64: 1, 512>}, {transform_indices = @transform_10, window_bounds = array<i64: 8, 512>}]} {
    %c0 = arith.constant 0 : index
    %c0_0 = arith.constant 0 : index
    %0 = vector.load %arg1[%c0, %c0_0] : memref<8x512xf32, #tpu.memory_space<vmem>>, vector<8x512xf32>
    %1 = arith.truncf %0 : vector<8x512xf32> to vector<8x512xbf16>
    %c0_1 = arith.constant 0 : index
    %c0_2 = arith.constant 0 : index
    %2 = vector.load %arg2[%c0_1, %c0_2] : memref<8x512xf32, #tpu.memory_space<vmem>>, vector<8x512xf32>
    %3 = arith.truncf %2 : vector<8x512xf32> to vector<8x512xbf16>
    %c0_3 = arith.constant 0 : index
    %c0_4 = arith.constant 0 : index
    %4 = vector.load %arg3[%c0_3, %c0_4] : memref<512x512xbf16, #tpu.memory_space<vmem>>, vector<512x512xbf16>
    %cst = arith.constant dense<0.000000e+00> : vector<8x512xf32>
    %5 = tpu.matmul %1, %4, %cst {dimension_numbers = #tpu.dot_dimension_numbers<[1], [0], [0], [1], [0, 0, 1, 1], [], []>} : vector<8x512xbf16>, vector<512x512xbf16>, vector<8x512xf32> -> vector<8x512xf32>
    %c0_5 = arith.constant 0 : index
    %c0_6 = arith.constant 0 : index
    %6 = vector.load %arg4[%c0_5, %c0_6] : memref<1x512xf32, #tpu.memory_space<vmem>>, vector<1x512xf32>
    %7 = vector.broadcast %6 : vector<1x512xf32> to vector<8x512xf32>
    %8 = arith.addf %5, %7 : vector<8x512xf32>
    %9 = arith.truncf %8 : vector<8x512xf32> to vector<8x512xbf16>
    %c0_7 = arith.constant 0 : index
    %c0_8 = arith.constant 0 : index
    %10 = vector.load %arg12[%c0_7, %c0_8] : memref<8x512xbf16, #tpu.memory_space<vmem>>, vector<8x512xbf16>
    tpu.vector_store %arg12[%c0_7, %c0_8], %9 {strides = array<i32>} : memref<8x512xbf16, #tpu.memory_space<vmem>>, vector<8x512xbf16>,
    %c0_9 = arith.constant 0 : index
    %c0_10 = arith.constant 0 : index
    %11 = vector.load %arg5[%c0_9, %c0_10] : memref<512x512xbf16, #tpu.memory_space<vmem>>, vector<512x512xbf16>
    %cst_11 = arith.constant dense<0.000000e+00> : vector<8x512xf32>
    %12 = tpu.matmul %3, %11, %cst_11 {dimension_numbers = #tpu.dot_dimension_numbers<[1], [0], [0], [1], [0, 0, 1, 1], [], []>} : vector<8x512xbf16>, vector<512x512xbf16>, vector<8x512xf32> -> vector<8x512xf32>
    %c0_12 = arith.constant 0 : index
    %c0_13 = arith.constant 0 : index
    %13 = vector.load %arg6[%c0_12, %c0_13] : memref<1x512xf32, #tpu.memory_space<vmem>>, vector<1x512xf32>
    %14 = vector.broadcast %13 : vector<1x512xf32> to vector<8x512xf32>
    %15 = arith.addf %12, %14 : vector<8x512xf32>
    %16 = arith.truncf %15 : vector<8x512xf32> to vector<8x512xbf16>
    %c0_14 = arith.constant 0 : index
    %c0_15 = arith.constant 0 : index
    %17 = vector.load %arg13[%c0_14, %c0_15] : memref<8x512xbf16, #tpu.memory_space<vmem>>, vector<8x512xbf16>
    tpu.vector_store %arg13[%c0_14, %c0_15], %16 {strides = array<i32>} : memref<8x512xbf16, #tpu.memory_space<vmem>>, vector<8x512xbf16>,
    %c0_16 = arith.constant 0 : index
    %c0_17 = arith.constant 0 : index
    %18 = vector.load %arg7[%c0_16, %c0_17] : memref<512x512xbf16, #tpu.memory_space<vmem>>, vector<512x512xbf16>
    %cst_18 = arith.constant dense<0.000000e+00> : vector<8x512xf32>
    %19 = tpu.matmul %3, %18, %cst_18 {dimension_numbers = #tpu.dot_dimension_numbers<[1], [0], [0], [1], [0, 0, 1, 1], [], []>} : vector<8x512xbf16>, vector<512x512xbf16>, vector<8x512xf32> -> vector<8x512xf32>
    %c0_19 = arith.constant 0 : index
    %c0_20 = arith.constant 0 : index
    %20 = vector.load %arg8[%c0_19, %c0_20] : memref<1x512xf32, #tpu.memory_space<vmem>>, vector<1x512xf32>
    %21 = vector.broadcast %20 : vector<1x512xf32> to vector<8x512xf32>
    %22 = arith.addf %19, %21 : vector<8x512xf32>
    %23 = arith.truncf %22 : vector<8x512xf32> to vector<8x512xbf16>
    %c0_21 = arith.constant 0 : index
    %c0_22 = arith.constant 0 : index
    %24 = vector.load %arg14[%c0_21, %c0_22] : memref<8x512xbf16, #tpu.memory_space<vmem>>, vector<8x512xbf16>
    tpu.vector_store %arg14[%c0_21, %c0_22], %23 {strides = array<i32>} : memref<8x512xbf16, #tpu.memory_space<vmem>>, vector<8x512xbf16>,
    %c0_23 = arith.constant 0 : index
    %c0_24 = arith.constant 0 : index
    %25 = vector.load %arg12[%c0_23, %c0_24] : memref<8x512xbf16, #tpu.memory_space<vmem>>, vector<8x64xbf16>
    %c0_25 = arith.constant 0 : index
    %c0_26 = arith.constant 0 : index
    %26 = vector.load %arg13[%c0_25, %c0_26] : memref<8x512xbf16, #tpu.memory_space<vmem>>, vector<8x64xbf16>
    %c0_27 = arith.constant 0 : index
    %c0_28 = arith.constant 0 : index
    %27 = vector.load %arg14[%c0_27, %c0_28] : memref<8x512xbf16, #tpu.memory_space<vmem>>, vector<8x64xbf16>
    %cst_29 = arith.constant dense<0.000000e+00> : vector<8x8xf32>
    %28 = tpu.matmul %25, %26, %cst_29 {dimension_numbers = #tpu.dot_dimension_numbers<[1], [1], [0], [0], [0, 0, 1, 0], [], []>} : vector<8x64xbf16>, vector<8x64xbf16>, vector<8x8xf32> -> vector<8x8xf32>
    %cst_30 = arith.constant dense<0xFF800000> : vector<8xf32>
    %29 = vector.multi_reduction <maximumf>, %28, %cst_30 [1] : vector<8x8xf32> to vector<8xf32>
    %30 = vector.shape_cast %29 : vector<8xf32> to vector<8x1xf32>
    %31 = vector.broadcast %30 : vector<8x1xf32> to vector<8x8xf32>
    %32 = arith.subf %28, %31 : vector<8x8xf32>
    %33 = math.exp %32 : vector<8x8xf32>
    %cst_31 = arith.constant dense<0.000000e+00> : vector<8xf32>
    %34 = vector.multi_reduction <add>, %33, %cst_31 [1] : vector<8x8xf32> to vector<8xf32>
    %35 = vector.shape_cast %34 : vector<8xf32> to vector<8x1xf32>
    %36 = tpu.reciprocal %35 {approx = true} : vector<8x1xf32> -> vector<8x1xf32>
    %37 = vector.broadcast %36 : vector<8x1xf32> to vector<8x8xf32>
    %38 = arith.mulf %33, %37 : vector<8x8xf32>
    %39 = arith.truncf %38 : vector<8x8xf32> to vector<8x8xbf16>
    %cst_32 = arith.constant dense<0.000000e+00> : vector<8x64xf32>
    %40 = tpu.matmul %39, %27, %cst_32 {dimension_numbers = #tpu.dot_dimension_numbers<[1], [0], [0], [1], [0, 0, 1, 1], [], []>} : vector<8x8xbf16>, vector<8x64xbf16>, vector<8x64xf32> -> vector<8x64xf32>
    %41 = arith.truncf %40 : vector<8x64xf32> to vector<8x64xbf16>
    %c0_33 = arith.constant 0 : index
    %c0_34 = arith.constant 0 : index
    %42 = vector.load %arg15[%c0_33, %c0_34] : memref<8x512xbf16, #tpu.memory_space<vmem>>, vector<8x64xbf16>
    tpu.vector_store %arg15[%c0_33, %c0_34], %41 {strides = array<i32>} : memref<8x512xbf16, #tpu.memory_space<vmem>>, vector<8x64xbf16>,
    %c0_35 = arith.constant 0 : index
    %c64 = arith.constant 64 : index
    %43 = vector.load %arg12[%c0_35, %c64] : memref<8x512xbf16, #tpu.memory_space<vmem>>, vector<8x64xbf16>
    %c0_36 = arith.constant 0 : index
    %c64_37 = arith.constant 64 : index
    %44 = vector.load %arg13[%c0_36, %c64_37] : memref<8x512xbf16, #tpu.memory_space<vmem>>, vector<8x64xbf16>
    %c0_38 = arith.constant 0 : index
    %c64_39 = arith.constant 64 : index
    %45 = vector.load %arg14[%c0_38, %c64_39] : memref<8x512xbf16, #tpu.memory_space<vmem>>, vector<8x64xbf16>
    %cst_40 = arith.constant dense<0.000000e+00> : vector<8x8xf32>
    %46 = tpu.matmul %43, %44, %cst_40 {dimension_numbers = #tpu.dot_dimension_numbers<[1], [1], [0], [0], [0, 0, 1, 0], [], []>} : vector<8x64xbf16>, vector<8x64xbf16>, vector<8x8xf32> -> vector<8x8xf32>
    %cst_41 = arith.constant dense<0xFF800000> : vector<8xf32>
    %47 = vector.multi_reduction <maximumf>, %46, %cst_41 [1] : vector<8x8xf32> to vector<8xf32>
    %48 = vector.shape_cast %47 : vector<8xf32> to vector<8x1xf32>
    %49 = vector.broadcast %48 : vector<8x1xf32> to vector<8x8xf32>
    %50 = arith.subf %46, %49 : vector<8x8xf32>
    %51 = math.exp %50 : vector<8x8xf32>
    %cst_42 = arith.constant dense<0.000000e+00> : vector<8xf32>
    %52 = vector.multi_reduction <add>, %51, %cst_42 [1] : vector<8x8xf32> to vector<8xf32>
    %53 = vector.shape_cast %52 : vector<8xf32> to vector<8x1xf32>
    %54 = tpu.reciprocal %53 {approx = true} : vector<8x1xf32> -> vector<8x1xf32>
    %55 = vector.broadcast %54 : vector<8x1xf32> to vector<8x8xf32>
    %56 = arith.mulf %51, %55 : vector<8x8xf32>
    %57 = arith.truncf %56 : vector<8x8xf32> to vector<8x8xbf16>
    %cst_43 = arith.constant dense<0.000000e+00> : vector<8x64xf32>
    %58 = tpu.matmul %57, %45, %cst_43 {dimension_numbers = #tpu.dot_dimension_numbers<[1], [0], [0], [1], [0, 0, 1, 1], [], []>} : vector<8x8xbf16>, vector<8x64xbf16>, vector<8x64xf32> -> vector<8x64xf32>
    %59 = arith.truncf %58 : vector<8x64xf32> to vector<8x64xbf16>
    %c0_44 = arith.constant 0 : index
    %c64_45 = arith.constant 64 : index
    %60 = vector.load %arg15[%c0_44, %c64_45] : memref<8x512xbf16, #tpu.memory_space<vmem>>, vector<8x64xbf16>
    tpu.vector_store %arg15[%c0_44, %c64_45], %59 {strides = array<i32>} : memref<8x512xbf16, #tpu.memory_space<vmem>>, vector<8x64xbf16>,
    %c0_46 = arith.constant 0 : index
    %c128 = arith.constant 128 : index
    %61 = vector.load %arg12[%c0_46, %c128] : memref<8x512xbf16, #tpu.memory_space<vmem>>, vector<8x64xbf16>
    %c0_47 = arith.constant 0 : index
    %c128_48 = arith.constant 128 : index
    %62 = vector.load %arg13[%c0_47, %c128_48] : memref<8x512xbf16, #tpu.memory_space<vmem>>, vector<8x64xbf16>
    %c0_49 = arith.constant 0 : index
    %c128_50 = arith.constant 128 : index
    %63 = vector.load %arg14[%c0_49, %c128_50] : memref<8x512xbf16, #tpu.memory_space<vmem>>, vector<8x64xbf16>
    %cst_51 = arith.constant dense<0.000000e+00> : vector<8x8xf32>
    %64 = tpu.matmul %61, %62, %cst_51 {dimension_numbers = #tpu.dot_dimension_numbers<[1], [1], [0], [0], [0, 0, 1, 0], [], []>} : vector<8x64xbf16>, vector<8x64xbf16>, vector<8x8xf32> -> vector<8x8xf32>
    %cst_52 = arith.constant dense<0xFF800000> : vector<8xf32>
    %65 = vector.multi_reduction <maximumf>, %64, %cst_52 [1] : vector<8x8xf32> to vector<8xf32>
    %66 = vector.shape_cast %65 : vector<8xf32> to vector<8x1xf32>
    %67 = vector.broadcast %66 : vector<8x1xf32> to vector<8x8xf32>
    %68 = arith.subf %64, %67 : vector<8x8xf32>
    %69 = math.exp %68 : vector<8x8xf32>
    %cst_53 = arith.constant dense<0.000000e+00> : vector<8xf32>
    %70 = vector.multi_reduction <add>, %69, %cst_53 [1] : vector<8x8xf32> to vector<8xf32>
    %71 = vector.shape_cast %70 : vector<8xf32> to vector<8x1xf32>
    %72 = tpu.reciprocal %71 {approx = true} : vector<8x1xf32> -> vector<8x1xf32>
    %73 = vector.broadcast %72 : vector<8x1xf32> to vector<8x8xf32>
    %74 = arith.mulf %69, %73 : vector<8x8xf32>
    %75 = arith.truncf %74 : vector<8x8xf32> to vector<8x8xbf16>
    %cst_54 = arith.constant dense<0.000000e+00> : vector<8x64xf32>
    %76 = tpu.matmul %75, %63, %cst_54 {dimension_numbers = #tpu.dot_dimension_numbers<[1], [0], [0], [1], [0, 0, 1, 1], [], []>} : vector<8x8xbf16>, vector<8x64xbf16>, vector<8x64xf32> -> vector<8x64xf32>
    %77 = arith.truncf %76 : vector<8x64xf32> to vector<8x64xbf16>
    %c0_55 = arith.constant 0 : index
    %c128_56 = arith.constant 128 : index
    %78 = vector.load %arg15[%c0_55, %c128_56] : memref<8x512xbf16, #tpu.memory_space<vmem>>, vector<8x64xbf16>
    tpu.vector_store %arg15[%c0_55, %c128_56], %77 {strides = array<i32>} : memref<8x512xbf16, #tpu.memory_space<vmem>>, vector<8x64xbf16>,
    %c0_57 = arith.constant 0 : index
    %c192 = arith.constant 192 : index
    %79 = vector.load %arg12[%c0_57, %c192] : memref<8x512xbf16, #tpu.memory_space<vmem>>, vector<8x64xbf16>
    %c0_58 = arith.constant 0 : index
    %c192_59 = arith.constant 192 : index
    %80 = vector.load %arg13[%c0_58, %c192_59] : memref<8x512xbf16, #tpu.memory_space<vmem>>, vector<8x64xbf16>
    %c0_60 = arith.constant 0 : index
    %c192_61 = arith.constant 192 : index
    %81 = vector.load %arg14[%c0_60, %c192_61] : memref<8x512xbf16, #tpu.memory_space<vmem>>, vector<8x64xbf16>
    %cst_62 = arith.constant dense<0.000000e+00> : vector<8x8xf32>
    %82 = tpu.matmul %79, %80, %cst_62 {dimension_numbers = #tpu.dot_dimension_numbers<[1], [1], [0], [0], [0, 0, 1, 0], [], []>} : vector<8x64xbf16>, vector<8x64xbf16>, vector<8x8xf32> -> vector<8x8xf32>
    %cst_63 = arith.constant dense<0xFF800000> : vector<8xf32>
    %83 = vector.multi_reduction <maximumf>, %82, %cst_63 [1] : vector<8x8xf32> to vector<8xf32>
    %84 = vector.shape_cast %83 : vector<8xf32> to vector<8x1xf32>
    %85 = vector.broadcast %84 : vector<8x1xf32> to vector<8x8xf32>
    %86 = arith.subf %82, %85 : vector<8x8xf32>
    %87 = math.exp %86 : vector<8x8xf32>
    %cst_64 = arith.constant dense<0.000000e+00> : vector<8xf32>
    %88 = vector.multi_reduction <add>, %87, %cst_64 [1] : vector<8x8xf32> to vector<8xf32>
    %89 = vector.shape_cast %88 : vector<8xf32> to vector<8x1xf32>
    %90 = tpu.reciprocal %89 {approx = true} : vector<8x1xf32> -> vector<8x1xf32>
    %91 = vector.broadcast %90 : vector<8x1xf32> to vector<8x8xf32>
    %92 = arith.mulf %87, %91 : vector<8x8xf32>
    %93 = arith.truncf %92 : vector<8x8xf32> to vector<8x8xbf16>
    %cst_65 = arith.constant dense<0.000000e+00> : vector<8x64xf32>
    %94 = tpu.matmul %93, %81, %cst_65 {dimension_numbers = #tpu.dot_dimension_numbers<[1], [0], [0], [1], [0, 0, 1, 1], [], []>} : vector<8x8xbf16>, vector<8x64xbf16>, vector<8x64xf32> -> vector<8x64xf32>
    %95 = arith.truncf %94 : vector<8x64xf32> to vector<8x64xbf16>
    %c0_66 = arith.constant 0 : index
    %c192_67 = arith.constant 192 : index
    %96 = vector.load %arg15[%c0_66, %c192_67] : memref<8x512xbf16, #tpu.memory_space<vmem>>, vector<8x64xbf16>
    tpu.vector_store %arg15[%c0_66, %c192_67], %95 {strides = array<i32>} : memref<8x512xbf16, #tpu.memory_space<vmem>>, vector<8x64xbf16>,
    %c0_68 = arith.constant 0 : index
    %c256 = arith.constant 256 : index
    %97 = vector.load %arg12[%c0_68, %c256] : memref<8x512xbf16, #tpu.memory_space<vmem>>, vector<8x64xbf16>
    %c0_69 = arith.constant 0 : index
    %c256_70 = arith.constant 256 : index
    %98 = vector.load %arg13[%c0_69, %c256_70] : memref<8x512xbf16, #tpu.memory_space<vmem>>, vector<8x64xbf16>
    %c0_71 = arith.constant 0 : index
    %c256_72 = arith.constant 256 : index
    %99 = vector.load %arg14[%c0_71, %c256_72] : memref<8x512xbf16, #tpu.memory_space<vmem>>, vector<8x64xbf16>
    %cst_73 = arith.constant dense<0.000000e+00> : vector<8x8xf32>
    %100 = tpu.matmul %97, %98, %cst_73 {dimension_numbers = #tpu.dot_dimension_numbers<[1], [1], [0], [0], [0, 0, 1, 0], [], []>} : vector<8x64xbf16>, vector<8x64xbf16>, vector<8x8xf32> -> vector<8x8xf32>
    %cst_74 = arith.constant dense<0xFF800000> : vector<8xf32>
    %101 = vector.multi_reduction <maximumf>, %100, %cst_74 [1] : vector<8x8xf32> to vector<8xf32>
    %102 = vector.shape_cast %101 : vector<8xf32> to vector<8x1xf32>
    %103 = vector.broadcast %102 : vector<8x1xf32> to vector<8x8xf32>
    %104 = arith.subf %100, %103 : vector<8x8xf32>
    %105 = math.exp %104 : vector<8x8xf32>
    %cst_75 = arith.constant dense<0.000000e+00> : vector<8xf32>
    %106 = vector.multi_reduction <add>, %105, %cst_75 [1] : vector<8x8xf32> to vector<8xf32>
    %107 = vector.shape_cast %106 : vector<8xf32> to vector<8x1xf32>
    %108 = tpu.reciprocal %107 {approx = true} : vector<8x1xf32> -> vector<8x1xf32>
    %109 = vector.broadcast %108 : vector<8x1xf32> to vector<8x8xf32>
    %110 = arith.mulf %105, %109 : vector<8x8xf32>
    %111 = arith.truncf %110 : vector<8x8xf32> to vector<8x8xbf16>
    %cst_76 = arith.constant dense<0.000000e+00> : vector<8x64xf32>
    %112 = tpu.matmul %111, %99, %cst_76 {dimension_numbers = #tpu.dot_dimension_numbers<[1], [0], [0], [1], [0, 0, 1, 1], [], []>} : vector<8x8xbf16>, vector<8x64xbf16>, vector<8x64xf32> -> vector<8x64xf32>
    %113 = arith.truncf %112 : vector<8x64xf32> to vector<8x64xbf16>
    %c0_77 = arith.constant 0 : index
    %c256_78 = arith.constant 256 : index
    %114 = vector.load %arg15[%c0_77, %c256_78] : memref<8x512xbf16, #tpu.memory_space<vmem>>, vector<8x64xbf16>
    tpu.vector_store %arg15[%c0_77, %c256_78], %113 {strides = array<i32>} : memref<8x512xbf16, #tpu.memory_space<vmem>>, vector<8x64xbf16>,
    %c0_79 = arith.constant 0 : index
    %c320 = arith.constant 320 : index
    %115 = vector.load %arg12[%c0_79, %c320] : memref<8x512xbf16, #tpu.memory_space<vmem>>, vector<8x64xbf16>
    %c0_80 = arith.constant 0 : index
    %c320_81 = arith.constant 320 : index
    %116 = vector.load %arg13[%c0_80, %c320_81] : memref<8x512xbf16, #tpu.memory_space<vmem>>, vector<8x64xbf16>
    %c0_82 = arith.constant 0 : index
    %c320_83 = arith.constant 320 : index
    %117 = vector.load %arg14[%c0_82, %c320_83] : memref<8x512xbf16, #tpu.memory_space<vmem>>, vector<8x64xbf16>
    %cst_84 = arith.constant dense<0.000000e+00> : vector<8x8xf32>
    %118 = tpu.matmul %115, %116, %cst_84 {dimension_numbers = #tpu.dot_dimension_numbers<[1], [1], [0], [0], [0, 0, 1, 0], [], []>} : vector<8x64xbf16>, vector<8x64xbf16>, vector<8x8xf32> -> vector<8x8xf32>
    %cst_85 = arith.constant dense<0xFF800000> : vector<8xf32>
    %119 = vector.multi_reduction <maximumf>, %118, %cst_85 [1] : vector<8x8xf32> to vector<8xf32>
    %120 = vector.shape_cast %119 : vector<8xf32> to vector<8x1xf32>
    %121 = vector.broadcast %120 : vector<8x1xf32> to vector<8x8xf32>
    %122 = arith.subf %118, %121 : vector<8x8xf32>
    %123 = math.exp %122 : vector<8x8xf32>
    %cst_86 = arith.constant dense<0.000000e+00> : vector<8xf32>
    %124 = vector.multi_reduction <add>, %123, %cst_86 [1] : vector<8x8xf32> to vector<8xf32>
    %125 = vector.shape_cast %124 : vector<8xf32> to vector<8x1xf32>
    %126 = tpu.reciprocal %125 {approx = true} : vector<8x1xf32> -> vector<8x1xf32>
    %127 = vector.broadcast %126 : vector<8x1xf32> to vector<8x8xf32>
    %128 = arith.mulf %123, %127 : vector<8x8xf32>
    %129 = arith.truncf %128 : vector<8x8xf32> to vector<8x8xbf16>
    %cst_87 = arith.constant dense<0.000000e+00> : vector<8x64xf32>
    %130 = tpu.matmul %129, %117, %cst_87 {dimension_numbers = #tpu.dot_dimension_numbers<[1], [0], [0], [1], [0, 0, 1, 1], [], []>} : vector<8x8xbf16>, vector<8x64xbf16>, vector<8x64xf32> -> vector<8x64xf32>
    %131 = arith.truncf %130 : vector<8x64xf32> to vector<8x64xbf16>
    %c0_88 = arith.constant 0 : index
    %c320_89 = arith.constant 320 : index
    %132 = vector.load %arg15[%c0_88, %c320_89] : memref<8x512xbf16, #tpu.memory_space<vmem>>, vector<8x64xbf16>
    tpu.vector_store %arg15[%c0_88, %c320_89], %131 {strides = array<i32>} : memref<8x512xbf16, #tpu.memory_space<vmem>>, vector<8x64xbf16>,
    %c0_90 = arith.constant 0 : index
    %c384 = arith.constant 384 : index
    %133 = vector.load %arg12[%c0_90, %c384] : memref<8x512xbf16, #tpu.memory_space<vmem>>, vector<8x64xbf16>
    %c0_91 = arith.constant 0 : index
    %c384_92 = arith.constant 384 : index
    %134 = vector.load %arg13[%c0_91, %c384_92] : memref<8x512xbf16, #tpu.memory_space<vmem>>, vector<8x64xbf16>
    %c0_93 = arith.constant 0 : index
    %c384_94 = arith.constant 384 : index
    %135 = vector.load %arg14[%c0_93, %c384_94] : memref<8x512xbf16, #tpu.memory_space<vmem>>, vector<8x64xbf16>
    %cst_95 = arith.constant dense<0.000000e+00> : vector<8x8xf32>
    %136 = tpu.matmul %133, %134, %cst_95 {dimension_numbers = #tpu.dot_dimension_numbers<[1], [1], [0], [0], [0, 0, 1, 0], [], []>} : vector<8x64xbf16>, vector<8x64xbf16>, vector<8x8xf32> -> vector<8x8xf32>
    %cst_96 = arith.constant dense<0xFF800000> : vector<8xf32>
    %137 = vector.multi_reduction <maximumf>, %136, %cst_96 [1] : vector<8x8xf32> to vector<8xf32>
    %138 = vector.shape_cast %137 : vector<8xf32> to vector<8x1xf32>
    %139 = vector.broadcast %138 : vector<8x1xf32> to vector<8x8xf32>
    %140 = arith.subf %136, %139 : vector<8x8xf32>
    %141 = math.exp %140 : vector<8x8xf32>
    %cst_97 = arith.constant dense<0.000000e+00> : vector<8xf32>
    %142 = vector.multi_reduction <add>, %141, %cst_97 [1] : vector<8x8xf32> to vector<8xf32>
    %143 = vector.shape_cast %142 : vector<8xf32> to vector<8x1xf32>
    %144 = tpu.reciprocal %143 {approx = true} : vector<8x1xf32> -> vector<8x1xf32>
    %145 = vector.broadcast %144 : vector<8x1xf32> to vector<8x8xf32>
    %146 = arith.mulf %141, %145 : vector<8x8xf32>
    %147 = arith.truncf %146 : vector<8x8xf32> to vector<8x8xbf16>
    %cst_98 = arith.constant dense<0.000000e+00> : vector<8x64xf32>
    %148 = tpu.matmul %147, %135, %cst_98 {dimension_numbers = #tpu.dot_dimension_numbers<[1], [0], [0], [1], [0, 0, 1, 1], [], []>} : vector<8x8xbf16>, vector<8x64xbf16>, vector<8x64xf32> -> vector<8x64xf32>
    %149 = arith.truncf %148 : vector<8x64xf32> to vector<8x64xbf16>
    %c0_99 = arith.constant 0 : index
    %c384_100 = arith.constant 384 : index
    %150 = vector.load %arg15[%c0_99, %c384_100] : memref<8x512xbf16, #tpu.memory_space<vmem>>, vector<8x64xbf16>
    tpu.vector_store %arg15[%c0_99, %c384_100], %149 {strides = array<i32>} : memref<8x512xbf16, #tpu.memory_space<vmem>>, vector<8x64xbf16>,
    %c0_101 = arith.constant 0 : index
    %c448 = arith.constant 448 : index
    %151 = vector.load %arg12[%c0_101, %c448] : memref<8x512xbf16, #tpu.memory_space<vmem>>, vector<8x64xbf16>
    %c0_102 = arith.constant 0 : index
    %c448_103 = arith.constant 448 : index
    %152 = vector.load %arg13[%c0_102, %c448_103] : memref<8x512xbf16, #tpu.memory_space<vmem>>, vector<8x64xbf16>
    %c0_104 = arith.constant 0 : index
    %c448_105 = arith.constant 448 : index
    %153 = vector.load %arg14[%c0_104, %c448_105] : memref<8x512xbf16, #tpu.memory_space<vmem>>, vector<8x64xbf16>
    %cst_106 = arith.constant dense<0.000000e+00> : vector<8x8xf32>
    %154 = tpu.matmul %151, %152, %cst_106 {dimension_numbers = #tpu.dot_dimension_numbers<[1], [1], [0], [0], [0, 0, 1, 0], [], []>} : vector<8x64xbf16>, vector<8x64xbf16>, vector<8x8xf32> -> vector<8x8xf32>
    %cst_107 = arith.constant dense<0xFF800000> : vector<8xf32>
    %155 = vector.multi_reduction <maximumf>, %154, %cst_107 [1] : vector<8x8xf32> to vector<8xf32>
    %156 = vector.shape_cast %155 : vector<8xf32> to vector<8x1xf32>
    %157 = vector.broadcast %156 : vector<8x1xf32> to vector<8x8xf32>
    %158 = arith.subf %154, %157 : vector<8x8xf32>
    %159 = math.exp %158 : vector<8x8xf32>
    %cst_108 = arith.constant dense<0.000000e+00> : vector<8xf32>
    %160 = vector.multi_reduction <add>, %159, %cst_108 [1] : vector<8x8xf32> to vector<8xf32>
    %161 = vector.shape_cast %160 : vector<8xf32> to vector<8x1xf32>
    %162 = tpu.reciprocal %161 {approx = true} : vector<8x1xf32> -> vector<8x1xf32>
    %163 = vector.broadcast %162 : vector<8x1xf32> to vector<8x8xf32>
    %164 = arith.mulf %159, %163 : vector<8x8xf32>
    %165 = arith.truncf %164 : vector<8x8xf32> to vector<8x8xbf16>
    %cst_109 = arith.constant dense<0.000000e+00> : vector<8x64xf32>
    %166 = tpu.matmul %165, %153, %cst_109 {dimension_numbers = #tpu.dot_dimension_numbers<[1], [0], [0], [1], [0, 0, 1, 1], [], []>} : vector<8x8xbf16>, vector<8x64xbf16>, vector<8x64xf32> -> vector<8x64xf32>
    %167 = arith.truncf %166 : vector<8x64xf32> to vector<8x64xbf16>
    %c0_110 = arith.constant 0 : index
    %c448_111 = arith.constant 448 : index
    %168 = vector.load %arg15[%c0_110, %c448_111] : memref<8x512xbf16, #tpu.memory_space<vmem>>, vector<8x64xbf16>
    tpu.vector_store %arg15[%c0_110, %c448_111], %167 {strides = array<i32>} : memref<8x512xbf16, #tpu.memory_space<vmem>>, vector<8x64xbf16>,
    %c0_112 = arith.constant 0 : index
    %c0_113 = arith.constant 0 : index
    %169 = vector.load %arg15[%c0_112, %c0_113] : memref<8x512xbf16, #tpu.memory_space<vmem>>, vector<8x512xbf16>
    %c0_114 = arith.constant 0 : index
    %c0_115 = arith.constant 0 : index
    %170 = vector.load %arg9[%c0_114, %c0_115] : memref<512x512xbf16, #tpu.memory_space<vmem>>, vector<512x512xbf16>
    %cst_116 = arith.constant dense<0.000000e+00> : vector<8x512xf32>
    %171 = tpu.matmul %169, %170, %cst_116 {dimension_numbers = #tpu.dot_dimension_numbers<[1], [0], [0], [1], [0, 0, 1, 1], [], []>} : vector<8x512xbf16>, vector<512x512xbf16>, vector<8x512xf32> -> vector<8x512xf32>
    %c0_117 = arith.constant 0 : index
    %c0_118 = arith.constant 0 : index
    %172 = vector.load %arg10[%c0_117, %c0_118] : memref<1x512xf32, #tpu.memory_space<vmem>>, vector<1x512xf32>
    %173 = vector.broadcast %172 : vector<1x512xf32> to vector<8x512xf32>
    %174 = arith.addf %171, %173 : vector<8x512xf32>
    %c0_119 = arith.constant 0 : index
    %c0_120 = arith.constant 0 : index
    %175 = vector.load %arg11[%c0_119, %c0_120] : memref<8x512xf32, #tpu.memory_space<vmem>>, vector<8x512xf32>
    tpu.vector_store %arg11[%c0_119, %c0_120], %174 {strides = array<i32>} : memref<8x512xf32, #tpu.memory_space<vmem>>, vector<8x512xf32>,
    return
  }
  func.func @transform_0(%arg0: i32) -> (i32, i32) {
    %c0_i32 = arith.constant 0 : i32
    %c0_i32_0 = arith.constant 0 : i32
    return %c0_i32, %arg0 : i32, i32
  }
  func.func @transform_1(%arg0: i32) -> (i32, i32) {
    %c0_i32 = arith.constant 0 : i32
    %c0_i32_0 = arith.constant 0 : i32
    return %c0_i32, %arg0 : i32, i32
  }
  func.func @transform_2(%arg0: i32) -> (i32, i32) {
    %c0_i32 = arith.constant 0 : i32
    %c0_i32_0 = arith.constant 0 : i32
    %c0_i32_1 = arith.constant 0 : i32
    return %c0_i32, %c0_i32_0 : i32, i32
  }
  func.func @transform_3(%arg0: i32) -> (i32, i32) {
    %c0_i32 = arith.constant 0 : i32
    %c0_i32_0 = arith.constant 0 : i32
    %c0_i32_1 = arith.constant 0 : i32
    return %c0_i32, %c0_i32_0 : i32, i32
  }
  func.func @transform_4(%arg0: i32) -> (i32, i32) {
    %c0_i32 = arith.constant 0 : i32
    %c0_i32_0 = arith.constant 0 : i32
    %c0_i32_1 = arith.constant 0 : i32
    return %c0_i32, %c0_i32_0 : i32, i32
  }
  func.func @transform_5(%arg0: i32) -> (i32, i32) {
    %c0_i32 = arith.constant 0 : i32
    %c0_i32_0 = arith.constant 0 : i32
    %c0_i32_1 = arith.constant 0 : i32
    return %c0_i32, %c0_i32_0 : i32, i32
  }
  func.func @transform_6(%arg0: i32) -> (i32, i32) {
    %c0_i32 = arith.constant 0 : i32
    %c0_i32_0 = arith.constant 0 : i32
    %c0_i32_1 = arith.constant 0 : i32
    return %c0_i32, %c0_i32_0 : i32, i32
  }
  func.func @transform_7(%arg0: i32) -> (i32, i32) {
    %c0_i32 = arith.constant 0 : i32
    %c0_i32_0 = arith.constant 0 : i32
    %c0_i32_1 = arith.constant 0 : i32
    return %c0_i32, %c0_i32_0 : i32, i32
  }
  func.func @transform_8(%arg0: i32) -> (i32, i32) {
    %c0_i32 = arith.constant 0 : i32
    %c0_i32_0 = arith.constant 0 : i32
    %c0_i32_1 = arith.constant 0 : i32
    return %c0_i32, %c0_i32_0 : i32, i32
  }
  func.func @transform_9(%arg0: i32) -> (i32, i32) {
    %c0_i32 = arith.constant 0 : i32
    %c0_i32_0 = arith.constant 0 : i32
    %c0_i32_1 = arith.constant 0 : i32
    return %c0_i32, %c0_i32_0 : i32, i32
  }
  func.func @transform_10(%arg0: i32) -> (i32, i32) {
    %c0_i32 = arith.constant 0 : i32
    %c0_i32_0 = arith.constant 0 : i32
    return %c0_i32, %arg0 : i32, i32
  }
}

</mosaic_0001>

<bundles_post_ra>
// kernel: tpu_custom_call.1
= control target key start
LH: loop header
LB: loop body
LE: loop exit
PB: predicated region body
PF: predicated region fallthrough
CT: control target
= control target key end

     0   :  { %s8864_s0 = inlined_call_operand.hbm [shape: f32[8,1024], index: 0, kind: input, shape index: {}]   ;;  %s8865_s1 = inlined_call_operand.hbm [shape: f32[8,1024], index: 1, kind: input, shape index: {}]   ;;  %s8866_s2 = inlined_call_operand.hbm [shape: bf16[512,512], index: 2, kind: input, shape index: {}]   ;;  %s8867_s3 = inlined_call_operand.hbm [shape: f32[1,512], index: 3, kind: input, shape index: {}]   ;;  %s8868_s4 = inlined_call_operand.hbm [shape: bf16[512,512], index: 4, kind: input, shape index: {}]   ;;  %s8869_s5 = inlined_call_operand.vmem [shape: f32[1,512], index: 5, kind: input, shape index: {}]   ;;  %s8870_s6 = inlined_call_operand.hbm [shape: bf16[512,512], index: 6, kind: input, shape index: {}]   ;;  %s8871_s7 = inlined_call_operand.hbm [shape: f32[1,512], index: 7, kind: input, shape index: {}]   ;;  %s8872_s8 = inlined_call_operand.hbm [shape: bf16[512,512], index: 8, kind: input, shape index: {}]   ;;  %s8873_s9 = inlined_call_operand.vmem [shape: f32[1,512], index: 9, kind: input, shape index: {}]   ;;  %s8874_s10 = inlined_call_operand.hbm [shape: f32[8,1024], index: 10, kind: output, shape index: {}]  }
   0x1   :  { %8878 = sst [smem:[#allocation31_spill]] %s8866_s2 }
   0x2   :  { %8879 = sst [smem:[#allocation32_spill]] %s8867_s3 }
   0x3   :  { %8880 = sst [smem:[#allocation33_spill]] %s8868_s4 }
   0x4   :  { %8881 = sst [smem:[#allocation34_spill]] %s8870_s6 }
   0x5   :  { %8882 = sst [smem:[#allocation35_spill]] %s8871_s7 }
   0x6   :  { %8883 = sst [smem:[#allocation36_spill]] %s8872_s8 }
   0x7   :  { %15 = vsyncpa [#allocation7], 0 }
   0x8   :  { %17 = vsyncpa [#allocation7 + $0x1], 0 }
   0x9   :  { %18 = vsyncpa [#allocation10], 0 }
   0xa   :  { %20 = vsyncpa [#allocation10 + $0x1], 0 }
   0xb   :  { %21 = vsyncpa [#allocation13], 0 }
   0xc   :  { %22 = vsyncpa [#allocation16], 0 }
   0xd   :  { %23 = vsyncpa [#allocation19], 0 }
   0xe   :  { %24 = vsyncpa [#allocation8], 0 }
   0xf   :  { %26 = vsyncpa [#allocation8 + $0x1], 0  ;;  %s8345_s13 = smov 0   ;;  %s8347_s14 = smov 0  }
  0x10   :  { %s8349_s15 = smov 0   ;;  %s8351_s16 = smov 0  }
  0x11 LB: > { %8884 = sst [smem:[#allocation28_spill]] %s8275_s15  ;;  %s8369_s20 = sadd.s32 4294967295, %s8279_s16   ;;  %s8279_s16 = sphi %s8351_s16, %s8901_s16   ;;  %s8275_s15 = sphi %s8349_s15, %s8903_s15   ;;  %s8271_s14 = sphi %s8347_s14, %s8905_s14   ;;  %s8267_s13 = sphi %s8345_s13, %s8904_s13  }
  0x12   : > { %s8885_s2 = sld [smem:[#allocation31_spill]]  ;;  %p5198_p0 = scmp.ge.s32.totalorder %s8279_s16, 1 }
  0x13   : > { %p53_p1 = scmp.eq.s32.totalorder %s8369_s20, 0  ;;  %p283_p2 = scmp.lt.s32.totalorder %s8279_s16, 3 }
  0x14   : > { %s8281_s22 = smov [#allocation11]   ;;  %s8887_s3 = sld [smem:[#allocation32_spill]] }
  0x15   : > { %p8374_p3 = pnand %p5198_p0, %p283_p2  ;;  %s296_s23 = sshll.u32 %s8281_s22, 4  ;;  %s297_s23 = int_to_ptr.vmem [resolvable:$true] %s296_s23 }
  0x16   : > { %s8889_s6 = sld [smem:[#allocation34_spill]]  ;;  %s8282_s11 = smov [#allocation12]  }
  0x17   : > { %p7836_p4 = pneg %p8374_p3  ;;  %s311_s12 = sshll.u32 %s8282_s11, 4  ;;  %s312_s12 = int_to_ptr.vmem [resolvable:$true] %s311_s12 }
  0x18   : > { %s294_s19 = sshll.u32 %s8885_s2, 4  ;;  %s8283_s17 = smov 256   ;;  %s295_s19 = int_to_ptr.hbm [resolvable:$true] %s294_s19 }
  0x19   : > { %p8386_p6 = pnand %p7836_p4, %p53_p1  ;;  %s8284_s18 = smov 16  }
  0x1a   : > { %s309_s26 = sshll.u32 %s8887_s3, 4  ;;  %s8890_s4 = sld [smem:[#allocation33_spill]]  ;;  %s310_s26 = int_to_ptr.hbm [resolvable:$true] %s309_s26 }
  0x1b   : > { %7839 = dma.hbm_to_vmem [thread:$0]  (!%p8386_p6), %s295_s19, 16384, %s297_s23, [#allocation10], %s8283_s17, %s8283_s17, %s8284_s18  }
  0x1c   : > { %s337_s30 = sshll.u32 %s8889_s6, 4  ;;  %s8285_s28 = smov [#allocation15]   ;;  %s338_s30 = int_to_ptr.hbm [resolvable:$true] %s337_s30 }
  0x1d   : > { %7842 = dma.hbm_to_vmem [thread:$0]  (!%p8386_p6), %s310_s26, 64, %s312_s12, [#allocation13]  }
  0x1e   : > { %s339_s29 = sshll.u32 %s8285_s28, 4  ;;  %s8286_s19 = smov [#allocation14]   ;;  %s340_s29 = int_to_ptr.vmem [resolvable:$true] %s339_s29 }
  0x1f   : > { %7848 = dma.hbm_to_vmem [thread:$0]  (!%p8386_p6), %s338_s30, 16384, %s340_s29, [#allocation16], %s8283_s17, %s8283_s17, %s8284_s18  }
  0x20   : > { %s320_s25 = sshll.u32 %s8890_s4, 4  ;;  %s322_s23 = sshll.u32 %s8286_s19, 4  ;;  %s321_s25 = int_to_ptr.hbm [resolvable:$true] %s320_s25  ;;  %s323_s23 = int_to_ptr.vmem [resolvable:$true] %s322_s23 }
  0x21   : > { %s8891_s7 = sld [smem:[#allocation35_spill]]  ;;  %s8287_s28 = smov [#allocation17]  }
  0x22   : > { %7845 = dma.hbm_to_vmem [thread:$0]  (!%p8386_p6), %s321_s25, 16384, %s323_s23, [#allocation13], %s8283_s17, %s8283_s17, %s8284_s18  }
  0x23   : > { %s8892_s8 = sld [smem:[#allocation36_spill]]  ;;  %s354_s29 = sshll.u32 %s8287_s28, 4  ;;  %s355_s29 = int_to_ptr.vmem [resolvable:$true] %s354_s29 }
  0x24   : > { %s8288_s19 = smov [#allocation18]   ;;  %s5197_s23 = sadd.s32 4294967294, %s8279_s16  }
  0x25   : > { %s365_s25 = sshll.u32 %s8288_s19, 4  ;;  %s8428_s11 = sadd.s32 1, %s8279_s16   ;;  %s366_s25 = int_to_ptr.vmem [resolvable:$true] %s365_s25 }
  0x26   : > { %8893 = sst [smem:[#allocation29_spill]] %s8428_s11  ;;  %s36_s26 = ssub.s32 %s8279_s16, %s8428_s11 }
  0x27   : > { %s352_s12 = sshll.u32 %s8891_s7, 4  ;;  %s39_s22 = sadd.s32 1, %s8275_s15  ;;  %s353_s12 = int_to_ptr.hbm [resolvable:$true] %s352_s12 }
  0x28   : > { %7851 = dma.hbm_to_vmem [thread:$0]  (!%p8386_p6), %s353_s12, 64, %s355_s29, [#allocation16]  }
  0x29   : > { %s363_s24 = sshll.u32 %s8892_s8, 4  ;;  %p37_p7 = scmp.eq.s32.totalorder %s36_s26, 0  ;;  %s364_s24 = int_to_ptr.hbm [resolvable:$true] %s363_s24 }
  0x2a   : > { %7854 = dma.hbm_to_vmem [thread:$0]  (!%p8386_p6), %s364_s24, 16384, %s366_s25, [#allocation19], %s8283_s17, %s8283_s17, %s8284_s18  }
  0x2b   : > { %p46_p8 = scmp.ne.s32.totalorder %s8275_s15, %s8271_s14  ;;  %p47_p9 = scmp.eq.s32.totalorder %s8279_s16, 0 }
  0x2c   : > { %p52_p10 = scmp.ne.s32.totalorder %s8271_s14, %s8267_s13  ;;  %p270_p13 = scmp.eq.s32.totalorder %s8369_s20, 1 }
  0x2d   : > { %s8439_s12 = scalar_select %p37_p7, %s8275_s15, %s39_s22  }
  0x2e   : > { %p8441_p11 = por %p47_p9, %p46_p8  ;;  %p8447_p12 = por %p53_p1, %p52_p10 }
  0x2f   : > { %8894 = sst [smem:[#allocation30_spill]] %s8439_s12  ;;  %p276_p0 = scmp.eq.s32.totalorder %s5197_s23, 1 }
  0x30   : > { %p7872_p2 = scmp.lt.s32.totalorder %s8279_s16, 2  ;;  %s382_s18 = sand.u32 1, %s8275_s15  }
  0x31   : > { %p8454_p4 = por %p270_p13, %p46_p8  ;;  %p8458_p6 = por %p276_p0, %p52_p10 }
  0x32   : > { %s8462_s28 = sshll.u32 %s382_s18, 5  ;;  %s7291_s29 = sshll.u32 %s8279_s16, 5 }
  0x33   : > { %s391_s26 = scalar_lea.hbm %s8864_s0, %s7291_s29  ;;  %s386_s22 = scalar_lea.vmem [#allocation6], %s8462_s28 }
  0x34   : > { %s395_s23 = sshll.u32 %s386_s22, 4  ;;  %s393_s2 = sshll.u32 %s391_s26, 4  ;;  %s396_s23 = int_to_ptr.vmem [resolvable:$true] %s395_s23  ;;  %s394_s2 = int_to_ptr.hbm [resolvable:$true] %s393_s2 }
  0x35   : > { %p8471_p7 = pnand %p7872_p2, %p8441_p11  ;;  %s411_s7 = scalar_lea.hbm %s8865_s1, %s7291_s29 }
  0x36   : > { %s402_s8 = sand.u32 1, %s8279_s16   ;;  %s383_s12 = scalar_lea.sflag [#allocation7], %s382_s18 }
  0x37   : > { %s8133_s19 = sshra.s32 %s394_s2, 4  ;;  %p8137_p9 = pneg %p8471_p7  ;;  %s8134_s19 = int_to_ptr.hbm [resolvable:$true] %s8133_s19 }
  0x38   : > { %s8135_s25 = scalar_lea.hbm %s8134_s19, 32  ;;  %s8140_s22 = scalar_lea.hbm %s8864_s0, 64 }
  0x39   : > { %p8136_p8 = scmp.ne.s32.totalorder %s8134_s19, %s8135_s25  ;;  %p8141_p13 = scmp.lt.s32.totalorder %s8134_s19, %s8864_s0 }
  0x3a   : > { %p8142_p0 = scmp.lt.s32.totalorder %s8140_s22, %s8135_s25 }
  0x3b   : > { %p8138_p10 = pnand %p8137_p9, %p8136_p8 }
  0x3c   : > { %p8143_p2 = por %p8142_p0, %p8141_p13 }
  0x3d   : > { %p8139_p11 = pneg %p8138_p10 }
  0x3f   : > { %p8144_p5 = pnand %p8143_p2, %p8139_p11 }
  0x41   : > { %8147 = shalt.err (!%p8144_p5)
}
  0x42   : > { %7858 = dma.hbm_to_vmem [thread:$0]  (!%p8471_p7), %s394_s2, 512, %s396_s23, %s383_s12  }
  0x43   : > { %s413_s18 = sshll.u32 %s411_s7, 4  ;;  %s406_s29 = scalar_lea.vmem [#allocation9], %s8462_s28  ;;  %s414_s18 = int_to_ptr.hbm [resolvable:$true] %s413_s18 }
  0x44   : > { %s415_s15 = sshll.u32 %s406_s29, 4  ;;  %s403_s27 = scalar_lea.sflag [#allocation10], %s402_s8  ;;  %s416_s15 = int_to_ptr.vmem [resolvable:$true] %s415_s15 }
  0x45   : > { %s8163_s26 = sshra.s32 %s414_s18, 4  ;;  %s8170_s22 = scalar_lea.hbm %s8865_s1, 64  ;;  %s8164_s26 = int_to_ptr.hbm [resolvable:$true] %s8163_s26 }
  0x46   : > { %s8165_s11 = scalar_lea.hbm %s8164_s26, 32  ;;  %p8171_p5 = scmp.lt.s32.totalorder %s8164_s26, %s8865_s1 }
  0x47   : > { %p8166_p8 = scmp.ne.s32.totalorder %s8164_s26, %s8165_s11  ;;  %p8172_p13 = scmp.lt.s32.totalorder %s8170_s22, %s8165_s11 }
  0x49   : > { %p8168_p10 = pnand %p8166_p8, %p8137_p9  ;;  %p8173_p0 = por %p8172_p13, %p8171_p5 }
  0x4b   : > { %p8169_p11 = pneg %p8168_p10 }
  0x4d   : > { %p8174_p2 = pnand %p8173_p0, %p8169_p11 }
  0x4f   : > { %8177 = shalt.err (!%p8174_p2)
}
  0x50   : > { %7861 = dma.hbm_to_vmem [thread:$0]  (!%p8471_p7), %s414_s18, 512, %s416_s15, %s403_s27  }
  0x51   : > { %424 = sbr.rel (%p8374_p3) target bundleno = 1468 (0x5bc), region = 60  ;;  %s8507_s7 = sand.u32 (!%p8374_p3), 1, %s8271_s14  }
  0x52   : > { %s8510_s8 = sshll.u32 (!%p8374_p3), %s8507_s7, 5  ;;  %s427_s12 = scalar_lea.sflag (!%p8374_p3), [#allocation7], %s8507_s7 }
  0x53   : > { %s8514_s11 = scalar_lea.vmem (!%p8374_p3), [#allocation6], %s8510_s8 }
  0x56   : > { %8238 = dma.done.wait (%p8447_p12), %s427_s12, 512  }
  0x57   : > { %8240 = vsyncadd (%p8447_p12), %s427_s12, 4294966784  ;;  %s436_s3 = sand.u32 1, %s8369_s20   ;;  %s8522_s21 = scalar_lea.vmem [#allocation9], %s8510_s8 }
  0x58   : > { %s437_s15 = scalar_lea.sflag [#allocation10], %s436_s3 }
  0x59   : > { %8242 = dma.done.wait (%p8447_p12), %s437_s15, 512  }
  0x5a   : > { %8244 = vsyncadd (%p8447_p12), %s437_s15, 4294966784 }
  0x5b   : > { %8246 = dma.done.wait (%p53_p1), [#allocation10], 16384  }
  0x5c   : > { %8248 = vsyncadd (%p53_p1), [#allocation10], 4294950912 }
  0x5d   : > { %8250 = dma.done.wait (%p53_p1), [#allocation13], 16448  }
  0x5e   : > { %8252 = vsyncadd (%p53_p1), [#allocation13], 4294950848 }
  0x5f   : > { %8254 = dma.done.wait (%p53_p1), [#allocation16], 16448  }
  0x60   : > { %8256 = vsyncadd (%p53_p1), [#allocation16], 4294950848 }
  0x61   : > { %8258 = dma.done.wait (%p53_p1), [#allocation19], 16384  }
  0x62   : > { %8260 = vsyncadd (%p53_p1), [#allocation19], 4294950912  ;;  %v5336_v0 = vld [vmem:[#allocation11 + $0xe0] sm:$0xf]  ;;  %v7323_v1 = vld [vmem:[#allocation11 + $0xec] sm:$0xf0] }
  0x63   : > { %v5464_v2 = vld [vmem:[#allocation11 + $0x1e0] sm:$0xf]  ;;  %v5337_v3 = vor.u32 %v7323_v1, %v5336_v0  ;;  %v7355_v4 = vld [vmem:[#allocation11 + $0x1ec] sm:$0xf0]  ;;  %s8289_s23 = smov 64   ;;  %vm3506_vm0 = vcmask 523264  }
  0x64   : > { %v5592_v5 = vld [vmem:[#allocation11 + $0x2e0] sm:$0xf]  ;;  %v7387_v6 = vld [vmem:[#allocation11 + $0x2ec] sm:$0xf0]  ;;  %v5465_v7 = vor.u32 %v7355_v4, %v5464_v2  ;;  %vm3542_vm1 = vcmask 1043456   ;;  %vm3526_vm2 = vcmask 64512  }
  0x65   : > { %v5593_v8 = vor.u32 %v7387_v6, %v5592_v5  ;;  %v5720_v9 = vld [vmem:[#allocation11 + $0x3e0] sm:$0xf]  ;;  %v7419_v10 = vld [vmem:[#allocation11 + $0x3ec] sm:$0xf0]  ;;  %1311 = vmatpush.bf16.msra.mxu0 %v5337_v3  ;;  %vm3560_vm3 = vcmask 519168   ;;  %vm3635_vm4 = vcmask 1043968  }
  0x66   : > { %v5320_v11 = vld [vmem:[#allocation11 + $0xc0] sm:$0xf]  ;;  %v5721_v12 = vor.u32 %v7419_v10, %v5720_v9  ;;  %v7319_v13 = vld [vmem:[#allocation11 + $0xcc] sm:$0xf0]  ;;  %1324 = vmatpush.bf16.msra.mxu1 %v5465_v7  ;;  %s8824_s29 = scalar_lea.vmem [#allocation20], %s8510_s8  ;;  %s7805_s27 = sshll.u32 %s8369_s20, 5 }
  0x67   : > { %v5448_v14 = vld [vmem:[#allocation11 + $0x1c0] sm:$0xf]  ;;  %v7351_v15 = vld [vmem:[#allocation11 + $0x1cc] sm:$0xf0]  ;;  %1337 = vmatpush.bf16.msra.mxu2 %v5593_v8  ;;  %v5321_v16 = vor.u32 %v7319_v13, %v5320_v11  ;;  %s5042_s25 = scalar_lea.hbm %s8874_s10, %s7805_s27  ;;  %s5044_s22 = sshll.u32 %s8824_s29, 4  ;;  %s5045_s22 = int_to_ptr.vmem [resolvable:$true] %s5044_s22 }
  0x68   : > { %v5449_v17 = vor.u32 %v7351_v15, %v5448_v14  ;;  %v5576_v18 = vld [vmem:[#allocation11 + $0x2c0] sm:$0xf]  ;;  %v7383_v19 = vld [vmem:[#allocation11 + $0x2cc] sm:$0xf0]  ;;  %1350 = vmatpush.bf16.msra.mxu3 %v5721_v12  ;;  %s5046_s4 = sshll.u32 %s5042_s25, 4  ;;  %s5031_s20 = scalar_lea.sflag [#allocation8], %s8507_s7  ;;  %s5047_s4 = int_to_ptr.hbm [resolvable:$true] %s5046_s4 }
  0x69   : > { %v5704_v20 = vld [vmem:[#allocation11 + $0x3c0] sm:$0xf]  ;;  %v5577_v21 = vor.u32 %v7383_v19, %v5576_v18  ;;  %v7415_v22 = vld [vmem:[#allocation11 + $0x3cc] sm:$0xf0]  ;;  %1312 = vmatpush.bf16.msra.mxu0 %v5321_v16  ;;  %s8207_s2 = sshra.s32 %s5047_s4, 4  ;;  %s8213_s3 = scalar_lea.hbm %s8874_s10, 64  ;;  %s8208_s2 = int_to_ptr.hbm [resolvable:$true] %s8207_s2 }
  0x6a   : > { %v5304_v23 = vld [vmem:[#allocation11 + $0xa0] sm:$0xf]  ;;  %v7315_v24 = vld [vmem:[#allocation11 + $0xac] sm:$0xf0]  ;;  %v5705_v25 = vor.u32 %v7415_v22, %v5704_v20  ;;  %1325 = vmatpush.bf16.msra.mxu1 %v5449_v17  ;;  %s8209_s8 = scalar_lea.hbm %s8208_s2, 32  ;;  %p8214_p7 = scmp.lt.s32.totalorder %s8208_s2, %s8874_s10 }
  0x6b   : > { %v5432_v26 = vld [vmem:[#allocation11 + $0x1a0] sm:$0xf]  ;;  %v7347_v27 = vld [vmem:[#allocation11 + $0x1ac] sm:$0xf0]  ;;  %v5305_v29 = vor.u32 %v7315_v24, %v5304_v23  ;;  %1338 = vmatpush.bf16.msra.mxu2 %v5577_v21  ;;  %p8210_p1 = scmp.ne.s32.totalorder %s8208_s2, %s8209_s8  ;;  %p8215_p9 = scmp.lt.s32.totalorder %s8213_s3, %s8209_s8 }
  0x6c   : > { %v5560_v28 = vld [vmem:[#allocation11 + $0x2a0] sm:$0xf]  ;;  %v7379_v30 = vld [vmem:[#allocation11 + $0x2ac] sm:$0xf0]  ;;  %v5433_v33 = vor.u32 %v7347_v27, %v5432_v26  ;;  %1351 = vmatpush.bf16.msra.mxu3 %v5705_v25 }
  0x6d   : > { %v5688_v31 = vld [vmem:[#allocation11 + $0x3a0] sm:$0xf]  ;;  %v7411_v32 = vld [vmem:[#allocation11 + $0x3ac] sm:$0xf0]  ;;  %v5561_v34 = vor.u32 %v7379_v30, %v5560_v28  ;;  %1313 = vmatpush.bf16.msra.mxu0 %v5305_v29  ;;  %v7321_v28 = vld [vmem:[#allocation11 + $0xe4] sm:$0xf]  ;;  %p8211_p3 = pnand %p8210_p1, %p8454_p4  ;;  %p8216_p8 = por %p8215_p9, %p8214_p7 }
  0x6e   : > { %v5288_v35 = vld [vmem:[#allocation11 + $0x80] sm:$0xf]  ;;  %v7311_v36 = vld [vmem:[#allocation11 + $0x8c] sm:$0xf0]  ;;  %v5689_v38 = vor.u32 %v7411_v32, %v5688_v31  ;;  %1326 = vmatpush.bf16.msra.mxu1 %v5433_v33  ;;  %v5338_v29 = vld [vmem:[#allocation11 + $0xf0] sm:$0xf0] }
  0x6f   : > { %v5416_v37 = vld [vmem:[#allocation11 + $0x180] sm:$0xf]  ;;  %v7343_v39 = vld [vmem:[#allocation11 + $0x18c] sm:$0xf0]  ;;  %v5289_v44 = vor.u32 %v7311_v36, %v5288_v35  ;;  %1339 = vmatpush.bf16.msra.mxu2 %v5561_v34  ;;  %v7353_v30 = vld [vmem:[#allocation11 + $0x1e4] sm:$0xf]  ;;  %p8212_p12 = pneg %p8211_p3 }
  0x70   : > { %v5544_v40 = vld [vmem:[#allocation11 + $0x280] sm:$0xf]  ;;  %v7375_v41 = vld [vmem:[#allocation11 + $0x28c] sm:$0xf0]  ;;  %v5417_v45 = vor.u32 %v7343_v39, %v5416_v37  ;;  %1352 = vmatpush.bf16.msra.mxu3 %v5689_v38  ;;  %v5466_v32 = vld [vmem:[#allocation11 + $0x1f0] sm:$0xf0] }
  0x71   : > { %v5672_v42 = vld [vmem:[#allocation11 + $0x380] sm:$0xf]  ;;  %v7407_v43 = vld [vmem:[#allocation11 + $0x38c] sm:$0xf0]  ;;  %v5545_v46 = vor.u32 %v7375_v41, %v5544_v40  ;;  %1314 = vmatpush.bf16.msra.mxu0 %v5289_v44  ;;  %v7385_v33 = vld [vmem:[#allocation11 + $0x2e4] sm:$0xf]  ;;  %v5341_v40 = vor.u32 %v7321_v28, %v5338_v29  ;;  %v5469_v41 = vor.u32 %v7353_v30, %v5466_v32  ;;  %p8217_p10 = pnand %p8216_p8, %p8212_p12 }
  0x72   : > { %v5272_v47 = vld [vmem:[#allocation11 + $0x60] sm:$0xf]  ;;  %v7307_v48 = vld [vmem:[#allocation11 + $0x6c] sm:$0xf0]  ;;  %v5673_v50 = vor.u32 %v7407_v43, %v5672_v42  ;;  %1327 = vmatpush.bf16.msra.mxu1 %v5417_v45  ;;  %v5594_v34 = vld [vmem:[#allocation11 + $0x2f0] sm:$0xf0] }
  0x73   : > { %v5400_v49 = vld [vmem:[#allocation11 + $0x160] sm:$0xf]  ;;  %v7339_v51 = vld [vmem:[#allocation11 + $0x16c] sm:$0xf0]  ;;  %v5273_v56 = vor.u32 %v7307_v48, %v5272_v47  ;;  %1340 = vmatpush.bf16.msra.mxu2 %v5545_v46  ;;  %v7417_v37 = vld [vmem:[#allocation11 + $0x3e4] sm:$0xf]  ;;  %v5597_v42 = vor.u32 %v7385_v33, %v5594_v34 }
  0x74   : > { %v5528_v52 = vld [vmem:[#allocation11 + $0x260] sm:$0xf]  ;;  %v7371_v53 = vld [vmem:[#allocation11 + $0x26c] sm:$0xf0]  ;;  %v5401_v57 = vor.u32 %v7339_v51, %v5400_v49  ;;  %1353 = vmatpush.bf16.msra.mxu3 %v5673_v50  ;;  %v5722_v38 = vld [vmem:[#allocation11 + $0x3f0] sm:$0xf0] }
  0x75   : > { %v5656_v54 = vld [vmem:[#allocation11 + $0x360] sm:$0xf]  ;;  %v7403_v55 = vld [vmem:[#allocation11 + $0x36c] sm:$0xf0]  ;;  %v5529_v58 = vor.u32 %v7371_v53, %v5528_v52  ;;  %1315 = vmatpush.bf16.msra.mxu0 %v5273_v56  ;;  %v7317_v43 = vld [vmem:[#allocation11 + $0xc4] sm:$0xf]  ;;  %v5725_v46 = vor.u32 %v7417_v37, %v5722_v38 }
  0x76   : > { %v5256_v59 = vld [vmem:[#allocation11 + $0x40] sm:$0xf]  ;;  %v7303_v60 = vld [vmem:[#allocation11 + $0x4c] sm:$0xf0]  ;;  %v5657_v62 = vor.u32 %v7403_v55, %v5656_v54  ;;  %1328 = vmatpush.bf16.msra.mxu1 %v5401_v57  ;;  %v5322_v44 = vld [vmem:[#allocation11 + $0xd0] sm:$0xf0] }
  0x77   : > { %v5384_v61 = vld [vmem:[#allocation11 + $0x140] sm:$0xf]  ;;  %v7335_v63 = vld [vmem:[#allocation11 + $0x14c] sm:$0xf0]  ;;  %v5257_v4 = vor.u32 %v7303_v60, %v5256_v59  ;;  %1341 = vmatpush.bf16.msra.mxu2 %v5529_v58  ;;  %v7349_v45 = vld [vmem:[#allocation11 + $0x1c4] sm:$0xf]  ;;  %v5325_v53 = vor.u32 %v7317_v43, %v5322_v44 }
  0x78   : > { %v5512_v0 = vld [vmem:[#allocation11 + $0x240] sm:$0xf]  ;;  %v7367_v1 = vld [vmem:[#allocation11 + $0x24c] sm:$0xf0]  ;;  %v5385_v5 = vor.u32 %v7335_v63, %v5384_v61  ;;  %1354 = vmatpush.bf16.msra.mxu3 %v5657_v62  ;;  %v5450_v47 = vld [vmem:[#allocation11 + $0x1d0] sm:$0xf0] }
  0x79   : > { %v5640_v2 = vld [vmem:[#allocation11 + $0x340] sm:$0xf]  ;;  %v7399_v3 = vld [vmem:[#allocation11 + $0x34c] sm:$0xf0]  ;;  %v5513_v6 = vor.u32 %v7367_v1, %v5512_v0  ;;  %1316 = vmatpush.bf16.msra.mxu0 %v5257_v4  ;;  %v7381_v48 = vld [vmem:[#allocation11 + $0x2c4] sm:$0xf]  ;;  %v5453_v58 = vor.u32 %v7349_v45, %v5450_v47 }
  0x7a   : > { %v5240_v7 = vld [vmem:[#allocation11 + $0x20] sm:$0xf]  ;;  %v7299_v8 = vld [vmem:[#allocation11 + $0x2c] sm:$0xf0]  ;;  %v5641_v10 = vor.u32 %v7399_v3, %v5640_v2  ;;  %1329 = vmatpush.bf16.msra.mxu1 %v5385_v5  ;;  %v5578_v49 = vld [vmem:[#allocation11 + $0x2d0] sm:$0xf0] }
  0x7b   : > { %v5368_v9 = vld [vmem:[#allocation11 + $0x120] sm:$0xf]  ;;  %v7331_v11 = vld [vmem:[#allocation11 + $0x12c] sm:$0xf0]  ;;  %v5241_v16 = vor.u32 %v7299_v8, %v5240_v7  ;;  %1342 = vmatpush.bf16.msra.mxu2 %v5513_v6  ;;  %v7413_v50 = vld [vmem:[#allocation11 + $0x3c4] sm:$0xf]  ;;  %v5581_v59 = vor.u32 %v7381_v48, %v5578_v49 }
  0x7c   : > { %v5496_v12 = vld [vmem:[#allocation11 + $0x220] sm:$0xf]  ;;  %v7363_v13 = vld [vmem:[#allocation11 + $0x22c] sm:$0xf0]  ;;  %v5369_v19 = vor.u32 %v7331_v11, %v5368_v9  ;;  %1355 = vmatpush.bf16.msra.mxu3 %v5641_v10  ;;  %v5706_v51 = vld [vmem:[#allocation11 + $0x3d0] sm:$0xf0] }
  0x7d   : > { %v5624_v14 = vld [vmem:[#allocation11 + $0x320] sm:$0xf]  ;;  %v7395_v15 = vld [vmem:[#allocation11 + $0x32c] sm:$0xf0]  ;;  %v5497_v20 = vor.u32 %v7363_v13, %v5496_v12  ;;  %1317 = vmatpush.bf16.msra.mxu0 %v5241_v16  ;;  %v7313_v54 = vld [vmem:[#allocation11 + $0xa4] sm:$0xf]  ;;  %v5709_v63 = vor.u32 %v7413_v50, %v5706_v51 }
  0x7e   : > { %v5224_v17 = vld [vmem:[#allocation11] sm:$0xf]  ;;  %v7295_v18 = vld [vmem:[#allocation11 + $0xc] sm:$0xf0]  ;;  %v5625_v24 = vor.u32 %v7395_v15, %v5624_v14  ;;  %1330 = vmatpush.bf16.msra.mxu1 %v5369_v19  ;;  %v5306_v55 = vld [vmem:[#allocation11 + $0xb0] sm:$0xf0] }
  0x7f   : > { %v5352_v21 = vld [vmem:[#allocation11 + $0x100] sm:$0xf]  ;;  %v7327_v22 = vld [vmem:[#allocation11 + $0x10c] sm:$0xf0]  ;;  %v5225_v31 = vor.u32 %v7295_v18, %v5224_v17  ;;  %1343 = vmatpush.bf16.msra.mxu2 %v5497_v20  ;;  %v7345_v56 = vld [vmem:[#allocation11 + $0x1a4] sm:$0xf]  ;;  %v5309_v8 = vor.u32 %v7313_v54, %v5306_v55 }
  0x80   : > { %v5480_v23 = vld [vmem:[#allocation11 + $0x200] sm:$0xf]  ;;  %v7359_v25 = vld [vmem:[#allocation11 + $0x20c] sm:$0xf0]  ;;  %v5353_v35 = vor.u32 %v7327_v22, %v5352_v21  ;;  %1356 = vmatpush.bf16.msra.mxu3 %v5625_v24  ;;  %v5434_v60 = vld [vmem:[#allocation11 + $0x1b0] sm:$0xf0] }
  0x81   : > { %v5608_v26 = vld [vmem:[#allocation11 + $0x300] sm:$0xf]  ;;  %v7391_v27 = vld [vmem:[#allocation11 + $0x30c] sm:$0xf0]  ;;  %v5481_v36 = vor.u32 %v7359_v25, %v5480_v23  ;;  %1318 = vmatpush.bf16.msra.mxu0 %v5225_v31  ;;  %v7377_v61 = vld [vmem:[#allocation11 + $0x2a4] sm:$0xf]  ;;  %v5437_v9 = vor.u32 %v7345_v56, %v5434_v60 }
  0x82   : > { %v5609_v39 = vor.u32 %v7391_v27, %v5608_v26  ;;  %1331 = vmatpush.bf16.msra.mxu1 %v5353_v35  ;;  %v519_v52 = vld [vmem:[%s8514_s11 + $0x10] sm:$0xff]  ;;  %v517_v0 = vld [vmem:[%s8514_s11] sm:$0xff]  ;;  %v520_v1 = vld [vmem:[%s8514_s11 + $0x18] sm:$0xff] }
  0x83   : > { %1344 = vmatpush.bf16.msra.mxu2 %v5481_v36  ;;  %v8545_v57 = vpack.c.bf16 %v519_v52, %v519_v52  ;;  %v5562_v62 = vld [vmem:[#allocation11 + $0x2b0] sm:$0xf0]  ;;  %v518_v2 = vld [vmem:[%s8514_s11 + $0x8] sm:$0xff]  ;;  %v7409_v3 = vld [vmem:[#allocation11 + $0x3a4] sm:$0xf]  ;;  %v8551_v5 = vpack.c.bf16 %v517_v0, %v517_v0  ;;  %v8553_v6 = vpack.c.bf16 %v520_v1, %v520_v1 }
  0x84   : > { %1357 = vmatpush.bf16.msra.mxu3 %v5609_v39  ;;  %v5690_v4 = vld [vmem:[#allocation11 + $0x3b0] sm:$0xf0]  ;;  %v8555_v7 = vpack.c.bf16 %v518_v2, %v518_v2  ;;  %v5565_v10 = vor.u32 %v7377_v61, %v5562_v62  ;;  %v7309_v11 = vld [vmem:[#allocation11 + $0x84] sm:$0xf] }
  0x85   : > { %1363 = vmatpush.bf16.msrb.mxu0 %v5341_v40  ;;  %v5290_v12 = vld [vmem:[#allocation11 + $0x90] sm:$0xf0]  ;;  %v7341_v13 = vld [vmem:[#allocation11 + $0x184] sm:$0xf]  ;;  %v5693_v14 = vor.u32 %v7409_v3, %v5690_v4 }
  0x86   : > { %1376 = vmatpush.bf16.msrb.mxu1 %v5469_v41  ;;  %1345 = vmatmul.bf16.vlgmr.msra.gmra.mxu2 %v8545_v57  ;;  %v5418_v15 = vld [vmem:[#allocation11 + $0x190] sm:$0xf0]  ;;  %v7373_v16 = vld [vmem:[#allocation11 + $0x284] sm:$0xf]  ;;  %v5293_v20 = vor.u32 %v7309_v11, %v5290_v12  ;;  %v7356_v12 = vld [vmem:[#allocation11 + $0x1f4] sm:$0xf0] }
  0x87   : > { %1389 = vmatpush.bf16.msrb.mxu2 %v5597_v42  ;;  %v5546_v17 = vld [vmem:[#allocation11 + $0x290] sm:$0xf0]  ;;  %1319 = vmatmul.bf16.vlgmr.msra.gmra.mxu0 %v8551_v5  ;;  %v7405_v18 = vld [vmem:[#allocation11 + $0x384] sm:$0xf]  ;;  %v5421_v21 = vor.u32 %v7341_v13, %v5418_v15  ;;  %v5600_v13 = vld [vmem:[#allocation11 + $0x2e8] sm:$0xf] }
  0x88   : > { %1402 = vmatpush.bf16.msrb.mxu3 %v5725_v46  ;;  %v5674_v19 = vld [vmem:[#allocation11 + $0x390] sm:$0xf0]  ;;  %1332 = vmatmul.bf16.vlgmr.msra.gmra.mxu1 %v8555_v7  ;;  %v5549_v22 = vor.u32 %v7373_v16, %v5546_v17  ;;  %v7305_v23 = vld [vmem:[#allocation11 + $0x64] sm:$0xf]  ;;  %v5728_v17 = vld [vmem:[#allocation11 + $0x3e8] sm:$0xf] }
  0x89   : > { %1364 = vmatpush.bf16.msrb.mxu0 %v5325_v53  ;;  %1358 = vmatmul.bf16.vlgmr.msra.gmra.mxu3 %v8553_v6  ;;  %v5274_v24 = vld [vmem:[#allocation11 + $0x70] sm:$0xf0]  ;;  %v7337_v25 = vld [vmem:[#allocation11 + $0x164] sm:$0xf]  ;;  %v5677_v26 = vor.u32 %v7405_v18, %v5674_v19  ;;  %v7420_v18 = vld [vmem:[#allocation11 + $0x3f4] sm:$0xf0] }
  0x8a   : > { %1377 = vmatpush.bf16.msrb.mxu1 %v5453_v58  ;;  %v5402_v27 = vld [vmem:[#allocation11 + $0x170] sm:$0xf0]  ;;  %v7369_v28 = vld [vmem:[#allocation11 + $0x264] sm:$0xf]  ;;  %v5277_v32 = vor.u32 %v7305_v23, %v5274_v24  ;;  %v5328_v23 = vld [vmem:[#allocation11 + $0xc8] sm:$0xf] }
  0x8b   : > { %1390 = vmatpush.bf16.msrb.mxu2 %v5581_v59  ;;  %v5530_v29 = vld [vmem:[#allocation11 + $0x270] sm:$0xf0]  ;;  %v7401_v30 = vld [vmem:[#allocation11 + $0x364] sm:$0xf]  ;;  %v5405_v33 = vor.u32 %v7337_v25, %v5402_v27  ;;  %v7320_v24 = vld [vmem:[#allocation11 + $0xd4] sm:$0xf0] }
  0x8c   : > { %1403 = vmatpush.bf16.msrb.mxu3 %v5709_v63  ;;  %v5658_v31 = vld [vmem:[#allocation11 + $0x370] sm:$0xf0]  ;;  %v5533_v34 = vor.u32 %v7369_v28, %v5530_v29  ;;  %v7301_v35 = vld [vmem:[#allocation11 + $0x44] sm:$0xf]  ;;  %v5456_v25 = vld [vmem:[#allocation11 + $0x1c8] sm:$0xf] }
  0x8d   : > { %1365 = vmatpush.bf16.msrb.mxu0 %v5309_v8  ;;  %v5258_v36 = vld [vmem:[#allocation11 + $0x50] sm:$0xf0]  ;;  %v7333_v37 = vld [vmem:[#allocation11 + $0x144] sm:$0xf]  ;;  %v5661_v38 = vor.u32 %v7401_v30, %v5658_v31  ;;  %v5344_v8 = vld [vmem:[#allocation11 + $0xe8] sm:$0xf] }
  0x8e   : > { %1378 = vmatpush.bf16.msrb.mxu1 %v5437_v9  ;;  %v5386_v39 = vld [vmem:[#allocation11 + $0x150] sm:$0xf0]  ;;  %v7365_v40 = vld [vmem:[#allocation11 + $0x244] sm:$0xf]  ;;  %v5261_v44 = vor.u32 %v7301_v35, %v5258_v36  ;;  %v7324_v9 = vld [vmem:[#allocation11 + $0xf4] sm:$0xf0] }
  0x8f   : > { %1391 = vmatpush.bf16.msrb.mxu2 %v5565_v10  ;;  %v5514_v41 = vld [vmem:[#allocation11 + $0x250] sm:$0xf0]  ;;  %v7397_v42 = vld [vmem:[#allocation11 + $0x344] sm:$0xf]  ;;  %v5389_v45 = vor.u32 %v7333_v37, %v5386_v39  ;;  %v5472_v10 = vld [vmem:[#allocation11 + $0x1e8] sm:$0xf] }
  0x90   : > { %1404 = vmatpush.bf16.msrb.mxu3 %v5693_v14  ;;  %v5642_v43 = vld [vmem:[#allocation11 + $0x350] sm:$0xf0]  ;;  %v5517_v46 = vor.u32 %v7365_v40, %v5514_v41  ;;  %v7297_v47 = vld [vmem:[#allocation11 + $0x24] sm:$0xf]  ;;  %v7388_v14 = vld [vmem:[#allocation11 + $0x2f4] sm:$0xf0] }
  0x91   : > { %1366 = vmatpush.bf16.msrb.mxu0 %v5293_v20  ;;  %v5242_v48 = vld [vmem:[#allocation11 + $0x30] sm:$0xf0]  ;;  %v7329_v49 = vld [vmem:[#allocation11 + $0x124] sm:$0xf]  ;;  %v5645_v50 = vor.u32 %v7397_v42, %v5642_v43  ;;  %v5345_v20 = vor.u32 %v7324_v9, %v5344_v8  ;;  %v7352_v27 = vld [vmem:[#allocation11 + $0x1d4] sm:$0xf0] }
  0x92   : > { %1379 = vmatpush.bf16.msrb.mxu1 %v5421_v21  ;;  %v5370_v51 = vld [vmem:[#allocation11 + $0x130] sm:$0xf0]  ;;  %v7361_v52 = vld [vmem:[#allocation11 + $0x224] sm:$0xf]  ;;  %v5245_v56 = vor.u32 %v7297_v47, %v5242_v48  ;;  %v5473_v21 = vor.u32 %v7356_v12, %v5472_v10  ;;  %v5584_v28 = vld [vmem:[#allocation11 + $0x2c8] sm:$0xf] }
  0x93   : > { %1392 = vmatpush.bf16.msrb.mxu2 %v5549_v22  ;;  %v5498_v53 = vld [vmem:[#allocation11 + $0x230] sm:$0xf0]  ;;  %v7393_v54 = vld [vmem:[#allocation11 + $0x324] sm:$0xf]  ;;  %v5373_v60 = vor.u32 %v7329_v49, %v5370_v51  ;;  %v5601_v22 = vor.u32 %v7388_v14, %v5600_v13  ;;  %v7384_v29 = vld [vmem:[#allocation11 + $0x2d4] sm:$0xf0] }
  0x94   : > { %1405 = vmatpush.bf16.msrb.mxu3 %v5677_v26  ;;  %v5626_v55 = vld [vmem:[#allocation11 + $0x330] sm:$0xf0]  ;;  %v7293_v58 = vld [vmem:[#allocation11 + $0x4] sm:$0xf]  ;;  %v5501_v61 = vor.u32 %v7361_v52, %v5498_v53  ;;  %v5729_v26 = vor.u32 %v7420_v18, %v5728_v17  ;;  %v5712_v30 = vld [vmem:[#allocation11 + $0x3c8] sm:$0xf] }
  0x95   : > { %1367 = vmatpush.bf16.msrb.mxu0 %v5277_v32  ;;  %v5226_v59 = vld [vmem:[#allocation11 + $0x10] sm:$0xf0]  ;;  %v7325_v62 = vld [vmem:[#allocation11 + $0x104] sm:$0xf]  ;;  %v5629_v1 = vor.u32 %v7393_v54, %v5626_v55  ;;  %v7416_v31 = vld [vmem:[#allocation11 + $0x3d4] sm:$0xf0]  ;;  %v5329_v32 = vor.u32 %v7320_v24, %v5328_v23 }
  0x96   : > { %1380 = vmatpush.bf16.msrb.mxu1 %v5405_v33  ;;  %v5354_v63 = vld [vmem:[#allocation11 + $0x110] sm:$0xf0]  ;;  %v7357_v0 = vld [vmem:[#allocation11 + $0x204] sm:$0xf]  ;;  %v5229_v11 = vor.u32 %v7293_v58, %v5226_v59  ;;  %v5457_v33 = vor.u32 %v7352_v27, %v5456_v25  ;;  %v5312_v35 = vld [vmem:[#allocation11 + $0xa8] sm:$0xf] }
  0x97   : > { %1393 = vmatpush.bf16.msrb.mxu2 %v5533_v34  ;;  %v5482_v2 = vld [vmem:[#allocation11 + $0x210] sm:$0xf0]  ;;  %v7389_v3 = vld [vmem:[#allocation11 + $0x304] sm:$0xf]  ;;  %v5357_v15 = vor.u32 %v7325_v62, %v5354_v63  ;;  %v5585_v34 = vor.u32 %v7384_v29, %v5584_v28  ;;  %v7316_v36 = vld [vmem:[#allocation11 + $0xb4] sm:$0xf0] }
  0x98   : > { %1406 = vmatpush.bf16.msrb.mxu3 %v5661_v38  ;;  %v5610_v4 = vld [vmem:[#allocation11 + $0x310] sm:$0xf0]  ;;  %v5485_v16 = vor.u32 %v7357_v0, %v5482_v2  ;;  %v5440_v37 = vld [vmem:[#allocation11 + $0x1a8] sm:$0xf]  ;;  %v5713_v38 = vor.u32 %v7416_v31, %v5712_v30  ;;  %v7348_v39 = vld [vmem:[#allocation11 + $0x1b4] sm:$0xf0] }
  0x99   : > { %1368 = vmatpush.bf16.msrb.mxu0 %v5261_v44  ;;  %v5613_v19 = vor.u32 %v7389_v3, %v5610_v4  ;;  %v5568_v40 = vld [vmem:[#allocation11 + $0x2a8] sm:$0xf]  ;;  %v7380_v41 = vld [vmem:[#allocation11 + $0x2b4] sm:$0xf0]  ;;  %v5313_v44 = vor.u32 %v7316_v36, %v5312_v35 }
  0x9a   : > { %1381 = vmatpush.bf16.msrb.mxu1 %v5389_v45  ;;  %v5696_v42 = vld [vmem:[#allocation11 + $0x3a8] sm:$0xf]  ;;  %v7412_v43 = vld [vmem:[#allocation11 + $0x3b4] sm:$0xf0]  ;;  %v5441_v45 = vor.u32 %v7348_v39, %v5440_v37 }
  0x9b   : > { %1394 = vmatpush.bf16.msrb.mxu2 %v5517_v46  ;;  %v5569_v46 = vor.u32 %v7380_v41, %v5568_v40  ;;  %v5296_v47 = vld [vmem:[#allocation11 + $0x88] sm:$0xf]  ;;  %v7312_v48 = vld [vmem:[#allocation11 + $0x94] sm:$0xf0] }
  0x9c   : > { %1407 = vmatpush.bf16.msrb.mxu3 %v5645_v50  ;;  %v5424_v49 = vld [vmem:[#allocation11 + $0x188] sm:$0xf]  ;;  %v5697_v50 = vor.u32 %v7412_v43, %v5696_v42  ;;  %v7344_v51 = vld [vmem:[#allocation11 + $0x194] sm:$0xf0] }
  0x9d   : > { %1369 = vmatpush.bf16.msrb.mxu0 %v5245_v56  ;;  %v5552_v52 = vld [vmem:[#allocation11 + $0x288] sm:$0xf]  ;;  %v7376_v53 = vld [vmem:[#allocation11 + $0x294] sm:$0xf0]  ;;  %v5297_v56 = vor.u32 %v7312_v48, %v5296_v47  ;;  %v5425_v58 = vor.u32 %v7344_v51, %v5424_v49  ;;  %v5474_v48 = vld [vmem:[#allocation11 + $0x1f8] sm:$0xf0] }
  0x9e   : > { %1382 = vmatpush.bf16.msrb.mxu1 %v5373_v60  ;;  %v5680_v54 = vld [vmem:[#allocation11 + $0x388] sm:$0xf]  ;;  %v7408_v55 = vld [vmem:[#allocation11 + $0x394] sm:$0xf0]  ;;  %v5553_v59 = vor.u32 %v7376_v53, %v5552_v52  ;;  %v7386_v49 = vld [vmem:[#allocation11 + $0x2ec] sm:$0xf] }
  0x9f   : > { %1395 = vmatpush.bf16.msrb.mxu2 %v5501_v61  ;;  %v5280_v60 = vld [vmem:[#allocation11 + $0x68] sm:$0xf]  ;;  %v7308_v61 = vld [vmem:[#allocation11 + $0x74] sm:$0xf0]  ;;  %v5681_v63 = vor.u32 %v7408_v55, %v5680_v54  ;;  %v7418_v53 = vld [vmem:[#allocation11 + $0x3ec] sm:$0xf] }
  0xa0   : > { %1408 = vmatpush.bf16.msrb.mxu3 %v5629_v1  ;;  %v5408_v62 = vld [vmem:[#allocation11 + $0x168] sm:$0xf]  ;;  %v7340_v0 = vld [vmem:[#allocation11 + $0x174] sm:$0xf0]  ;;  %v5281_v8 = vor.u32 %v7308_v61, %v5280_v60  ;;  %v5730_v54 = vld [vmem:[#allocation11 + $0x3f8] sm:$0xf0] }
  0xa1   : > { %1370 = vmatpush.bf16.msrb.mxu0 %v5229_v11  ;;  %v5536_v1 = vld [vmem:[#allocation11 + $0x268] sm:$0xf]  ;;  %v7372_v2 = vld [vmem:[#allocation11 + $0x274] sm:$0xf0]  ;;  %v5409_v9 = vor.u32 %v7340_v0, %v5408_v62  ;;  %v7318_v60 = vld [vmem:[#allocation11 + $0xcc] sm:$0xf] }
  0xa2   : > { %1383 = vmatpush.bf16.msrb.mxu1 %v5357_v15  ;;  %v5664_v3 = vld [vmem:[#allocation11 + $0x368] sm:$0xf]  ;;  %v7404_v4 = vld [vmem:[#allocation11 + $0x374] sm:$0xf0]  ;;  %v5537_v10 = vor.u32 %v7372_v2, %v5536_v1  ;;  %v5330_v61 = vld [vmem:[#allocation11 + $0xd8] sm:$0xf0] }
  0xa3   : > { %1396 = vmatpush.bf16.msrb.mxu2 %v5485_v16  ;;  %v5264_v11 = vld [vmem:[#allocation11 + $0x48] sm:$0xf]  ;;  %v7304_v12 = vld [vmem:[#allocation11 + $0x54] sm:$0xf0]  ;;  %v5665_v14 = vor.u32 %v7404_v4, %v5664_v3  ;;  %v7350_v62 = vld [vmem:[#allocation11 + $0x1cc] sm:$0xf] }
  0xa4   : > { %1409 = vmatpush.bf16.msrb.mxu3 %v5613_v19  ;;  %1371 = vmatmul.bf16.vlgmr.msrb.gmra.mxu0 %v8551_v5  ;;  %v5392_v13 = vld [vmem:[#allocation11 + $0x148] sm:$0xf]  ;;  %v7336_v15 = vld [vmem:[#allocation11 + $0x154] sm:$0xf0]  ;;  %v5458_v0 = vld [vmem:[#allocation11 + $0x1d8] sm:$0xf0] }
  0xa5   : > { %1415 = vmatpush.bf16.msra.mxu0 %v5345_v20  ;;  %1384 = vmatmul.bf16.vlgmr.msrb.gmra.mxu1 %v8555_v7  ;;  %v5520_v16 = vld [vmem:[#allocation11 + $0x248] sm:$0xf]  ;;  %v7368_v17 = vld [vmem:[#allocation11 + $0x254] sm:$0xf0]  ;;  %v5265_v20 = vor.u32 %v7304_v12, %v5264_v11  ;;  %v7382_v1 = vld [vmem:[#allocation11 + $0x2cc] sm:$0xf] }
  0xa6   : > { %1428 = vmatpush.bf16.msra.mxu1 %v5473_v21  ;;  %1397 = vmatmul.bf16.vlgmr.msrb.gmra.mxu2 %v8545_v57  ;;  %v5648_v18 = vld [vmem:[#allocation11 + $0x348] sm:$0xf]  ;;  %v7400_v19 = vld [vmem:[#allocation11 + $0x354] sm:$0xf0]  ;;  %v5393_v21 = vor.u32 %v7336_v15, %v5392_v13  ;;  %v5586_v2 = vld [vmem:[#allocation11 + $0x2d8] sm:$0xf0] }
  0xa7   : > { %1441 = vmatpush.bf16.msra.mxu2 %v5601_v22  ;;  %1410 = vmatmul.bf16.vlgmr.msrb.gmra.mxu3 %v8553_v6  ;;  %v5521_v22 = vor.u32 %v7368_v17, %v5520_v16  ;;  %v5248_v23 = vld [vmem:[#allocation11 + $0x28] sm:$0xf]  ;;  %v7300_v24 = vld [vmem:[#allocation11 + $0x34] sm:$0xf0]  ;;  %v7414_v3 = vld [vmem:[#allocation11 + $0x3cc] sm:$0xf] }
  0xa8   : > { %1454 = vmatpush.bf16.msra.mxu3 %v5729_v26  ;;  %v5376_v25 = vld [vmem:[#allocation11 + $0x128] sm:$0xf]  ;;  %v5649_v26 = vor.u32 %v7400_v19, %v5648_v18  ;;  %v7332_v27 = vld [vmem:[#allocation11 + $0x134] sm:$0xf0]  ;;  %v5714_v4 = vld [vmem:[#allocation11 + $0x3d8] sm:$0xf0] }
  0xa9   : > { %1416 = vmatpush.bf16.msra.mxu0 %v5329_v32  ;;  %v5504_v28 = vld [vmem:[#allocation11 + $0x228] sm:$0xf]  ;;  %v7364_v29 = vld [vmem:[#allocation11 + $0x234] sm:$0xf0]  ;;  %v5249_v32 = vor.u32 %v7300_v24, %v5248_v23  ;;  %v5377_v35 = vor.u32 %v7332_v27, %v5376_v25  ;;  %v7314_v11 = vld [vmem:[#allocation11 + $0xac] sm:$0xf] }
  0xaa   : > { %1429 = vmatpush.bf16.msra.mxu1 %v5457_v33  ;;  %v5632_v30 = vld [vmem:[#allocation11 + $0x328] sm:$0xf]  ;;  %v7396_v31 = vld [vmem:[#allocation11 + $0x334] sm:$0xf0]  ;;  %v5505_v36 = vor.u32 %v7364_v29, %v5504_v28  ;;  %v5314_v12 = vld [vmem:[#allocation11 + $0xb8] sm:$0xf0] }
  0xab   : > { %1442 = vmatpush.bf16.msra.mxu2 %v5585_v34  ;;  %v5232_v33 = vld [vmem:[#allocation11 + $0x8] sm:$0xf]  ;;  %v7296_v34 = vld [vmem:[#allocation11 + $0x14] sm:$0xf0]  ;;  %v5633_v40 = vor.u32 %v7396_v31, %v5632_v30  ;;  %v7346_v13 = vld [vmem:[#allocation11 + $0x1ac] sm:$0xf] }
  0xac   : > { %1455 = vmatpush.bf16.msra.mxu3 %v5713_v38  ;;  %v5360_v37 = vld [vmem:[#allocation11 + $0x108] sm:$0xf]  ;;  %v7328_v38 = vld [vmem:[#allocation11 + $0x114] sm:$0xf0]  ;;  %v5233_v47 = vor.u32 %v7296_v34, %v5232_v33  ;;  %v5442_v15 = vld [vmem:[#allocation11 + $0x1b8] sm:$0xf0] }
  0xad   : > { %1417 = vmatpush.bf16.msra.mxu0 %v5313_v44  ;;  %v5488_v39 = vld [vmem:[#allocation11 + $0x208] sm:$0xf]  ;;  %v7360_v41 = vld [vmem:[#allocation11 + $0x214] sm:$0xf0]  ;;  %v7322_v44 = vld [vmem:[#allocation11 + $0xec] sm:$0xf]  ;;  %v5361_v51 = vor.u32 %v7328_v38, %v5360_v37 }
  0xae   : > { %1430 = vmatpush.bf16.msra.mxu1 %v5441_v45  ;;  %v5616_v42 = vld [vmem:[#allocation11 + $0x308] sm:$0xf]  ;;  %v7392_v43 = vld [vmem:[#allocation11 + $0x314] sm:$0xf0]  ;;  %v5346_v45 = vld [vmem:[#allocation11 + $0xf8] sm:$0xf0]  ;;  %v5489_v52 = vor.u32 %v7360_v41, %v5488_v39 }
  0xaf   : > { %1443 = vmatpush.bf16.msra.mxu2 %v5569_v46  ;;  %v7354_v46 = vld [vmem:[#allocation11 + $0x1ec] sm:$0xf]  ;;  %v5617_v55 = vor.u32 %v7392_v43, %v5616_v42  ;;  %v5570_v17 = vld [vmem:[#allocation11 + $0x2b8] sm:$0xf0] }
  0xb0   : > { %1456 = vmatpush.bf16.msra.mxu3 %v5697_v50  ;;  %v5602_v50 = vld [vmem:[#allocation11 + $0x2f8] sm:$0xf0]  ;;  %v7378_v16 = vld [vmem:[#allocation11 + $0x2ac] sm:$0xf] }
  0xb1   : > { %1418 = vmatpush.bf16.msra.mxu0 %v5297_v56  ;;  %v5349_v56 = vor.u32 %v7322_v44, %v5346_v45  ;;  %v7410_v18 = vld [vmem:[#allocation11 + $0x3ac] sm:$0xf]  ;;  %v5698_v19 = vld [vmem:[#allocation11 + $0x3b8] sm:$0xf0] }
  0xb2   : > { %1431 = vmatpush.bf16.msra.mxu1 %v5425_v58  ;;  %v5477_v58 = vor.u32 %v7354_v46, %v5474_v48  ;;  %v7310_v23 = vld [vmem:[#allocation11 + $0x8c] sm:$0xf]  ;;  %v5298_v24 = vld [vmem:[#allocation11 + $0x98] sm:$0xf0] }
  0xb3   : > { %1444 = vmatpush.bf16.msra.mxu2 %v5553_v59  ;;  %v5605_v59 = vor.u32 %v7386_v49, %v5602_v50  ;;  %v7342_v25 = vld [vmem:[#allocation11 + $0x18c] sm:$0xf]  ;;  %v5426_v27 = vld [vmem:[#allocation11 + $0x198] sm:$0xf0] }
  0xb4   : > { %1457 = vmatpush.bf16.msra.mxu3 %v5681_v63  ;;  %v5733_v63 = vor.u32 %v7418_v53, %v5730_v54  ;;  %v7374_v28 = vld [vmem:[#allocation11 + $0x28c] sm:$0xf]  ;;  %v5554_v29 = vld [vmem:[#allocation11 + $0x298] sm:$0xf0]  ;;  %v5429_v33 = vor.u32 %v7342_v25, %v5426_v27  ;;  %v6104_v25 = vld [vmem:[#allocation14 + $0x2e0] sm:$0xf] }
  0xb5   : > { %1419 = vmatpush.bf16.msra.mxu0 %v5281_v8  ;;  %v5333_v8 = vor.u32 %v7318_v60, %v5330_v61  ;;  %v7406_v30 = vld [vmem:[#allocation11 + $0x38c] sm:$0xf]  ;;  %v5682_v31 = vld [vmem:[#allocation11 + $0x398] sm:$0xf0]  ;;  %v5557_v34 = vor.u32 %v7374_v28, %v5554_v29  ;;  %v6232_v29 = vld [vmem:[#allocation14 + $0x3e0] sm:$0xf] }
  0xb6   : > { %1432 = vmatpush.bf16.msra.mxu1 %v5409_v9  ;;  %v5461_v9 = vor.u32 %v7350_v62, %v5458_v0  ;;  %v7338_v37 = vld [vmem:[#allocation11 + $0x16c] sm:$0xf]  ;;  %v5685_v38 = vor.u32 %v7406_v30, %v5682_v31  ;;  %v5410_v39 = vld [vmem:[#allocation11 + $0x178] sm:$0xf0]  ;;  %v7547_v30 = vld [vmem:[#allocation14 + $0x3ec] sm:$0xf0] }
  0xb7   : > { %1445 = vmatpush.bf16.msra.mxu2 %v5537_v10  ;;  %v5589_v10 = vor.u32 %v7382_v1, %v5586_v2  ;;  %v5538_v41 = vld [vmem:[#allocation11 + $0x278] sm:$0xf0]  ;;  %v7402_v42 = vld [vmem:[#allocation11 + $0x36c] sm:$0xf]  ;;  %v5413_v45 = vor.u32 %v7338_v37, %v5410_v39  ;;  %v5960_v37 = vld [vmem:[#allocation14 + $0x1c0] sm:$0xf] }
  0xb8   : > { %1458 = vmatpush.bf16.msra.mxu3 %v5665_v14  ;;  %v5717_v14 = vor.u32 %v7414_v3, %v5714_v4  ;;  %v5666_v43 = vld [vmem:[#allocation11 + $0x378] sm:$0xf0]  ;;  %v7334_v49 = vld [vmem:[#allocation11 + $0x14c] sm:$0xf]  ;;  %v7479_v39 = vld [vmem:[#allocation14 + $0x1cc] sm:$0xf0] }
  0xb9   : > { %1420 = vmatpush.bf16.msra.mxu0 %v5265_v20  ;;  %v5317_v20 = vor.u32 %v7314_v11, %v5314_v12  ;;  %v5266_v48 = vld [vmem:[#allocation11 + $0x58] sm:$0xf0]  ;;  %v5669_v50 = vor.u32 %v7402_v42, %v5666_v43  ;;  %v7398_v54 = vld [vmem:[#allocation11 + $0x34c] sm:$0xf]  ;;  %v6216_v42 = vld [vmem:[#allocation14 + $0x3c0] sm:$0xf] }
  0xba   : > { %1433 = vmatpush.bf16.msra.mxu1 %v5393_v21  ;;  %v5445_v21 = vor.u32 %v7346_v13, %v5442_v15  ;;  %v5522_v53 = vld [vmem:[#allocation11 + $0x258] sm:$0xf0]  ;;  %v7298_v60 = vld [vmem:[#allocation11 + $0x2c] sm:$0xf]  ;;  %v7543_v43 = vld [vmem:[#allocation14 + $0x3cc] sm:$0xf0] }
  0xbb   : > { %1446 = vmatpush.bf16.msra.mxu2 %v5521_v22  ;;  %v5573_v22 = vor.u32 %v7378_v16, %v5570_v17  ;;  %v5250_v61 = vld [vmem:[#allocation11 + $0x38] sm:$0xf0]  ;;  %v7330_v62 = vld [vmem:[#allocation11 + $0x12c] sm:$0xf] }
  0xbc   : > { %1459 = vmatpush.bf16.msra.mxu3 %v5649_v26  ;;  %v5701_v26 = vor.u32 %v7410_v18, %v5698_v19  ;;  %v5378_v0 = vld [vmem:[#allocation11 + $0x138] sm:$0xf0]  ;;  %v7362_v1 = vld [vmem:[#allocation11 + $0x22c] sm:$0xf] }
  0xbd   : > { %1421 = vmatpush.bf16.msra.mxu0 %v5249_v32  ;;  %v5301_v32 = vor.u32 %v7310_v23, %v5298_v24  ;;  %v5506_v2 = vld [vmem:[#allocation11 + $0x238] sm:$0xf0]  ;;  %v7394_v3 = vld [vmem:[#allocation11 + $0x32c] sm:$0xf]  ;;  %v5381_v11 = vor.u32 %v7330_v62, %v5378_v0  ;;  %v7483_v24 = vld [vmem:[#allocation14 + $0x1ec] sm:$0xf0] }
  0xbe   : > { %1434 = vmatpush.bf16.msra.mxu1 %v5377_v35  ;;  %v7306_v35 = vld [vmem:[#allocation11 + $0x6c] sm:$0xf]  ;;  %v5634_v4 = vld [vmem:[#allocation11 + $0x338] sm:$0xf0]  ;;  %v5509_v12 = vor.u32 %v7362_v1, %v5506_v2  ;;  %v6056_v0 = vld [vmem:[#allocation14 + $0x280] sm:$0xf] }
  0xbf   : > { %1447 = vmatpush.bf16.msra.mxu2 %v5505_v36  ;;  %v5282_v36 = vld [vmem:[#allocation11 + $0x78] sm:$0xf0]  ;;  %v7326_v13 = vld [vmem:[#allocation11 + $0x10c] sm:$0xf]  ;;  %v5637_v16 = vor.u32 %v7394_v3, %v5634_v4  ;;  %v6184_v1 = vld [vmem:[#allocation14 + $0x380] sm:$0xf] }
  0xc0   : > { %1460 = vmatpush.bf16.msra.mxu3 %v5633_v40  ;;  %v7370_v40 = vld [vmem:[#allocation11 + $0x26c] sm:$0xf]  ;;  %v5285_v44 = vor.u32 %v7306_v35, %v5282_v36  ;;  %v5490_v17 = vld [vmem:[#allocation11 + $0x218] sm:$0xf0]  ;;  %v5832_v35 = vld [vmem:[#allocation14 + $0xc0] sm:$0xf] }
  0xc1   : > { %1422 = vmatpush.bf16.msra.mxu0 %v5233_v47  ;;  %v5541_v46 = vor.u32 %v7370_v40, %v5538_v41  ;;  %v7302_v47 = vld [vmem:[#allocation11 + $0x4c] sm:$0xf]  ;;  %v5618_v19 = vld [vmem:[#allocation11 + $0x318] sm:$0xf0]  ;;  %v7447_v36 = vld [vmem:[#allocation14 + $0xcc] sm:$0xf0] }
  0xc2   : > { %1435 = vmatpush.bf16.msra.mxu1 %v5361_v51  ;;  %v5394_v51 = vld [vmem:[#allocation11 + $0x158] sm:$0xf0]  ;;  %v7358_v15 = vld [vmem:[#allocation11 + $0x20c] sm:$0xf]  ;;  %v6088_v40 = vld [vmem:[#allocation14 + $0x2c0] sm:$0xf] }
  0xc3   : > { %1448 = vmatpush.bf16.msra.mxu2 %v5489_v52  ;;  %v7366_v52 = vld [vmem:[#allocation11 + $0x24c] sm:$0xf]  ;;  %v5493_v28 = vor.u32 %v7358_v15, %v5490_v17  ;;  %v7511_v41 = vld [vmem:[#allocation14 + $0x2cc] sm:$0xf0]  ;;  %v5784_v4 = vld [vmem:[#allocation14 + $0x60] sm:$0xf] }
  0xc4   : > { %1461 = vmatpush.bf16.msra.mxu3 %v5617_v55  ;;  %1423 = vmatmul.bf16.vlgmr.msra.gmra.mxu0 %v8551_v5  ;;  %v5650_v55 = vld [vmem:[#allocation11 + $0x358] sm:$0xf0]  ;;  %v7390_v18 = vld [vmem:[#allocation11 + $0x30c] sm:$0xf]  ;;  %v7531_v15 = vld [vmem:[#allocation14 + $0x36c] sm:$0xf0] }
  0xc5   : > { %1467 = vmatpush.bf16.msrb.mxu0 %v5349_v56  ;;  %1436 = vmatmul.bf16.vlgmr.msra.gmra.mxu1 %v8555_v7  ;;  %v5269_v56 = vor.u32 %v7302_v47, %v5266_v48  ;;  %v5621_v31 = vor.u32 %v7390_v18, %v5618_v19  ;;  %v5816_v47 = vld [vmem:[#allocation14 + $0xa0] sm:$0xf]  ;;  %v7443_v48 = vld [vmem:[#allocation14 + $0xac] sm:$0xf0] }
  0xc6   : > { %1480 = vmatpush.bf16.msrb.mxu1 %v5477_v58  ;;  %1449 = vmatmul.bf16.vlgmr.msra.gmra.mxu2 %v8545_v57  ;;  %v5397_v58 = vor.u32 %v7334_v49, %v5394_v51  ;;  %v5944_v49 = vld [vmem:[#allocation14 + $0x1a0] sm:$0xf]  ;;  %v7475_v51 = vld [vmem:[#allocation14 + $0x1ac] sm:$0xf0] }
  0xc7   : > { %1493 = vmatpush.bf16.msrb.mxu2 %v5605_v59  ;;  %1462 = vmatmul.bf16.vlgmr.msra.gmra.mxu3 %v8553_v6  ;;  %v5525_v59 = vor.u32 %v7366_v52, %v5522_v53  ;;  %v6072_v52 = vld [vmem:[#allocation14 + $0x2a0] sm:$0xf]  ;;  %v7507_v53 = vld [vmem:[#allocation14 + $0x2ac] sm:$0xf0] }
  0xc8   : > { %1506 = vmatpush.bf16.msrb.mxu3 %v5733_v63  ;;  %v5653_v63 = vor.u32 %v7398_v54, %v5650_v55  ;;  %v6200_v54 = vld [vmem:[#allocation14 + $0x3a0] sm:$0xf]  ;;  %v7539_v55 = vld [vmem:[#allocation14 + $0x3ac] sm:$0xf0] }
  0xc9   : > { %1468 = vmatpush.bf16.msrb.mxu0 %v5333_v8  ;;  %v5253_v8 = vor.u32 %v7298_v60, %v5250_v61  ;;  %v5800_v60 = vld [vmem:[#allocation14 + $0x80] sm:$0xf]  ;;  %v6201_v62 = vor.u32 %v7539_v55, %v6200_v54  ;;  %v7481_v54 = vld [vmem:[#allocation14 + $0x1e4] sm:$0xf] }
  0xca   : > { %1481 = vmatpush.bf16.msrb.mxu1 %v5461_v9  ;;  %v7294_v9 = vld [vmem:[#allocation11 + $0xc] sm:$0xf]  ;;  %v5928_v61 = vld [vmem:[#allocation14 + $0x180] sm:$0xf] }
  0xcb   : > { %1494 = vmatpush.bf16.msrb.mxu2 %v5589_v10  ;;  %v5234_v10 = vld [vmem:[#allocation11 + $0x18] sm:$0xf0]  ;;  %v5768_v19 = vld [vmem:[#allocation14 + $0x40] sm:$0xf] }
  0xcc   : > { %1507 = vmatpush.bf16.msrb.mxu3 %v5717_v14  ;;  %v5362_v14 = vld [vmem:[#allocation11 + $0x118] sm:$0xf0]  ;;  %v5237_v23 = vor.u32 %v7294_v9, %v5234_v10  ;;  %v5912_v9 = vld [vmem:[#allocation14 + $0x160] sm:$0xf] }
  0xcd   : > { %1469 = vmatpush.bf16.msrb.mxu0 %v5317_v20  ;;  %v5848_v20 = vld [vmem:[#allocation14 + $0xe0] sm:$0xf]  ;;  %v5365_v27 = vor.u32 %v7326_v13, %v5362_v14  ;;  %v7499_v13 = vld [vmem:[#allocation14 + $0x26c] sm:$0xf0] }
  0xce   : > { %1482 = vmatpush.bf16.msrb.mxu1 %v5445_v21  ;;  %v7451_v21 = vld [vmem:[#allocation14 + $0xec] sm:$0xf0]  ;;  %v6168_v14 = vld [vmem:[#allocation14 + $0x360] sm:$0xf] }
  0xcf   : > { %1495 = vmatpush.bf16.msrb.mxu2 %v5573_v22  ;;  %v5976_v22 = vld [vmem:[#allocation14 + $0x1e0] sm:$0xf] }
  0xd0   : > { %1508 = vmatpush.bf16.msrb.mxu3 %v5701_v26  ;;  %v7515_v26 = vld [vmem:[#allocation14 + $0x2ec] sm:$0xf0] }
  0xd1   : > { %1470 = vmatpush.bf16.msrb.mxu0 %v5301_v32  ;;  %v5849_v32 = vor.u32 %v7451_v21, %v5848_v20  ;;  %v7431_v20 = vld [vmem:[#allocation14 + $0x4c] sm:$0xf0]  ;;  %v5896_v21 = vld [vmem:[#allocation14 + $0x140] sm:$0xf] }
  0xd2   : > { %1483 = vmatpush.bf16.msrb.mxu1 %v5429_v33  ;;  %v5977_v33 = vor.u32 %v7483_v24, %v5976_v22  ;;  %v6169_v22 = vor.u32 %v7531_v15, %v6168_v14  ;;  %v6024_v24 = vld [vmem:[#allocation14 + $0x240] sm:$0xf]  ;;  %v7541_v15 = vld [vmem:[#allocation14 + $0x3c4] sm:$0xf] }
  0xd3   : > { %1496 = vmatpush.bf16.msrb.mxu2 %v5557_v34  ;;  %v6105_v34 = vor.u32 %v7515_v26, %v6104_v25  ;;  %v7495_v25 = vld [vmem:[#allocation14 + $0x24c] sm:$0xf0]  ;;  %v6152_v26 = vld [vmem:[#allocation14 + $0x340] sm:$0xf] }
  0xd4   : > { %1509 = vmatpush.bf16.msrb.mxu3 %v5685_v38  ;;  %v6233_v38 = vor.u32 %v7547_v30, %v6232_v29  ;;  %v6025_v30 = vor.u32 %v7495_v25, %v6024_v24  ;;  %v5818_v24 = vld [vmem:[#allocation14 + $0xb0] sm:$0xf0]  ;;  %v7473_v25 = vld [vmem:[#allocation14 + $0x1a4] sm:$0xf] }
  0xd5   : > { %1471 = vmatpush.bf16.msrb.mxu0 %v5285_v44  ;;  %v5833_v44 = vor.u32 %v7447_v36, %v5832_v35  ;;  %v7459_v35 = vld [vmem:[#allocation14 + $0x12c] sm:$0xf0]  ;;  %v6008_v36 = vld [vmem:[#allocation14 + $0x220] sm:$0xf] }
  0xd6   : > { %1484 = vmatpush.bf16.msrb.mxu1 %v5413_v45  ;;  %v5961_v45 = vor.u32 %v7479_v39, %v5960_v37  ;;  %v7491_v37 = vld [vmem:[#allocation14 + $0x22c] sm:$0xf0] }
  0xd7   : > { %1497 = vmatpush.bf16.msrb.mxu2 %v5541_v46  ;;  %v6089_v46 = vor.u32 %v7511_v41, %v6088_v40  ;;  %v7523_v39 = vld [vmem:[#allocation14 + $0x32c] sm:$0xf0]  ;;  %v5736_v41 = vld [vmem:[#allocation14] sm:$0xf] }
  0xd8   : > { %1510 = vmatpush.bf16.msrb.mxu3 %v5669_v50  ;;  %v6217_v50 = vor.u32 %v7543_v43, %v6216_v42  ;;  %v7423_v42 = vld [vmem:[#allocation14 + $0xc] sm:$0xf0] }
  0xd9   : > { %1472 = vmatpush.bf16.msrb.mxu0 %v5269_v56  ;;  %v5817_v56 = vor.u32 %v7443_v48, %v5816_v47  ;;  %v5992_v47 = vld [vmem:[#allocation14 + $0x200] sm:$0xf]  ;;  %v5737_v55 = vor.u32 %v7423_v42, %v5736_v41  ;;  %v6058_v41 = vld [vmem:[#allocation14 + $0x290] sm:$0xf0]  ;;  %v7533_v42 = vld [vmem:[#allocation14 + $0x384] sm:$0xf] }
  0xda   : > { %1485 = vmatpush.bf16.msrb.mxu1 %v5397_v58  ;;  %v5945_v58 = vor.u32 %v7475_v51, %v5944_v49  ;;  %v7487_v49 = vld [vmem:[#allocation14 + $0x20c] sm:$0xf0] }
  0xdb   : > { %1498 = vmatpush.bf16.msrb.mxu2 %v5525_v59  ;;  %v6073_v59 = vor.u32 %v7507_v53, %v6072_v52  ;;  %v7519_v51 = vld [vmem:[#allocation14 + $0x30c] sm:$0xf0]  ;;  %v7449_v52 = vld [vmem:[#allocation14 + $0xe4] sm:$0xf]  ;;  %v5850_v53 = vld [vmem:[#allocation14 + $0xf0] sm:$0xf0] }
  0xdc   : > { %1511 = vmatpush.bf16.msrb.mxu3 %v5653_v63  ;;  %v7471_v63 = vld [vmem:[#allocation14 + $0x18c] sm:$0xf0] }
  0xdd   : > { %1473 = vmatpush.bf16.msrb.mxu0 %v5253_v8  ;;  %v7435_v8 = vld [vmem:[#allocation14 + $0x6c] sm:$0xf0] }
  0xde   : > { %1486 = vmatpush.bf16.msrb.mxu1 %v5381_v11  ;;  %v7467_v11 = vld [vmem:[#allocation14 + $0x16c] sm:$0xf0] }
  0xdf   : > { %1499 = vmatpush.bf16.msrb.mxu2 %v5509_v12  ;;  %v6040_v12 = vld [vmem:[#allocation14 + $0x260] sm:$0xf]  ;;  %v5913_v17 = vor.u32 %v7467_v11, %v5912_v9  ;;  %v526_v9 = vld [vmem:[%s8522_s21 + $0x8] sm:$0xff]  ;;  %v5962_v11 = vld [vmem:[#allocation14 + $0x1d0] sm:$0xf0] }
  0xe0   : > { %1512 = vmatpush.bf16.msrb.mxu3 %v5637_v16  ;;  %v5785_v16 = vor.u32 %v7435_v8, %v5784_v4  ;;  %v6041_v18 = vor.u32 %v7499_v13, %v6040_v12  ;;  %v5834_v4 = vld [vmem:[#allocation14 + $0xd0] sm:$0xf0]  ;;  %v7477_v8 = vld [vmem:[#allocation14 + $0x1c4] sm:$0xf] }
  0xe1   : > { %1474 = vmatpush.bf16.msrb.mxu0 %v5237_v23  ;;  %v7463_v23 = vld [vmem:[#allocation14 + $0x14c] sm:$0xf0]  ;;  %v7509_v12 = vld [vmem:[#allocation14 + $0x2c4] sm:$0xf]  ;;  %v6090_v13 = vld [vmem:[#allocation14 + $0x2d0] sm:$0xf0] }
  0xe2   : > { %1487 = vmatpush.bf16.msrb.mxu1 %v5365_v27  ;;  %v7527_v27 = vld [vmem:[#allocation14 + $0x34c] sm:$0xf0]  ;;  %v5897_v29 = vor.u32 %v7463_v23, %v5896_v21  ;;  %v5965_v21 = vor.u32 %v7477_v8, %v5962_v11  ;;  %v7441_v23 = vld [vmem:[#allocation14 + $0xa4] sm:$0xf]  ;;  %v5754_v11 = vld [vmem:[#allocation14 + $0x30] sm:$0xf0] }
  0xe3   : > { %1500 = vmatpush.bf16.msrb.mxu2 %v5493_v28  ;;  %v5769_v28 = vor.u32 %v7431_v20, %v5768_v19  ;;  %v8582_v20 = vpack.c.bf16 %v526_v9, %v526_v9 }
  0xe4   : > { %1513 = vmatpush.bf16.msrb.mxu3 %v5621_v31  ;;  %1475 = vmatmul.bf16.vlgmr.msrb.gmra.mxu0 %v8551_v5  ;;  %v7503_v5 = vld [vmem:[#allocation14 + $0x28c] sm:$0xf0]  ;;  %v5752_v31 = vld [vmem:[#allocation14 + $0x20] sm:$0xf] }
  0xe5   : > { %2301 = vmatpush.bf16.msra.mxu0 %v5849_v32  ;;  %1488 = vmatmul.bf16.vlgmr.msrb.gmra.mxu1 %v8555_v7  ;;  %v5929_v7 = vor.u32 %v7471_v63, %v5928_v61  ;;  %v6057_v3 = vor.u32 %v7503_v5, %v6056_v0  ;;  %v7427_v32 = vld [vmem:[#allocation14 + $0x2c] sm:$0xf0]  ;;  %v7545_v61 = vld [vmem:[#allocation14 + $0x3e4] sm:$0xf]  ;;  %v5853_v5 = vor.u32 %v7449_v52, %v5850_v53  ;;  %v6042_v53 = vld [vmem:[#allocation14 + $0x270] sm:$0xf0] }
  0xe6   : > { %2314 = vmatpush.bf16.msra.mxu1 %v5977_v33  ;;  %1501 = vmatmul.bf16.vlgmr.msrb.gmra.mxu2 %v8545_v57  ;;  %v7439_v57 = vld [vmem:[#allocation14 + $0x8c] sm:$0xf0]  ;;  %v5880_v33 = vld [vmem:[#allocation14 + $0x120] sm:$0xf]  ;;  %v5753_v40 = vor.u32 %v7427_v32, %v5752_v31  ;;  %v6202_v31 = vld [vmem:[#allocation14 + $0x3b0] sm:$0xf0]  ;;  %v5821_v32 = vor.u32 %v7441_v23, %v5818_v24 }
  0xe7   : > { %2327 = vmatpush.bf16.msra.mxu2 %v6105_v34  ;;  %1514 = vmatmul.bf16.vlgmr.msrb.gmra.mxu3 %v8553_v6  ;;  %v7535_v6 = vld [vmem:[#allocation14 + $0x38c] sm:$0xf0]  ;;  %v5801_v2 = vor.u32 %v7439_v57, %v5800_v60  ;;  %v6153_v34 = vor.u32 %v7527_v27, %v6152_v26  ;;  %v5881_v43 = vor.u32 %v7459_v35, %v5880_v33  ;;  %v5946_v27 = vld [vmem:[#allocation14 + $0x1b0] sm:$0xf0]  ;;  %v7437_v35 = vld [vmem:[#allocation14 + $0x84] sm:$0xf] }
  0xe8   : > { %2340 = vmatpush.bf16.msra.mxu3 %v6233_v38  ;;  %v6185_v10 = vor.u32 %v7535_v6, %v6184_v1  ;;  %v6136_v38 = vld [vmem:[#allocation14 + $0x320] sm:$0xf]  ;;  %v5993_v57 = vor.u32 %v7487_v49, %v5992_v47  ;;  %v527_v63 = vld [vmem:[%s8522_s21 + $0x10] sm:$0xff]  ;;  %v7445_v1 = vld [vmem:[#allocation14 + $0xc4] sm:$0xf]  ;;  %v5949_v33 = vor.u32 %v7473_v25, %v5946_v27 }
  0xe9   : > { %2302 = vmatpush.bf16.msra.mxu0 %v5833_v44  ;;  %v6009_v44 = vor.u32 %v7491_v37, %v6008_v36  ;;  %v6137_v48 = vor.u32 %v7523_v39, %v6136_v38  ;;  %v525_v6 = vld [vmem:[%s8522_s21] sm:$0xff]  ;;  %v8576_v14 = vpack.c.bf16 %v527_v63, %v527_v63  ;;  %v5837_v19 = vor.u32 %v7445_v1, %v5834_v4  ;;  %v5802_v36 = vld [vmem:[#allocation14 + $0x90] sm:$0xf0]  ;;  %v7469_v37 = vld [vmem:[#allocation14 + $0x184] sm:$0xf] }
  0xea   : > { %2315 = vmatpush.bf16.msra.mxu1 %v5961_v45  ;;  %v5864_v45 = vld [vmem:[#allocation14 + $0x100] sm:$0xf]  ;;  %v5930_v39 = vld [vmem:[#allocation14 + $0x190] sm:$0xf0]  ;;  %v7433_v47 = vld [vmem:[#allocation14 + $0x64] sm:$0xf] }
  0xeb   : > { %2328 = vmatpush.bf16.msra.mxu2 %v6089_v46  ;;  %v7455_v46 = vld [vmem:[#allocation14 + $0x10c] sm:$0xf0]  ;;  %v7465_v49 = vld [vmem:[#allocation14 + $0x164] sm:$0xf]  ;;  %v5898_v1 = vld [vmem:[#allocation14 + $0x150] sm:$0xf0] }
  0xec   : > { %2341 = vmatpush.bf16.msra.mxu3 %v6217_v50  ;;  %v6120_v50 = vld [vmem:[#allocation14 + $0x300] sm:$0xf]  ;;  %v5865_v60 = vor.u32 %v7455_v46, %v5864_v45  ;;  %v5933_v45 = vor.u32 %v7469_v37, %v5930_v39  ;;  %v7497_v52 = vld [vmem:[#allocation14 + $0x264] sm:$0xf]  ;;  %v6138_v23 = vld [vmem:[#allocation14 + $0x330] sm:$0xf0] }
  0xed   : > { %2303 = vmatpush.bf16.msra.mxu0 %v5817_v56  ;;  %v5978_v56 = vld [vmem:[#allocation14 + $0x1f0] sm:$0xf0]  ;;  %v6121_v0 = vor.u32 %v7519_v51, %v6120_v50  ;;  %v7461_v63 = vld [vmem:[#allocation14 + $0x144] sm:$0xf]  ;;  %v5856_v39 = vld [vmem:[#allocation14 + $0xe8] sm:$0xf] }
  0xee   : > { %2316 = vmatpush.bf16.msra.mxu1 %v5945_v58  ;;  %v7513_v58 = vld [vmem:[#allocation14 + $0x2e4] sm:$0xf]  ;;  %v5914_v51 = vld [vmem:[#allocation14 + $0x170] sm:$0xf0]  ;;  %v5901_v8 = vor.u32 %v7461_v63, %v5898_v1  ;;  %v6096_v63 = vld [vmem:[#allocation14 + $0x2c8] sm:$0xf] }
  0xef   : > { %2329 = vmatpush.bf16.msra.mxu2 %v6073_v59  ;;  %v6106_v59 = vld [vmem:[#allocation14 + $0x2f0] sm:$0xf0]  ;;  %v7517_v37 = vld [vmem:[#allocation14 + $0x304] sm:$0xf]  ;;  %v6224_v1 = vld [vmem:[#allocation14 + $0x3c8] sm:$0xf] }
  0xf0   : > { %2342 = vmatpush.bf16.msra.mxu3 %v6201_v62  ;;  %v6234_v62 = vld [vmem:[#allocation14 + $0x3f0] sm:$0xf0] }
  0xf1   : > { %2304 = vmatpush.bf16.msra.mxu0 %v5801_v2  ;;  %v528_v2 = vld [vmem:[%s8522_s21 + $0x18] sm:$0xff] }
  0xf2   : > { %2317 = vmatpush.bf16.msra.mxu1 %v5929_v7  ;;  %v5981_v7 = vor.u32 %v7481_v54, %v5978_v56  ;;  %v7529_v54 = vld [vmem:[#allocation14 + $0x364] sm:$0xf]  ;;  %v5738_v27 = vld [vmem:[#allocation14 + $0x10] sm:$0xf0] }
  0xf3   : > { %2330 = vmatpush.bf16.msra.mxu2 %v6057_v3  ;;  %v6109_v3 = vor.u32 %v7513_v58, %v6106_v59 }
  0xf4   : > { %2343 = vmatpush.bf16.msra.mxu3 %v6185_v10  ;;  %v6237_v10 = vor.u32 %v7545_v61, %v6234_v62  ;;  %v7429_v61 = vld [vmem:[#allocation14 + $0x44] sm:$0xf]  ;;  %v5770_v62 = vld [vmem:[#allocation14 + $0x50] sm:$0xf0] }
  0xf5   : > { %2305 = vmatpush.bf16.msra.mxu0 %v5785_v16  ;;  %v6218_v16 = vld [vmem:[#allocation14 + $0x3d0] sm:$0xf0]  ;;  %v5773_v4 = vor.u32 %v7429_v61, %v5770_v62  ;;  %v7480_v62 = vld [vmem:[#allocation14 + $0x1d4] sm:$0xf0] }
  0xf6   : > { %2318 = vmatpush.bf16.msra.mxu1 %v5913_v17  ;;  %v8578_v17 = vpack.c.bf16 %v525_v6, %v525_v6  ;;  %v6221_v26 = vor.u32 %v7541_v15, %v6218_v16  ;;  %v7493_v6 = vld [vmem:[#allocation14 + $0x244] sm:$0xf]  ;;  %v5882_v15 = vld [vmem:[#allocation14 + $0x130] sm:$0xf0] }
  0xf7   : > { %2331 = vmatpush.bf16.msra.mxu2 %v6041_v18  ;;  %v8580_v18 = vpack.c.bf16 %v528_v2, %v528_v2  ;;  %v6026_v2 = vld [vmem:[#allocation14 + $0x250] sm:$0xf0]  ;;  %v7489_v16 = vld [vmem:[#allocation14 + $0x224] sm:$0xf] }
  0xf8   : > { %2344 = vmatpush.bf16.msra.mxu3 %v6169_v22  ;;  %v6093_v22 = vor.u32 %v7509_v12, %v6090_v13  ;;  %v6029_v9 = vor.u32 %v7493_v6, %v6026_v2  ;;  %v7457_v12 = vld [vmem:[#allocation14 + $0x124] sm:$0xf]  ;;  %v7544_v6 = vld [vmem:[#allocation14 + $0x3d4] sm:$0xf0] }
  0xf9   : > { %2306 = vmatpush.bf16.msra.mxu0 %v5769_v28  ;;  %v7505_v28 = vld [vmem:[#allocation14 + $0x2a4] sm:$0xf] }
  0xfa   : > { %2319 = vmatpush.bf16.msra.mxu1 %v5897_v29  ;;  %v6074_v29 = vld [vmem:[#allocation14 + $0x2b0] sm:$0xf0] }
  0xfb   : > { %2332 = vmatpush.bf16.msra.mxu2 %v6025_v30  ;;  %v7537_v30 = vld [vmem:[#allocation14 + $0x3a4] sm:$0xf] }
  0xfc   : > { %2345 = vmatpush.bf16.msra.mxu3 %v6153_v34  ;;  %v6077_v34 = vor.u32 %v7505_v28, %v6074_v29  ;;  %v6205_v38 = vor.u32 %v7537_v30, %v6202_v31  ;;  %v5885_v29 = vor.u32 %v7457_v12, %v5882_v15  ;;  %v7453_v31 = vld [vmem:[#allocation14 + $0x104] sm:$0xf]  ;;  %v7476_v12 = vld [vmem:[#allocation14 + $0x1b4] sm:$0xf0] }
  0xfd   : > { %2307 = vmatpush.bf16.msra.mxu0 %v5753_v40  ;;  %v7501_v40 = vld [vmem:[#allocation14 + $0x284] sm:$0xf]  ;;  %v7508_v15 = vld [vmem:[#allocation14 + $0x2b4] sm:$0xf0] }
  0xfe   : > { %2320 = vmatpush.bf16.msra.mxu1 %v5881_v43  ;;  %v6186_v43 = vld [vmem:[#allocation14 + $0x390] sm:$0xf0]  ;;  %v6061_v46 = vor.u32 %v7501_v40, %v6058_v41  ;;  %v7452_v40 = vld [vmem:[#allocation14 + $0xf4] sm:$0xf0]  ;;  %v5984_v41 = vld [vmem:[#allocation14 + $0x1e8] sm:$0xf] }
  0xff   : > { %2333 = vmatpush.bf16.msra.mxu2 %v6009_v44  ;;  %v5805_v44 = vor.u32 %v7437_v35, %v5802_v36  ;;  %v6189_v50 = vor.u32 %v7533_v42, %v6186_v43  ;;  %v5994_v36 = vld [vmem:[#allocation14 + $0x210] sm:$0xf0]  ;;  %v7484_v43 = vld [vmem:[#allocation14 + $0x1f4] sm:$0xf0] }
 0x100   : > { %2346 = vmatpush.bf16.msra.mxu3 %v6137_v48  ;;  %v5786_v48 = vld [vmem:[#allocation14 + $0x70] sm:$0xf0] }
 0x101   : > { %2308 = vmatpush.bf16.msra.mxu0 %v5737_v55  ;;  %v6170_v55 = vld [vmem:[#allocation14 + $0x370] sm:$0xf0]  ;;  %v5789_v58 = vor.u32 %v7433_v47, %v5786_v48  ;;  %v6240_v48 = vld [vmem:[#allocation14 + $0x3e8] sm:$0xf] }
 0x102   : > { %2321 = vmatpush.bf16.msra.mxu1 %v5865_v60  ;;  %v5917_v60 = vor.u32 %v7465_v49, %v5914_v51  ;;  %v7548_v49 = vld [vmem:[#allocation14 + $0x3f4] sm:$0xf0] }
 0x103   : > { %2334 = vmatpush.bf16.msra.mxu2 %v5993_v57  ;;  %v6045_v57 = vor.u32 %v7497_v52, %v6042_v53  ;;  %v5857_v52 = vor.u32 %v7452_v40, %v5856_v39  ;;  %v6241_v61 = vor.u32 %v7548_v49, %v6240_v48  ;;  %v7500_v48 = vld [vmem:[#allocation14 + $0x274] sm:$0xf0] }
 0x104   : > { %2347 = vmatpush.bf16.msra.mxu3 %v6121_v0  ;;  %2309 = vmatmul.bf16.vlgmr.msra.gmra.mxu0 %v8578_v17  ;;  %v8588_v56 = vpop.f32.mrf.mxu0 }
 0x105   : > { %2353 = vmatpush.bf16.msrb.mxu0 %v5853_v5  ;;  %2322 = vmatmul.bf16.vlgmr.msra.gmra.mxu1 %v8582_v20  ;;  %v8590_v59 = vpop.f32.mrf.mxu1  ;;  %v6173_v5 = vor.u32 %v7529_v54, %v6170_v55  ;;  %v5985_v54 = vor.u32 %v7484_v43, %v5984_v41  ;;  %v7436_v43 = vld [vmem:[#allocation14 + $0x74] sm:$0xf0] }
 0x106   : > { %2366 = vmatpush.bf16.msrb.mxu1 %v5981_v7  ;;  %2335 = vmatmul.bf16.vlgmr.msra.gmra.mxu2 %v8576_v14  ;;  %v7525_v7 = vld [vmem:[#allocation14 + $0x344] sm:$0xf] }
 0x107   : > { %2379 = vmatpush.bf16.msrb.mxu2 %v6109_v3  ;;  %2348 = vmatmul.bf16.vlgmr.msra.gmra.mxu3 %v8580_v18  ;;  %v6154_v3 = vld [vmem:[#allocation14 + $0x350] sm:$0xf0] }
 0x108   : > { %2392 = vmatpush.bf16.msrb.mxu3 %v6237_v10  ;;  %v7425_v10 = vld [vmem:[#allocation14 + $0x24] sm:$0xf]  ;;  %v6157_v13 = vor.u32 %v7525_v7, %v6154_v3 }
 0x109   : > { %2354 = vmatpush.bf16.msrb.mxu0 %v5837_v19  ;;  %v8592_v0 = vpop.f32.mrf.mxu2  ;;  %v6010_v19 = vld [vmem:[#allocation14 + $0x230] sm:$0xf0]  ;;  %v5757_v25 = vor.u32 %v7425_v10, %v5754_v11  ;;  %v5952_v10 = vld [vmem:[#allocation14 + $0x1a8] sm:$0xf]  ;;  %v6225_v11 = vor.u32 %v7544_v6, %v6224_v1  ;;  %v7464_v1 = vld [vmem:[#allocation14 + $0x154] sm:$0xf0] }
 0x10a   : > { %2367 = vmatpush.bf16.msrb.mxu1 %v5965_v21  ;;  %v6013_v30 = vor.u32 %v7489_v16, %v6010_v19  ;;  %v6208_v16 = vld [vmem:[#allocation14 + $0x3a8] sm:$0xf]  ;;  %v7540_v19 = vld [vmem:[#allocation14 + $0x3b4] sm:$0xf0] }
 0x10b   : > { %2380 = vmatpush.bf16.msrb.mxu2 %v6093_v22  ;;  %v7521_v22 = vld [vmem:[#allocation14 + $0x324] sm:$0xf]  ;;  %v6032_v6 = vld [vmem:[#allocation14 + $0x248] sm:$0xf] }
 0x10c   : > { %2393 = vmatpush.bf16.msrb.mxu3 %v6221_v26  ;;  %v8594_v21 = vpop.f32.mrf.mxu3  ;;  %v1322_v24 = vpop.f32.mrf.mxu0  ;;  %v7421_v26 = vld [vmem:[#allocation14 + $0x4] sm:$0xf]  ;;  %v6141_v35 = vor.u32 %v7521_v22, %v6138_v23 }
 0x10d   : > { %2355 = vmatpush.bf16.msrb.mxu0 %v5821_v32  ;;  %v1335_v28 = vpop.f32.mrf.mxu1  ;;  %v5866_v32 = vld [vmem:[#allocation14 + $0x110] sm:$0xf0]  ;;  %v5741_v42 = vor.u32 %v7421_v26, %v5738_v27  ;;  %v5808_v24 = vld [vmem:[#allocation14 + $0x88] sm:$0xf]  ;;  %v7440_v27 = vld [vmem:[#allocation14 + $0x94] sm:$0xf0] }
 0x10e   : > { %2368 = vmatpush.bf16.msrb.mxu1 %v5949_v33  ;;  %v7485_v33 = vld [vmem:[#allocation14 + $0x204] sm:$0xf]  ;;  %v5936_v28 = vld [vmem:[#allocation14 + $0x188] sm:$0xf] }
 0x10f   : > { %2381 = vmatpush.bf16.msrb.mxu2 %v6077_v34  ;;  %v5997_v47 = vor.u32 %v7485_v33, %v5994_v36  ;;  %v7504_v33 = vld [vmem:[#allocation14 + $0x294] sm:$0xf0]  ;;  %v5809_v36 = vor.u32 %v7440_v27, %v5808_v24  ;;  %v6016_v24 = vld [vmem:[#allocation14 + $0x228] sm:$0xf] }
 0x110   : > { %2394 = vmatpush.bf16.msrb.mxu3 %v6205_v38  ;;  %v6122_v38 = vld [vmem:[#allocation14 + $0x310] sm:$0xf0] }
 0x111   : > { %2356 = vmatpush.bf16.msrb.mxu0 %v5805_v44  ;;  %v1348_v34 = vpop.f32.mrf.mxu2  ;;  %v6112_v44 = vld [vmem:[#allocation14 + $0x2e8] sm:$0xf]  ;;  %v6125_v51 = vor.u32 %v7517_v37, %v6122_v38 }
 0x112   : > { %2369 = vmatpush.bf16.msrb.mxu1 %v5933_v45  ;;  %v7516_v45 = vld [vmem:[#allocation14 + $0x2f4] sm:$0xf0]  ;;  %v6192_v34 = vld [vmem:[#allocation14 + $0x388] sm:$0xf] }
 0x113   : > { %2382 = vmatpush.bf16.msrb.mxu2 %v6061_v46  ;;  %v5869_v46 = vor.u32 %v7453_v31, %v5866_v32  ;;  %v6113_v55 = vor.u32 %v7516_v45, %v6112_v44  ;;  %v7472_v31 = vld [vmem:[#allocation14 + $0x194] sm:$0xf0]  ;;  %v6064_v32 = vld [vmem:[#allocation14 + $0x288] sm:$0xf] }
 0x114   : > { %2395 = vmatpush.bf16.msrb.mxu3 %v6189_v50  ;;  %v8596_v50 = vld [vmem:[#allocation12] sm:$0xf]  ;;  %v1361_v53 = vpop.f32.mrf.mxu3  ;;  %v5937_v38 = vor.u32 %v7472_v31, %v5936_v28  ;;  %v6065_v39 = vor.u32 %v7504_v33, %v6064_v32  ;;  %v5920_v44 = vld [vmem:[#allocation14 + $0x168] sm:$0xf]  ;;  %v7456_v33 = vld [vmem:[#allocation14 + $0x114] sm:$0xf0] }
 0x115   : > { %2357 = vmatpush.bf16.msrb.mxu0 %v5789_v58  ;;  %v5840_v58 = vld [vmem:[#allocation14 + $0xc8] sm:$0xf]  ;;  %v663_v2 = vperm.slane %v8596_v50, 0 }
 0x116   : > { %2370 = vmatpush.bf16.msrb.mxu1 %v5917_v60  ;;  %v7448_v60 = vld [vmem:[#allocation14 + $0xd4] sm:$0xf0]  ;;  %v5744_v28 = vld [vmem:[#allocation14 + $0x8] sm:$0xf] }
 0x117   : > { %2383 = vmatpush.bf16.msrb.mxu2 %v6045_v57  ;;  %v5968_v57 = vld [vmem:[#allocation14 + $0x1c8] sm:$0xf]  ;;  %v5841_v7 = vor.u32 %v7448_v60, %v5840_v58  ;;  %v1321_v22 = vadd.f32 %v8588_v56, %v663_v2  ;;  %v7536_v56 = vld [vmem:[#allocation14 + $0x394] sm:$0xf0] }
 0x118   : > { %2396 = vmatpush.bf16.msrb.mxu3 %v6173_v5  ;;  %v7512_v5 = vld [vmem:[#allocation14 + $0x2d4] sm:$0xf0]  ;;  %v5969_v3 = vor.u32 %v7480_v62, %v5968_v57  ;;  %v6193_v45 = vor.u32 %v7536_v56, %v6192_v34  ;;  %v5776_v60 = vld [vmem:[#allocation14 + $0x48] sm:$0xf] }
 0x119   : > { %2358 = vmatpush.bf16.msrb.mxu0 %v5773_v4  ;;  %v6097_v4 = vor.u32 %v7512_v5, %v6096_v63  ;;  %v7432_v57 = vld [vmem:[#allocation14 + $0x54] sm:$0xf0]  ;;  %v5872_v32 = vld [vmem:[#allocation14 + $0x108] sm:$0xf] }
 0x11a   : > { %2371 = vmatpush.bf16.msrb.mxu1 %v5901_v8  ;;  %v5824_v8 = vld [vmem:[#allocation14 + $0xa8] sm:$0xf]  ;;  %v7496_v2 = vld [vmem:[#allocation14 + $0x254] sm:$0xf0] }
 0x11b   : > { %2384 = vmatpush.bf16.msrb.mxu2 %v6029_v9  ;;  %v7444_v9 = vld [vmem:[#allocation14 + $0xb4] sm:$0xf0]  ;;  %v6000_v34 = vld [vmem:[#allocation14 + $0x208] sm:$0xf] }
 0x11c   : > { %2397 = vmatpush.bf16.msrb.mxu3 %v6157_v13  ;;  %v6080_v13 = vld [vmem:[#allocation14 + $0x2a8] sm:$0xf]  ;;  %v5825_v23 = vor.u32 %v7444_v9, %v5824_v8  ;;  %v5777_v8 = vor.u32 %v7432_v57, %v5776_v60  ;;  %v7478_v60 = vld [vmem:[#allocation14 + $0x1cc] sm:$0xf] }
 0x11d   : > { %2359 = vmatpush.bf16.msrb.mxu0 %v5757_v25  ;;  %v5953_v25 = vor.u32 %v7476_v12, %v5952_v10  ;;  %v6081_v26 = vor.u32 %v7508_v15, %v6080_v13  ;;  %v5760_v12 = vld [vmem:[#allocation14 + $0x28] sm:$0xf]  ;;  %v7428_v13 = vld [vmem:[#allocation14 + $0x34] sm:$0xf0] }
 0x11e   : > { %2372 = vmatpush.bf16.msrb.mxu1 %v5885_v29  ;;  %v664_v29 = vperm.slane %v8596_v50, 1  ;;  %v5888_v15 = vld [vmem:[#allocation14 + $0x128] sm:$0xf]  ;;  %v5761_v27 = vor.u32 %v7428_v13, %v5760_v12  ;;  %v7538_v12 = vld [vmem:[#allocation14 + $0x3ac] sm:$0xf] }
 0x11f   : > { %2385 = vmatpush.bf16.msrb.mxu2 %v6013_v30  ;;  %v6209_v30 = vor.u32 %v7540_v19, %v6208_v16  ;;  %v6210_v13 = vld [vmem:[#allocation14 + $0x3b8] sm:$0xf0] }
 0x120   : > { %2398 = vmatpush.bf16.msrb.mxu3 %v6141_v35  ;;  %v1334_v35 = vadd.f32 %v8590_v59, %v1321_v22  ;;  %v7532_v59 = vld [vmem:[#allocation14 + $0x374] sm:$0xf0] }
 0x121   : > { %2360 = vmatpush.bf16.msrb.mxu0 %v5741_v42  ;;  %v1372_v37 = vpop.f32.mrf.mxu0  ;;  %v5792_v42 = vld [vmem:[#allocation14 + $0x68] sm:$0xf] }
 0x122   : > { %2373 = vmatpush.bf16.msrb.mxu1 %v5869_v46  ;;  %v1373_v40 = vadd.f32 %v1372_v37, %v664_v29  ;;  %v1385_v41 = vpop.f32.mrf.mxu1  ;;  %v7468_v46 = vld [vmem:[#allocation14 + $0x174] sm:$0xf0]  ;;  %v5793_v53 = vor.u32 %v7436_v43, %v5792_v42  ;;  %v6128_v37 = vld [vmem:[#allocation14 + $0x308] sm:$0xf]  ;;  %v7482_v42 = vld [vmem:[#allocation14 + $0x1ec] sm:$0xf] }
 0x123   : > { %2386 = vmatpush.bf16.msrb.mxu2 %v5997_v47  ;;  %v6048_v47 = vld [vmem:[#allocation14 + $0x268] sm:$0xf]  ;;  %v7424_v29 = vld [vmem:[#allocation14 + $0x14] sm:$0xf0] }
 0x124   : > { %2399 = vmatpush.bf16.msrb.mxu3 %v6125_v51  ;;  %2361 = vmatmul.bf16.vlgmr.msrb.gmra.mxu0 %v8578_v17  ;;  %v1386_v49 = vadd.f32 %v1385_v41, %v1373_v40  ;;  %v6176_v51 = vld [vmem:[#allocation14 + $0x368] sm:$0xf]  ;;  %v7450_v40 = vld [vmem:[#allocation14 + $0xec] sm:$0xf]  ;;  %v5858_v41 = vld [vmem:[#allocation14 + $0xf8] sm:$0xf0]  ;;  %v5745_v43 = vor.u32 %v7424_v29, %v5744_v28 }
 0x125   : > { %2405 = vmatpush.bf16.msra.mxu0 %v5857_v52  ;;  %2374 = vmatmul.bf16.vlgmr.msrb.gmra.mxu1 %v8582_v20  ;;  %v1347_v52 = vadd.f32 %v8592_v0, %v1334_v35  ;;  %v6177_v62 = vor.u32 %v7532_v59, %v6176_v51  ;;  %v6242_v51 = vld [vmem:[#allocation14 + $0x3f8] sm:$0xf0]  ;;  %v7534_v28 = vld [vmem:[#allocation14 + $0x38c] sm:$0xf] }
 0x126   : > { %2418 = vmatpush.bf16.msra.mxu1 %v5985_v54  ;;  %2387 = vmatmul.bf16.vlgmr.msrb.gmra.mxu2 %v8576_v14  ;;  %v5921_v54 = vor.u32 %v7468_v46, %v5920_v44  ;;  %v5986_v44 = vld [vmem:[#allocation14 + $0x1f8] sm:$0xf0] }
 0x127   : > { %2431 = vmatpush.bf16.msra.mxu2 %v6113_v55  ;;  %2400 = vmatmul.bf16.vlgmr.msrb.gmra.mxu3 %v8580_v18  ;;  %v6049_v55 = vor.u32 %v7500_v48, %v6048_v47  ;;  %v1360_v0 = vadd.f32 %v8594_v21, %v1347_v52  ;;  %v7524_v21 = vld [vmem:[#allocation14 + $0x334] sm:$0xf0]  ;;  %v6114_v46 = vld [vmem:[#allocation14 + $0x2f8] sm:$0xf0]  ;;  %v5873_v47 = vor.u32 %v7456_v33, %v5872_v32 }
 0x128   : > { %2444 = vmatpush.bf16.msra.mxu3 %v6241_v61  ;;  %v5904_v61 = vld [vmem:[#allocation14 + $0x148] sm:$0xf]  ;;  %v5861_v52 = vor.u32 %v7450_v40, %v5858_v41  ;;  %v6194_v29 = vld [vmem:[#allocation14 + $0x398] sm:$0xf0]  ;;  %v7530_v41 = vld [vmem:[#allocation14 + $0x36c] sm:$0xf] }
 0x129   : > { %2406 = vmatpush.bf16.msra.mxu0 %v5841_v7  ;;  %v1398_v58 = vpop.f32.mrf.mxu2  ;;  %v6160_v7 = vld [vmem:[#allocation14 + $0x348] sm:$0xf]  ;;  %v1374_v9 = vpop.f32.mrf.mxu0  ;;  %v5905_v10 = vor.u32 %v7464_v1, %v5904_v61  ;;  %v5970_v61 = vld [vmem:[#allocation14 + $0x1d8] sm:$0xf0] }
 0x12a   : > { %2419 = vmatpush.bf16.msra.mxu1 %v5969_v3  ;;  %v1399_v63 = vadd.f32 %v1398_v58, %v1386_v49  ;;  %v1411_v5 = vpop.f32.mrf.mxu3  ;;  %v7528_v3 = vld [vmem:[#allocation14 + $0x354] sm:$0xf0]  ;;  %v1387_v16 = vpop.f32.mrf.mxu1  ;;  %v7546_v49 = vld [vmem:[#allocation14 + $0x3ec] sm:$0xf]  ;;  %v5842_v58 = vld [vmem:[#allocation14 + $0xd8] sm:$0xf0] }
 0x12b   : > { %2432 = vmatpush.bf16.msra.mxu2 %v6097_v4  ;;  %v6161_v22 = vor.u32 %v7528_v3, %v6160_v7  ;;  %v6245_v57 = vor.u32 %v7546_v49, %v6242_v51  ;;  %v6226_v1 = vld [vmem:[#allocation14 + $0x3d8] sm:$0xf0]  ;;  %v7442_v3 = vld [vmem:[#allocation14 + $0xac] sm:$0xf] }
 0x12c   : > { %2445 = vmatpush.bf16.msra.mxu3 %v6225_v11  ;;  %v1412_v4 = vadd.f32 %v1411_v5, %v1399_v63  ;;  %v6033_v11 = vor.u32 %v7496_v2, %v6032_v6  ;;  %v6098_v63 = vld [vmem:[#allocation14 + $0x2d8] sm:$0xf0]  ;;  %v7542_v5 = vld [vmem:[#allocation14 + $0x3cc] sm:$0xf]  ;;  %v5973_v2 = vor.u32 %v7478_v60, %v5970_v61 }
 0x12d   : > { %2407 = vmatpush.bf16.msra.mxu0 %v5825_v23  ;;  %v7460_v23 = vld [vmem:[#allocation14 + $0x134] sm:$0xf0]  ;;  %v5954_v9 = vld [vmem:[#allocation14 + $0x1b8] sm:$0xf0] }
 0x12e   : > { %2420 = vmatpush.bf16.msra.mxu1 %v5953_v25  ;;  %v1519_v19 = vpack.c.bf16 %v1412_v4, %v1360_v0  ;;  %v7492_v25 = vld [vmem:[#allocation14 + $0x234] sm:$0xf0]  ;;  %v5826_v0 = vld [vmem:[#allocation14 + $0xb8] sm:$0xf0]  ;;  %v7474_v4 = vld [vmem:[#allocation14 + $0x1ac] sm:$0xf] }
 0x12f   : > { %2433 = vmatpush.bf16.msra.mxu2 %v6081_v26  ;;  %v6144_v26 = vld [vmem:[#allocation14 + $0x328] sm:$0xf]  ;;  %v6017_v31 = vor.u32 %v7492_v25, %v6016_v24  ;;  %v5957_v16 = vor.u32 %v7474_v4, %v5954_v9  ;;  %v7470_v24 = vld [vmem:[#allocation14 + $0x18c] sm:$0xf]  ;;  %v6213_v25 = vor.u32 %v7538_v12, %v6210_v13  ;;  %v6050_v40 = vld [vmem:[#allocation14 + $0x278] sm:$0xf0] }
 0x130   : > { %2446 = vmatpush.bf16.msra.mxu3 %v6209_v30  ;;  %1521 = vst [vmem:[#allocation2] sm:$0xff] %v1519_v19  ;;  %v5889_v30 = vor.u32 %v7460_v23, %v5888_v15  ;;  %v6145_v35 = vor.u32 %v7524_v21, %v6144_v26  ;;  %v5829_v15 = vor.u32 %v7442_v3, %v5826_v0  ;;  %v5810_v23 = vld [vmem:[#allocation14 + $0x98] sm:$0xf0]  ;;  %v7502_v21 = vld [vmem:[#allocation14 + $0x28c] sm:$0xf] }
 0x131   : > { %2408 = vmatpush.bf16.msra.mxu0 %v5809_v36  ;;  %v1400_v56 = vpop.f32.mrf.mxu2  ;;  %v7488_v36 = vld [vmem:[#allocation14 + $0x214] sm:$0xf0]  ;;  %v5938_v26 = vld [vmem:[#allocation14 + $0x198] sm:$0xf0]  ;;  %v7490_v3 = vld [vmem:[#allocation14 + $0x22c] sm:$0xf] }
 0x132   : > { %2421 = vmatpush.bf16.msra.mxu1 %v5937_v38  ;;  %v7520_v38 = vld [vmem:[#allocation14 + $0x314] sm:$0xf0]  ;;  %v6001_v48 = vor.u32 %v7488_v36, %v6000_v34  ;;  %v5941_v32 = vor.u32 %v7470_v24, %v5938_v26  ;;  %v7434_v34 = vld [vmem:[#allocation14 + $0x6c] sm:$0xf]  ;;  %v5794_v56 = vld [vmem:[#allocation14 + $0x78] sm:$0xf0] }
 0x133   : > { %2434 = vmatpush.bf16.msra.mxu2 %v6065_v39  ;;  %v1413_v39 = vpop.f32.mrf.mxu3  ;;  %v6129_v59 = vor.u32 %v7520_v38, %v6128_v37  ;;  %v6197_v37 = vor.u32 %v7534_v28, %v6194_v29  ;;  %v5922_v38 = vld [vmem:[#allocation14 + $0x178] sm:$0xf0]  ;;  %v7522_v4 = vld [vmem:[#allocation14 + $0x32c] sm:$0xf]  ;;  %v7579_v28 = vld [vmem:[#allocation15 + $0xec] sm:$0xf0] }
 0x134   : > { %2447 = vmatpush.bf16.msra.mxu3 %v6193_v45  ;;  %v7514_v45 = vld [vmem:[#allocation14 + $0x2ec] sm:$0xf]  ;;  %v6018_v0 = vld [vmem:[#allocation14 + $0x238] sm:$0xf0] }
 0x135   : > { %2409 = vmatpush.bf16.msra.mxu0 %v5793_v53  ;;  %v5989_v53 = vor.u32 %v7482_v42, %v5986_v44  ;;  %v7498_v39 = vld [vmem:[#allocation14 + $0x26c] sm:$0xf]  ;;  %v6178_v42 = vld [vmem:[#allocation14 + $0x378] sm:$0xf0]  ;;  %v6021_v12 = vor.u32 %v7490_v3, %v6018_v0  ;;  %v6248_v0 = vld [vmem:[#allocation15] sm:$0xf] }
 0x136   : > { %2422 = vmatpush.bf16.msra.mxu1 %v5921_v54  ;;  %v6117_v54 = vor.u32 %v7514_v45, %v6114_v46  ;;  %v6053_v45 = vor.u32 %v7498_v39, %v6050_v40  ;;  %v7430_v46 = vld [vmem:[#allocation14 + $0x4c] sm:$0xf]  ;;  %v6181_v51 = vor.u32 %v7530_v41, %v6178_v42  ;;  %v5746_v13 = vld [vmem:[#allocation14 + $0x18] sm:$0xf0]  ;;  %v6328_v39 = vld [vmem:[#allocation15 + $0xa0] sm:$0xf] }
 0x137   : > { %2435 = vmatpush.bf16.msra.mxu2 %v6049_v55  ;;  %v7446_v55 = vld [vmem:[#allocation14 + $0xcc] sm:$0xf]  ;;  %v6002_v24 = vld [vmem:[#allocation14 + $0x218] sm:$0xf0]  ;;  %v7571_v40 = vld [vmem:[#allocation15 + $0xac] sm:$0xf0] }
 0x138   : > { %2448 = vmatpush.bf16.msra.mxu3 %v6177_v62  ;;  %v7510_v62 = vld [vmem:[#allocation14 + $0x2cc] sm:$0xf]  ;;  %v5845_v6 = vor.u32 %v7446_v55, %v5842_v58  ;;  %v6162_v58 = vld [vmem:[#allocation14 + $0x358] sm:$0xf0]  ;;  %v6329_v42 = vor.u32 %v7571_v40, %v6328_v39 }
 0x139   : > { %2410 = vmatpush.bf16.msra.mxu0 %v5777_v8  ;;  %v6101_v7 = vor.u32 %v7510_v62, %v6098_v63  ;;  %v6229_v8 = vor.u32 %v7542_v5, %v6226_v1  ;;  %v7526_v55 = vld [vmem:[#allocation14 + $0x34c] sm:$0xf]  ;;  %v5762_v5 = vld [vmem:[#allocation14 + $0x38] sm:$0xf0] }
 0x13a   : > { %2423 = vmatpush.bf16.msra.mxu1 %v5905_v10  ;;  %v7506_v10 = vld [vmem:[#allocation14 + $0x2ac] sm:$0xf] }
 0x13b   : > { %2436 = vmatpush.bf16.msra.mxu2 %v6033_v11  ;;  %v6082_v11 = vld [vmem:[#allocation14 + $0x2b8] sm:$0xf0]  ;;  %v7426_v63 = vld [vmem:[#allocation14 + $0x2c] sm:$0xf] }
 0x13c   : > { %2449 = vmatpush.bf16.msra.mxu3 %v6161_v22  ;;  %v6085_v19 = vor.u32 %v7506_v10, %v6082_v11  ;;  %v7438_v22 = vld [vmem:[#allocation14 + $0x8c] sm:$0xf]  ;;  %v5765_v9 = vor.u32 %v7426_v63, %v5762_v5 }
 0x13d   : > { %2411 = vmatpush.bf16.msra.mxu0 %v5761_v27  ;;  %v6066_v27 = vld [vmem:[#allocation14 + $0x298] sm:$0xf0]  ;;  %v7458_v1 = vld [vmem:[#allocation14 + $0x12c] sm:$0xf] }
 0x13e   : > { %2424 = vmatpush.bf16.msra.mxu1 %v5889_v30  ;;  %v5813_v30 = vor.u32 %v7438_v22, %v5810_v23  ;;  %v6069_v33 = vor.u32 %v7502_v21, %v6066_v27  ;;  %v7422_v10 = vld [vmem:[#allocation14 + $0xc] sm:$0xf]  ;;  %v6130_v21 = vld [vmem:[#allocation14 + $0x318] sm:$0xf0]  ;;  %v6360_v27 = vld [vmem:[#allocation15 + $0xe0] sm:$0xf] }
 0x13f   : > { %2437 = vmatpush.bf16.msra.mxu2 %v6017_v31  ;;  %v7486_v23 = vld [vmem:[#allocation14 + $0x20c] sm:$0xf]  ;;  %v5749_v29 = vor.u32 %v7422_v10, %v5746_v13  ;;  %v6362_v10 = vld [vmem:[#allocation15 + $0xf0] sm:$0xf0]  ;;  %v7573_v13 = vld [vmem:[#allocation15 + $0xc4] sm:$0xf] }
 0x140   : > { %2450 = vmatpush.bf16.msra.mxu3 %v6145_v35  ;;  %v7466_v35 = vld [vmem:[#allocation14 + $0x16c] sm:$0xf] }
 0x141   : > { %2412 = vmatpush.bf16.msra.mxu0 %v5745_v43  ;;  %v8612_v31 = vpop.f32.mrf.mxu0  ;;  %v5797_v43 = vor.u32 %v7434_v34, %v5794_v56  ;;  %v5925_v44 = vor.u32 %v7466_v35, %v5922_v38  ;;  %v6361_v34 = vor.u32 %v7579_v28, %v6360_v27  ;;  %v6344_v56 = vld [vmem:[#allocation15 + $0xc0] sm:$0xf]  ;;  %v7575_v35 = vld [vmem:[#allocation15 + $0xcc] sm:$0xf0]  ;;  %v7561_v27 = vld [vmem:[#allocation15 + $0x64] sm:$0xf] }
 0x142   : > { %2425 = vmatpush.bf16.msra.mxu1 %v5873_v47  ;;  %v8614_v36 = vpop.f32.mrf.mxu1  ;;  %v5778_v47 = vld [vmem:[#allocation14 + $0x58] sm:$0xf0]  ;;  %v6345_v38 = vor.u32 %v7575_v35, %v6344_v56  ;;  %v6488_v35 = vld [vmem:[#allocation15 + $0x1e0] sm:$0xf] }
 0x143   : > { %2438 = vmatpush.bf16.msra.mxu2 %v6001_v48  ;;  %v7462_v48 = vld [vmem:[#allocation14 + $0x14c] sm:$0xf]  ;;  %v5781_v60 = vor.u32 %v7430_v46, %v5778_v47 }
 0x144   : > { %2451 = vmatpush.bf16.msra.mxu3 %v6129_v59  ;;  %2413 = vmatmul.bf16.vlgmr.msra.gmra.mxu0 %v8578_v17  ;;  %v5906_v59 = vld [vmem:[#allocation14 + $0x158] sm:$0xf0] }
 0x145   : > { %2457 = vmatpush.bf16.msrb.mxu0 %v5861_v52  ;;  %2426 = vmatmul.bf16.vlgmr.msra.gmra.mxu1 %v8582_v20  ;;  %v7494_v52 = vld [vmem:[#allocation14 + $0x24c] sm:$0xf]  ;;  %v5909_v61 = vor.u32 %v7462_v48, %v5906_v59 }
 0x146   : > { %2470 = vmatpush.bf16.msrb.mxu1 %v5989_v53  ;;  %2439 = vmatmul.bf16.vlgmr.msra.gmra.mxu2 %v8576_v14  ;;  %v6034_v53 = vld [vmem:[#allocation14 + $0x258] sm:$0xf0] }
 0x147   : > { %2483 = vmatpush.bf16.msrb.mxu2 %v6117_v54  ;;  %2452 = vmatmul.bf16.vlgmr.msra.gmra.mxu3 %v8580_v18  ;;  %v6037_v62 = vor.u32 %v7494_v52, %v6034_v53  ;;  %v6296_v52 = vld [vmem:[#allocation15 + $0x60] sm:$0xf]  ;;  %v7563_v53 = vld [vmem:[#allocation15 + $0x6c] sm:$0xf0] }
 0x148   : > { %2496 = vmatpush.bf16.msrb.mxu3 %v6245_v57 }
 0x149   : > { %2458 = vmatpush.bf16.msrb.mxu0 %v5845_v6  ;;  %v8616_v49 = vpop.f32.mrf.mxu2  ;;  %v1426_v57 = vpop.f32.mrf.mxu0 }
 0x14a   : > { %2471 = vmatpush.bf16.msrb.mxu1 %v5973_v2  ;;  %v8618_v54 = vpop.f32.mrf.mxu3  ;;  %v1439_v6 = vpop.f32.mrf.mxu1  ;;  %v6165_v2 = vor.u32 %v7526_v55, %v6162_v58  ;;  %v6280_v57 = vld [vmem:[#allocation15 + $0x40] sm:$0xf] }
 0x14b   : > { %2484 = vmatpush.bf16.msrb.mxu2 %v6101_v7  ;;  %v5890_v7 = vld [vmem:[#allocation14 + $0x138] sm:$0xf0]  ;;  %v6264_v6 = vld [vmem:[#allocation15 + $0x20] sm:$0xf] }
 0x14c   : > { %2497 = vmatpush.bf16.msrb.mxu3 %v6229_v8  ;;  %v6146_v8 = vld [vmem:[#allocation14 + $0x338] sm:$0xf0]  ;;  %v5893_v11 = vor.u32 %v7458_v1, %v5890_v7 }
 0x14d   : > { %2459 = vmatpush.bf16.msrb.mxu0 %v5829_v15  ;;  %v7454_v15 = vld [vmem:[#allocation14 + $0x10c] sm:$0xf]  ;;  %v6149_v22 = vor.u32 %v7522_v4, %v6146_v8  ;;  %v7551_v4 = vld [vmem:[#allocation15 + $0xc] sm:$0xf0] }
 0x14e   : > { %2472 = vmatpush.bf16.msrb.mxu1 %v5957_v16  ;;  %v5874_v16 = vld [vmem:[#allocation14 + $0x118] sm:$0xf0] }
 0x14f   : > { %2485 = vmatpush.bf16.msrb.mxu2 %v6085_v19 }
 0x150   : > { %2498 = vmatpush.bf16.msrb.mxu3 %v6213_v25  ;;  %v7518_v25 = vld [vmem:[#allocation14 + $0x30c] sm:$0xf] }
 0x151   : > { %2460 = vmatpush.bf16.msrb.mxu0 %v5813_v30  ;;  %v1452_v19 = vpop.f32.mrf.mxu2  ;;  %v5877_v30 = vor.u32 %v7454_v15, %v5874_v16  ;;  %v6346_v15 = vld [vmem:[#allocation15 + $0xd0] sm:$0xf0] }
 0x152   : > { %2473 = vmatpush.bf16.msrb.mxu1 %v5941_v32  ;;  %v1465_v26 = vpop.f32.mrf.mxu3  ;;  %v6005_v32 = vor.u32 %v7486_v23, %v6002_v24  ;;  %v6349_v16 = vor.u32 %v7573_v13, %v6346_v15  ;;  %v7569_v19 = vld [vmem:[#allocation15 + $0xa4] sm:$0xf] }
 0x153   : > { %2486 = vmatpush.bf16.msrb.mxu2 %v6069_v33  ;;  %v6133_v33 = vor.u32 %v7518_v25, %v6130_v21  ;;  %v7565_v24 = vld [vmem:[#allocation15 + $0x84] sm:$0xf]  ;;  %v6314_v25 = vld [vmem:[#allocation15 + $0x90] sm:$0xf0]  ;;  %v6616_v26 = vld [vmem:[#allocation15 + $0x2e0] sm:$0xf] }
 0x154   : > { %2499 = vmatpush.bf16.msrb.mxu3 %v6197_v37  ;;  %v665_v37 = vperm.slane %v8596_v50, 2  ;;  %v7643_v21 = vld [vmem:[#allocation15 + $0x2ec] sm:$0xf0] }
 0x155   : > { %2461 = vmatpush.bf16.msrb.mxu0 %v5797_v43  ;;  %v6312_v43 = vld [vmem:[#allocation15 + $0x80] sm:$0xf]  ;;  %v6617_v28 = vor.u32 %v7643_v21, %v6616_v26 }
 0x156   : > { %2474 = vmatpush.bf16.msrb.mxu1 %v5925_v44  ;;  %v1425_v41 = vadd.f32 %v8612_v31, %v665_v37  ;;  %v7567_v44 = vld [vmem:[#allocation15 + $0x8c] sm:$0xf0]  ;;  %v6297_v31 = vor.u32 %v7563_v53, %v6296_v52  ;;  %v6584_v53 = vld [vmem:[#allocation15 + $0x2a0] sm:$0xf] }
 0x157   : > { %2487 = vmatpush.bf16.msrb.mxu2 %v6053_v45  ;;  %v666_v45 = vperm.slane %v8596_v50, 3  ;;  %v6313_v47 = vor.u32 %v7567_v44, %v6312_v43  ;;  %v7611_v37 = vld [vmem:[#allocation15 + $0x1ec] sm:$0xf0]  ;;  %v6728_v44 = vld [vmem:[#allocation15 + $0x3c0] sm:$0xf] }
 0x158   : > { %2500 = vmatpush.bf16.msrb.mxu3 %v6181_v51  ;;  %v1438_v46 = vadd.f32 %v8614_v36, %v1425_v41  ;;  %v6489_v40 = vor.u32 %v7611_v37, %v6488_v35  ;;  %v7639_v41 = vld [vmem:[#allocation15 + $0x2cc] sm:$0xf0]  ;;  %v6536_v37 = vld [vmem:[#allocation15 + $0x240] sm:$0xf] }
 0x159   : > { %2462 = vmatpush.bf16.msrb.mxu0 %v5781_v60  ;;  %v7607_v52 = vld [vmem:[#allocation15 + $0x1cc] sm:$0xf0] }
 0x15a   : > { %2475 = vmatpush.bf16.msrb.mxu1 %v5909_v61  ;;  %v1451_v58 = vadd.f32 %v8616_v49, %v1438_v46  ;;  %v7559_v61 = vld [vmem:[#allocation15 + $0x4c] sm:$0xf0]  ;;  %v7557_v46 = vld [vmem:[#allocation15 + $0x44] sm:$0xf] }
 0x15b   : > { %2488 = vmatpush.bf16.msrb.mxu2 %v6037_v62  ;;  %v6281_v5 = vor.u32 %v7559_v61, %v6280_v57  ;;  %v6712_v61 = vld [vmem:[#allocation15 + $0x3a0] sm:$0xf]  ;;  %v7595_v35 = vld [vmem:[#allocation15 + $0x16c] sm:$0xf0] }
 0x15c   : > { %2501 = vmatpush.bf16.msrb.mxu3 %v6165_v2  ;;  %v1464_v50 = vadd.f32 %v8618_v54, %v1451_v58  ;;  %v7555_v2 = vld [vmem:[#allocation15 + $0x2c] sm:$0xf0] }
 0x15d   : > { %2463 = vmatpush.bf16.msrb.mxu0 %v5765_v9  ;;  %v6265_v49 = vor.u32 %v7555_v2, %v6264_v6  ;;  %v7577_v9 = vld [vmem:[#allocation15 + $0xe4] sm:$0xf]  ;;  %v6456_v6 = vld [vmem:[#allocation15 + $0x1a0] sm:$0xf]  ;;  %v7603_v2 = vld [vmem:[#allocation15 + $0x1ac] sm:$0xf0] }
 0x15e   : > { %2476 = vmatpush.bf16.msrb.mxu1 %v5893_v11  ;;  %v6365_v54 = vor.u32 %v7577_v9, %v6362_v10  ;;  %v6696_v9 = vld [vmem:[#allocation15 + $0x380] sm:$0xf]  ;;  %v7663_v10 = vld [vmem:[#allocation15 + $0x38c] sm:$0xf0] }
 0x15f   : > { %2489 = vmatpush.bf16.msrb.mxu2 %v6021_v12  ;;  %v6249_v12 = vor.u32 %v7551_v4, %v6248_v0  ;;  %v7549_v4 = vld [vmem:[#allocation15 + $0x4] sm:$0xf]  ;;  %v6697_v13 = vor.u32 %v7663_v10, %v6696_v9  ;;  %v6304_v9 = vld [vmem:[#allocation15 + $0x68] sm:$0xf] }
 0x160   : > { %2502 = vmatpush.bf16.msrb.mxu3 %v6149_v22  ;;  %v6330_v22 = vld [vmem:[#allocation15 + $0xb0] sm:$0xf0] }
 0x161   : > { %2464 = vmatpush.bf16.msrb.mxu0 %v5749_v29  ;;  %v1476_v48 = vpop.f32.mrf.mxu0  ;;  %v6333_v23 = vor.u32 %v7569_v19, %v6330_v22  ;;  %v6317_v29 = vor.u32 %v7565_v24, %v6314_v25  ;;  %v7599_v19 = vld [vmem:[#allocation15 + $0x18c] sm:$0xf0]  ;;  %v6552_v22 = vld [vmem:[#allocation15 + $0x260] sm:$0xf] }
 0x162   : > { %2477 = vmatpush.bf16.msrb.mxu1 %v5877_v30  ;;  %v1477_v51 = vadd.f32 %v1476_v48, %v666_v45  ;;  %v1489_v59 = vpop.f32.mrf.mxu1  ;;  %v6298_v30 = vld [vmem:[#allocation15 + $0x70] sm:$0xf0]  ;;  %v7671_v45 = vld [vmem:[#allocation15 + $0x3cc] sm:$0xf0] }
 0x163   : > { %2490 = vmatpush.bf16.msrb.mxu2 %v6005_v32  ;;  %v6744_v32 = vld [vmem:[#allocation15 + $0x3e0] sm:$0xf]  ;;  %v6301_v43 = vor.u32 %v7561_v27, %v6298_v30  ;;  %v6729_v48 = vor.u32 %v7671_v45, %v6728_v44  ;;  %v7627_v25 = vld [vmem:[#allocation15 + $0x26c] sm:$0xf0]  ;;  %v6352_v30 = vld [vmem:[#allocation15 + $0xc8] sm:$0xf] }
 0x164   : > { %2503 = vmatpush.bf16.msrb.mxu3 %v6133_v33  ;;  %2465 = vmatmul.bf16.vlgmr.msrb.gmra.mxu0 %v8578_v17  ;;  %v1490_v55 = vadd.f32 %v1489_v59, %v1477_v51  ;;  %v7675_v33 = vld [vmem:[#allocation15 + $0x3ec] sm:$0xf0]  ;;  %v6472_v59 = vld [vmem:[#allocation15 + $0x1c0] sm:$0xf]  ;;  %v6553_v21 = vor.u32 %v7627_v25, %v6552_v22  ;;  %v8642_v45 = vld [vmem:[%s8869_s5] sm:$0xf] }
 0x165   : > { %3291 = vmatpush.bf16.msra.mxu0 %v6361_v34  ;;  %2478 = vmatmul.bf16.vlgmr.msrb.gmra.mxu1 %v8582_v20  ;;  %v6745_v56 = vor.u32 %v7675_v33, %v6744_v32  ;;  %v6473_v58 = vor.u32 %v7607_v52, %v6472_v59  ;;  %v6680_v27 = vld [vmem:[#allocation15 + $0x360] sm:$0xf]  ;;  %v7576_v32 = vld [vmem:[#allocation15 + $0xd4] sm:$0xf0]  ;;  %v7591_v52 = vld [vmem:[#allocation15 + $0x14c] sm:$0xf0] }
 0x166   : > { %2491 = vmatmul.bf16.vlgmr.msrb.gmra.mxu2 %v8576_v14  ;;  %3304 = vmatpush.bf16.msra.mxu1 %v6489_v40  ;;  %v7623_v40 = vld [vmem:[#allocation15 + $0x24c] sm:$0xf0]  ;;  %v6408_v59 = vld [vmem:[#allocation15 + $0x140] sm:$0xf]  ;;  %v6746_v22 = vld [vmem:[#allocation15 + $0x3f0] sm:$0xf0] }
 0x167   : > { %2504 = vmatmul.bf16.vlgmr.msrb.gmra.mxu3 %v8580_v18  ;;  %3317 = vmatpush.bf16.msra.mxu2 %v6617_v28  ;;  %v7659_v28 = vld [vmem:[#allocation15 + $0x36c] sm:$0xf0]  ;;  %v6376_v25 = vld [vmem:[#allocation15 + $0x100] sm:$0xf] }
 0x168   : > { %3330 = vmatpush.bf16.msra.mxu3 %v6745_v56  ;;  %v6681_v33 = vor.u32 %v7659_v28, %v6680_v27  ;;  %v6424_v56 = vld [vmem:[#allocation15 + $0x160] sm:$0xf] }
 0x169   : > { %3292 = vmatpush.bf16.msra.mxu0 %v6345_v38  ;;  %v1502_v60 = vpop.f32.mrf.mxu2  ;;  %v1478_v1 = vpop.f32.mrf.mxu0  ;;  %v6600_v38 = vld [vmem:[#allocation15 + $0x2c0] sm:$0xf] }
 0x16a   : > { %v1503_v62 = vadd.f32 %v1502_v60, %v1490_v55  ;;  %v1515_v63 = vpop.f32.mrf.mxu3  ;;  %v1491_v7 = vpop.f32.mrf.mxu1  ;;  %3305 = vmatpush.bf16.msra.mxu1 %v6473_v58  ;;  %v6409_v58 = vor.u32 %v7591_v52, %v6408_v59  ;;  %v6586_v59 = vld [vmem:[#allocation15 + $0x2b0] sm:$0xf0] }
 0x16b   : > { %v6568_v7 = vld [vmem:[#allocation15 + $0x280] sm:$0xf] }
 0x16c   : > { %v1516_v36 = vadd.f32 %v1515_v63, %v1503_v62  ;;  %3331 = vmatpush.bf16.msra.mxu3 %v6729_v48  ;;  %v7667_v62 = vld [vmem:[#allocation15 + $0x3ac] sm:$0xf0]  ;;  %v7553_v63 = vld [vmem:[#allocation15 + $0x24] sm:$0xf]  ;;  %v7572_v48 = vld [vmem:[#allocation15 + $0xb4] sm:$0xf0] }
 0x16d   : > { %3293 = vmatpush.bf16.msra.mxu0 %v6329_v42  ;;  %v6601_v42 = vor.u32 %v7639_v41, %v6600_v38  ;;  %v6425_v38 = vor.u32 %v7595_v35, %v6424_v56  ;;  %v6664_v41 = vld [vmem:[#allocation15 + $0x340] sm:$0xf] }
 0x16e   : > { %v1520_v3 = vpack.c.bf16 %v1516_v36, %v1464_v50  ;;  %v6266_v50 = vld [vmem:[#allocation15 + $0x30] sm:$0xf0] }
 0x16f   : > { %3318 = vmatpush.bf16.msra.mxu2 %v6601_v42  ;;  %v6269_v0 = vor.u32 %v7553_v63, %v6266_v50  ;;  %v7655_v42 = vld [vmem:[#allocation15 + $0x34c] sm:$0xf0]  ;;  %v1654_v50 = vperm.slane %v8642_v45, 1 }
 0x170   : > { %1522 = vst [vmem:[#allocation2 + $0x8] sm:$0xff] %v1520_v3  ;;  %v6457_v3 = vor.u32 %v7603_v2, %v6456_v6  ;;  %v6665_v44 = vor.u32 %v7655_v42, %v6664_v41  ;;  %v6392_v6 = vld [vmem:[#allocation15 + $0x120] sm:$0xf]  ;;  %v7587_v2 = vld [vmem:[#allocation15 + $0x12c] sm:$0xf0] }
 0x171   : > { %3294 = vmatpush.bf16.msra.mxu0 %v6313_v47  ;;  %v1504_v8 = vpop.f32.mrf.mxu2  ;;  %v6282_v47 = vld [vmem:[#allocation15 + $0x50] sm:$0xf0] }
 0x172   : > { %v1517_v11 = vpop.f32.mrf.mxu3  ;;  %v6285_v60 = vor.u32 %v7557_v46, %v6282_v47  ;;  %3306 = vmatpush.bf16.msra.mxu1 %v6457_v3  ;;  %v6353_v46 = vor.u32 %v7576_v32, %v6352_v30  ;;  %v6336_v47 = vld [vmem:[#allocation15 + $0xa8] sm:$0xf]  ;;  %v6393_v3 = vor.u32 %v7587_v2, %v6392_v6  ;;  %v7637_v30 = vld [vmem:[#allocation15 + $0x2c4] sm:$0xf]  ;;  %v6602_v32 = vld [vmem:[#allocation15 + $0x2d0] sm:$0xf0] }
 0x173   : > { %v6250_v11 = vld [vmem:[#allocation15 + $0x10] sm:$0xf0]  ;;  %v6337_v63 = vor.u32 %v7572_v48, %v6336_v47  ;;  %v6605_v35 = vor.u32 %v7637_v30, %v6602_v32  ;;  %v7629_v2 = vld [vmem:[#allocation15 + $0x284] sm:$0xf]  ;;  %v7574_v30 = vld [vmem:[#allocation15 + $0xcc] sm:$0xf] }
 0x174   : > { %v6253_v26 = vor.u32 %v7549_v4, %v6250_v11  ;;  %v6618_v4 = vld [vmem:[#allocation15 + $0x2f0] sm:$0xf0]  ;;  %v6354_v32 = vld [vmem:[#allocation15 + $0xd8] sm:$0xf0] }
 0x175   : > { %3295 = vmatpush.bf16.msra.mxu0 %v6297_v31  ;;  %v7635_v31 = vld [vmem:[#allocation15 + $0x2ac] sm:$0xf0]  ;;  %v6730_v41 = vld [vmem:[#allocation15 + $0x3d0] sm:$0xf0] }
 0x176   : > { %v6585_v57 = vor.u32 %v7635_v31, %v6584_v53  ;;  %v6520_v53 = vld [vmem:[#allocation15 + $0x220] sm:$0xf]  ;;  %v7619_v31 = vld [vmem:[#allocation15 + $0x22c] sm:$0xf0]  ;;  %v6474_v47 = vld [vmem:[#allocation15 + $0x1d0] sm:$0xf0] }
 0x177   : > { %v6458_v6 = vld [vmem:[#allocation15 + $0x1b0] sm:$0xf0] }
 0x178   : > { %3319 = vmatpush.bf16.msra.mxu2 %v6585_v57  ;;  %v6521_v57 = vor.u32 %v7619_v31, %v6520_v53  ;;  %v6272_v53 = vld [vmem:[#allocation15 + $0x28] sm:$0xf] }
 0x179   : > { %3296 = vmatpush.bf16.msra.mxu0 %v6281_v5  ;;  %v6713_v5 = vor.u32 %v7667_v62, %v6712_v61  ;;  %v6648_v61 = vld [vmem:[#allocation15 + $0x320] sm:$0xf]  ;;  %v7651_v62 = vld [vmem:[#allocation15 + $0x32c] sm:$0xf0] }
 0x17b   : > { %3332 = vmatpush.bf16.msra.mxu3 %v6713_v5  ;;  %v7568_v5 = vld [vmem:[#allocation15 + $0x94] sm:$0xf0] }
 0x17d   : > { %3297 = vmatpush.bf16.msra.mxu0 %v6265_v49  ;;  %v7631_v49 = vld [vmem:[#allocation15 + $0x28c] sm:$0xf0] }
 0x17e   : > { %v6569_v8 = vor.u32 %v7631_v49, %v6568_v7  ;;  %v6504_v7 = vld [vmem:[#allocation15 + $0x200] sm:$0xf]  ;;  %v7615_v49 = vld [vmem:[#allocation15 + $0x20c] sm:$0xf0] }
 0x17f   : > { %3333 = vmatpush.bf16.msra.mxu3 %v6697_v13  ;;  %v6505_v10 = vor.u32 %v7615_v49, %v6504_v7 }
 0x180   : > { %3320 = vmatpush.bf16.msra.mxu2 %v6569_v8 }
 0x181   : > { %3298 = vmatpush.bf16.msra.mxu0 %v6249_v12  ;;  %v8631_v34 = vpop.f32.mrf.mxu0  ;;  %v6368_v12 = vld [vmem:[#allocation15 + $0xe8] sm:$0xf] }
 0x182   : > { %v8633_v39 = vpop.f32.mrf.mxu1 }
 0x183   : > { %3334 = vmatpush.bf16.msra.mxu3 %v6681_v33 }
 0x184   : > { %3299 = vmatmul.bf16.vlgmr.msra.gmra.mxu0 %v8578_v17  ;;  %3321 = vmatpush.bf16.msra.mxu2 %v6553_v21  ;;  %v7609_v21 = vld [vmem:[#allocation15 + $0x1e4] sm:$0xf] }
 0x185   : > { %3343 = vmatpush.bf16.msrb.mxu0 %v6365_v54  ;;  %v7580_v54 = vld [vmem:[#allocation15 + $0xf4] sm:$0xf0] }
 0x187   : > { %3335 = vmatpush.bf16.msra.mxu3 %v6665_v44 }
 0x189   : > { %3344 = vmatpush.bf16.msrb.mxu0 %v6349_v16  ;;  %v8635_v51 = vpop.f32.mrf.mxu2  ;;  %v2312_v36 = vpop.f32.mrf.mxu0  ;;  %v6440_v16 = vld [vmem:[#allocation15 + $0x180] sm:$0xf] }
 0x18a   : > { %v8637_v55 = vpop.f32.mrf.mxu3  ;;  %v2325_v1 = vpop.f32.mrf.mxu1  ;;  %v6441_v24 = vor.u32 %v7599_v19, %v6440_v16  ;;  %v6320_v36 = vld [vmem:[#allocation15 + $0x88] sm:$0xf]  ;;  %v7673_v19 = vld [vmem:[#allocation15 + $0x3e4] sm:$0xf] }
 0x18b   : > { %v6649_v1 = vor.u32 %v7651_v62, %v6648_v61  ;;  %v6321_v13 = vor.u32 %v7568_v5, %v6320_v36  ;;  %v7665_v61 = vld [vmem:[#allocation15 + $0x3a4] sm:$0xf]  ;;  %v6714_v62 = vld [vmem:[#allocation15 + $0x3b0] sm:$0xf0] }
 0x18c   : > { %3307 = vmatpush.bf16.msra.mxu1 %v6441_v24  ;;  %v6749_v24 = vor.u32 %v7673_v19, %v6746_v22  ;;  %v6717_v5 = vor.u32 %v7665_v61, %v6714_v62  ;;  %v7625_v19 = vld [vmem:[#allocation15 + $0x264] sm:$0xf]  ;;  %v7578_v22 = vld [vmem:[#allocation15 + $0xec] sm:$0xf] }
 0x18d   : > { %3345 = vmatpush.bf16.msrb.mxu0 %v6333_v23  ;;  %3336 = vmatpush.bf16.msra.mxu3 %v6649_v1  ;;  %v7601_v1 = vld [vmem:[#allocation15 + $0x1a4] sm:$0xf] }
 0x18e   : > { %v6461_v7 = vor.u32 %v7601_v1, %v6458_v6  ;;  %v7649_v61 = vld [vmem:[#allocation15 + $0x324] sm:$0xf] }
 0x190   : > { %3308 = vmatpush.bf16.msra.mxu1 %v6425_v38  ;;  %v6288_v38 = vld [vmem:[#allocation15 + $0x48] sm:$0xf] }
 0x191   : > { %3346 = vmatpush.bf16.msrb.mxu0 %v6317_v29  ;;  %v2338_v15 = vpop.f32.mrf.mxu2  ;;  %v6369_v29 = vor.u32 %v7580_v54, %v6368_v12  ;;  %v6632_v12 = vld [vmem:[#allocation15 + $0x300] sm:$0xf]  ;;  %v7647_v54 = vld [vmem:[#allocation15 + $0x30c] sm:$0xf0] }
 0x192   : > { %v2351_v23 = vpop.f32.mrf.mxu3  ;;  %v7564_v15 = vld [vmem:[#allocation15 + $0x74] sm:$0xf0]  ;;  %v6633_v16 = vor.u32 %v7647_v54, %v6632_v12  ;;  %v6698_v12 = vld [vmem:[#allocation15 + $0x390] sm:$0xf0] }
 0x194   : > { %3309 = vmatpush.bf16.msra.mxu1 %v6409_v58  ;;  %3337 = vmatpush.bf16.msra.mxu3 %v6633_v16  ;;  %v6442_v16 = vld [vmem:[#allocation15 + $0x190] sm:$0xf0] }
 0x195   : > { %3347 = vmatpush.bf16.msrb.mxu0 %v6301_v43  ;;  %v6537_v43 = vor.u32 %v7623_v40, %v6536_v37  ;;  %v6305_v37 = vor.u32 %v7564_v15, %v6304_v9  ;;  %v7669_v40 = vld [vmem:[#allocation15 + $0x3c4] sm:$0xf] }
 0x196   : > { %v6733_v44 = vor.u32 %v7669_v40, %v6730_v41  ;;  %v7597_v15 = vld [vmem:[#allocation15 + $0x184] sm:$0xf]  ;;  %v6538_v41 = vld [vmem:[#allocation15 + $0x250] sm:$0xf0] }
 0x197   : > { %3322 = vmatpush.bf16.msra.mxu2 %v6537_v43  ;;  %v7560_v43 = vld [vmem:[#allocation15 + $0x54] sm:$0xf0]  ;;  %3338 = vmatmul.bf16.vlgmr.msra.gmra.mxu3 %v8580_v18 }
 0x198   : > { %3310 = vmatpush.bf16.msra.mxu1 %v6393_v3  ;;  %3382 = vmatpush.bf16.msrb.mxu3 %v6749_v24  ;;  %v6570_v3 = vld [vmem:[#allocation15 + $0x290] sm:$0xf0]  ;;  %v6445_v24 = vor.u32 %v7597_v15, %v6442_v16 }
 0x199   : > { %3348 = vmatpush.bf16.msrb.mxu0 %v6285_v60  ;;  %v1653_v60 = vperm.slane %v8642_v45, 0 }
 0x19b   : > { %3323 = vmatpush.bf16.msra.mxu2 %v6521_v57  ;;  %v2311_v8 = vadd.f32 %v8631_v34, %v1653_v60  ;;  %v6289_v60 = vor.u32 %v7560_v43, %v6288_v38  ;;  %v7556_v57 = vld [vmem:[#allocation15 + $0x34] sm:$0xf0]  ;;  %v7570_v38 = vld [vmem:[#allocation15 + $0xac] sm:$0xf] }
 0x19c   : > { %3383 = vmatpush.bf16.msrb.mxu3 %v6733_v44  ;;  %v6273_v9 = vor.u32 %v7556_v57, %v6272_v53  ;;  %v7653_v44 = vld [vmem:[#allocation15 + $0x344] sm:$0xf]  ;;  %v6522_v57 = vld [vmem:[#allocation15 + $0x230] sm:$0xf0] }
 0x19d   : > { %3349 = vmatpush.bf16.msrb.mxu0 %v6269_v0  ;;  %v7641_v0 = vld [vmem:[#allocation15 + $0x2e4] sm:$0xf]  ;;  %v2324_v33 = vadd.f32 %v8633_v39, %v2311_v8  ;;  %v6573_v8 = vor.u32 %v7629_v2, %v6570_v3  ;;  %v3692_v2 = vld [vmem:[#allocation2] sm:$0xff]   ;;  %v6506_v3 = vld [vmem:[#allocation15 + $0x210] sm:$0xf0] }
 0x19e   : > { %v6621_v11 = vor.u32 %v7641_v0, %v6618_v4  ;;  %v7633_v39 = vld [vmem:[#allocation15 + $0x2a4] sm:$0xf]  ;;  %v6256_v4 = vld [vmem:[#allocation15 + $0x8] sm:$0xf]  ;;  %v3566_v16 = vunpack.c.l.b16 %v3692_v2 }
 0x19f   : > { %3324 = vmatpush.bf16.msra.mxu2 %v6505_v10  ;;  %v2337_v52 = vadd.f32 %v8635_v51, %v2324_v33  ;;  %v6589_v58 = vor.u32 %v7633_v39, %v6586_v59  ;;  %v7552_v10 = vld [vmem:[#allocation15 + $0x14] sm:$0xf0]  ;;  %v7589_v39 = vld [vmem:[#allocation15 + $0x144] sm:$0xf]  ;;  %v6410_v59 = vld [vmem:[#allocation15 + $0x150] sm:$0xf0] }
 0x1a0   : > { %3384 = vmatpush.bf16.msrb.mxu3 %v6717_v5  ;;  %v6394_v5 = vld [vmem:[#allocation15 + $0x130] sm:$0xf0] }
 0x1a1   : > { %3350 = vmatpush.bf16.msrb.mxu0 %v6253_v26  ;;  %v2362_v23 = vpop.f32.mrf.mxu0  ;;  %v7583_v26 = vld [vmem:[#allocation15 + $0x10c] sm:$0xf0]  ;;  %v2350_v49 = vadd.f32 %v8637_v55, %v2337_v52  ;;  %v6554_v55 = vld [vmem:[#allocation15 + $0x270] sm:$0xf0]  ;;  %v7617_v52 = vld [vmem:[#allocation15 + $0x224] sm:$0xf] }
 0x1a2   : > { %v2363_v27 = vadd.f32 %v2362_v23, %v1654_v50  ;;  %v2375_v34 = vpop.f32.mrf.mxu1  ;;  %v6377_v28 = vor.u32 %v7583_v26, %v6376_v25  ;;  %3325 = vmatmul.bf16.vlgmr.msra.gmra.mxu2 %v8576_v14  ;;  %v6370_v23 = vld [vmem:[#allocation15 + $0xf8] sm:$0xf0]  ;;  %v6557_v25 = vor.u32 %v7625_v19, %v6554_v55  ;;  %v7562_v19 = vld [vmem:[#allocation15 + $0x6c] sm:$0xf] }
 0x1a3   : > { %3369 = vmatpush.bf16.msrb.mxu2 %v6621_v11  ;;  %v7661_v11 = vld [vmem:[#allocation15 + $0x384] sm:$0xf]  ;;  %v6306_v55 = vld [vmem:[#allocation15 + $0x78] sm:$0xf0] }
 0x1a4   : > { %3351 = vmatmul.bf16.vlgmr.msrb.gmra.mxu0 %v8578_v17  ;;  %3311 = vmatpush.bf16.msra.mxu1 %v6377_v28  ;;  %v2376_v42 = vadd.f32 %v2375_v34, %v2363_v27  ;;  %v7657_v27 = vld [vmem:[#allocation15 + $0x364] sm:$0xf]  ;;  %v6682_v34 = vld [vmem:[#allocation15 + $0x370] sm:$0xf0] }
 0x1a5   : > { %3395 = vmatpush.bf16.msra.mxu0 %v6369_v29  ;;  %v6490_v29 = vld [vmem:[#allocation15 + $0x1f0] sm:$0xf0]  ;;  %v6685_v33 = vor.u32 %v7657_v27, %v6682_v34  ;;  %v6496_v34 = vld [vmem:[#allocation15 + $0x1e8] sm:$0xf] }
 0x1a6   : > { %v6493_v56 = vor.u32 %v7609_v21, %v6490_v29  ;;  %v6257_v21 = vor.u32 %v7552_v10, %v6256_v4  ;;  %v6373_v29 = vor.u32 %v7578_v22, %v6370_v23  ;;  %v7644_v10 = vld [vmem:[#allocation15 + $0x2f4] sm:$0xf0]  ;;  %v6752_v23 = vld [vmem:[#allocation15 + $0x3e8] sm:$0xf] }
 0x1a7   : > { %3370 = vmatpush.bf16.msrb.mxu2 %v6605_v35  ;;  %3312 = vmatmul.bf16.vlgmr.msra.gmra.mxu1 %v8582_v20  ;;  %v6426_v35 = vld [vmem:[#allocation15 + $0x170] sm:$0xf0] }
 0x1a8   : > { %3356 = vmatpush.bf16.msrb.mxu1 %v6493_v56  ;;  %v7593_v56 = vld [vmem:[#allocation15 + $0x164] sm:$0xf] }
 0x1a9   : > { %3396 = vmatpush.bf16.msra.mxu0 %v6353_v46  ;;  %v7605_v46 = vld [vmem:[#allocation15 + $0x1c4] sm:$0xf]  ;;  %v2388_v31 = vpop.f32.mrf.mxu2  ;;  %v2364_v36 = vpop.f32.mrf.mxu0  ;;  %v6429_v40 = vor.u32 %v7593_v56, %v6426_v35  ;;  %v7640_v56 = vld [vmem:[#allocation15 + $0x2d4] sm:$0xf0]  ;;  %v3567_v35 = vpack.c.b16 %v3566_v16, %v3566_v16  ;;  %v6560_v16 = vld [vmem:[#allocation15 + $0x268] sm:$0xf] }
 0x1aa   : > { %v6477_v48 = vor.u32 %v7605_v46, %v6474_v47  ;;  %v2401_v50 = vpop.f32.mrf.mxu3  ;;  %v2377_v51 = vpop.f32.mrf.mxu1  ;;  %v6666_v46 = vld [vmem:[#allocation15 + $0x350] sm:$0xf0]  ;;  %v6357_v47 = vor.u32 %v7574_v30, %v6354_v32  ;;  %v7585_v36 = vld [vmem:[#allocation15 + $0x124] sm:$0xf] }
 0x1ab   : > { %3371 = vmatpush.bf16.msrb.mxu2 %v6589_v58  ;;  %v6413_v58 = vor.u32 %v7589_v39, %v6410_v59  ;;  %v6397_v4 = vor.u32 %v7585_v36, %v6394_v5  ;;  %v7608_v39 = vld [vmem:[#allocation15 + $0x1d4] sm:$0xf0]  ;;  %v6592_v59 = vld [vmem:[#allocation15 + $0x2a8] sm:$0xf]  ;;  %v6274_v36 = vld [vmem:[#allocation15 + $0x38] sm:$0xf0] }
 0x1ac   : > { %3357 = vmatpush.bf16.msrb.mxu1 %v6477_v48  ;;  %v6669_v48 = vor.u32 %v7653_v44, %v6666_v46  ;;  %v6290_v44 = vld [vmem:[#allocation15 + $0x58] sm:$0xf0]  ;;  %v8661_v46 = vld [vmem:[#allocation2 + $0x8] sm:$0xff]  }
 0x1ad   : > { %3397 = vmatpush.bf16.msra.mxu0 %v6337_v63  ;;  %v2389_v63 = vadd.f32 %v2388_v31, %v2376_v42  ;;  %v6338_v42 = vld [vmem:[#allocation15 + $0xb8] sm:$0xf0] }
 0x1ae   : > { %v6341_v62 = vor.u32 %v7570_v38, %v6338_v42  ;;  %v7672_v42 = vld [vmem:[#allocation15 + $0x3d4] sm:$0xf0] }
 0x1af   : > { %v2402_v0 = vadd.f32 %v2401_v50, %v2389_v63  ;;  %3372 = vmatpush.bf16.msrb.mxu2 %v6573_v8  ;;  %v6525_v63 = vor.u32 %v7617_v52, %v6522_v57  ;;  %v6650_v50 = vld [vmem:[#allocation15 + $0x330] sm:$0xf0] }
 0x1b0   : > { %3358 = vmatpush.bf16.msrb.mxu1 %v6461_v7  ;;  %v6653_v51 = vor.u32 %v7649_v61, %v6650_v50  ;;  %v7613_v7 = vld [vmem:[#allocation15 + $0x204] sm:$0xf]  ;;  %v6720_v61 = vld [vmem:[#allocation15 + $0x3a8] sm:$0xf]  ;;  %v7554_v50 = vld [vmem:[#allocation15 + $0x2c] sm:$0xf] }
 0x1b1   : > { %3398 = vmatpush.bf16.msra.mxu0 %v6321_v13  ;;  %v2509_v54 = vpack.c.bf16 %v2402_v0, %v2350_v49  ;;  %v6701_v13 = vor.u32 %v7661_v11, %v6698_v12  ;;  %v2390_v26 = vpop.f32.mrf.mxu2  ;;  %v7566_v49 = vld [vmem:[#allocation15 + $0x8c] sm:$0xf]  ;;  %v6322_v0 = vld [vmem:[#allocation15 + $0x98] sm:$0xf0]  ;;  %v6509_v8 = vor.u32 %v7613_v7, %v6506_v3  ;;  %v3696_v11 = vunpack.c.h.b16 %v3692_v2  ;;  %v6576_v2 = vld [vmem:[#allocation15 + $0x288] sm:$0xf] }
 0x1b2   : > { %v2403_v28 = vpop.f32.mrf.mxu3  ;;  %v6325_v15 = vor.u32 %v7566_v49, %v6322_v0  ;;  %v7581_v26 = vld [vmem:[#allocation15 + $0x104] sm:$0xf]  ;;  %v7632_v3 = vld [vmem:[#allocation15 + $0x294] sm:$0xf0]  ;;  %v6277_v0 = vor.u32 %v7554_v50, %v6274_v36  ;;  %v6400_v50 = vld [vmem:[#allocation15 + $0x128] sm:$0xf] }
 0x1b3   : > { %2511 = vst [vmem:[#allocation3] sm:$0xff] %v2509_v54  ;;  %3385 = vmatpush.bf16.msrb.mxu3 %v6701_v13  ;;  %3373 = vmatpush.bf16.msrb.mxu2 %v6557_v25  ;;  %v7645_v54 = vld [vmem:[#allocation15 + $0x304] sm:$0xf]  ;;  %v6634_v13 = vld [vmem:[#allocation15 + $0x310] sm:$0xf0]  ;;  %v3697_v30 = vpack.c.b16 %v3696_v11, %v3696_v11 }
 0x1b4   : > { %3359 = vmatpush.bf16.msrb.mxu1 %v6445_v24  ;;  %v6637_v22 = vor.u32 %v7645_v54, %v6634_v13  ;;  %v7676_v24 = vld [vmem:[#allocation15 + $0x3f4] sm:$0xf0]  ;;  %v7550_v11 = vld [vmem:[#allocation15 + $0xc] sm:$0xf]  ;;  %v6448_v13 = vld [vmem:[#allocation15 + $0x188] sm:$0xf] }
 0x1b5   : > { %3399 = vmatpush.bf16.msra.mxu0 %v6305_v37  ;;  %v7621_v37 = vld [vmem:[#allocation15 + $0x244] sm:$0xf]  ;;  %v6753_v25 = vor.u32 %v7676_v24, %v6752_v23  ;;  %v7612_v28 = vld [vmem:[#allocation15 + $0x1f4] sm:$0xf0]  ;;  %v6688_v23 = vld [vmem:[#allocation15 + $0x368] sm:$0xf] }
 0x1b6   : > { %v6541_v43 = vor.u32 %v7621_v37, %v6538_v41  ;;  %v6309_v37 = vor.u32 %v7562_v19, %v6306_v55  ;;  %v6736_v41 = vld [vmem:[#allocation15 + $0x3c8] sm:$0xf]  ;;  %v7660_v24 = vld [vmem:[#allocation15 + $0x374] sm:$0xf0] }
 0x1b7   : > { %3386 = vmatpush.bf16.msrb.mxu3 %v6685_v33  ;;  %v6497_v33 = vor.u32 %v7612_v28, %v6496_v34  ;;  %v7596_v34 = vld [vmem:[#allocation15 + $0x174] sm:$0xf0] }
 0x1b8   : > { %3360 = vmatpush.bf16.msrb.mxu1 %v6429_v40  ;;  %3374 = vmatpush.bf16.msrb.mxu2 %v6541_v43  ;;  %v7558_v43 = vld [vmem:[#allocation15 + $0x4c] sm:$0xf]  ;;  %v7588_v36 = vld [vmem:[#allocation15 + $0x134] sm:$0xf0] }
 0x1b9   : > { %3400 = vmatpush.bf16.msra.mxu0 %v6289_v60 }
 0x1ba   : > { %v3693_v53 = vld [vmem:[#allocation3] sm:$0xff]  }
 0x1bb   : > { %v3701_v31 = vunpack.c.h.b16 %v3693_v53  ;;  %v3571_v60 = vunpack.c.l.b16 %v3693_v53  ;;  %3387 = vmatpush.bf16.msrb.mxu3 %v6669_v48  ;;  %v6480_v48 = vld [vmem:[#allocation15 + $0x1c8] sm:$0xf]  ;;  %v7636_v53 = vld [vmem:[#allocation15 + $0x2b4] sm:$0xf0]  ;;  %v3504_v28 = vld [vmem:[#allocation3] sm:$0xf] }
 0x1bc   : > { %3361 = vmatpush.bf16.msrb.mxu1 %v6413_v58  ;;  %3375 = vmatpush.bf16.msrb.mxu2 %v6525_v63  ;;  %v6481_v52 = vor.u32 %v7608_v39, %v6480_v48  ;;  %v6293_v58 = vor.u32 %v7558_v43, %v6290_v44  ;;  %v6593_v57 = vor.u32 %v7636_v53, %v6592_v59  ;;  %v6416_v44 = vld [vmem:[#allocation15 + $0x148] sm:$0xf]  ;;  %v1655_v53 = vperm.slane %v8642_v45, 2 }
 0x1bd   : > { %3401 = vmatpush.bf16.msra.mxu0 %v6273_v9  ;;  %v3702_v1 = vpack.c.b16 %v3701_v31, %v3701_v31  ;;  %v3572_v6 = vpack.c.b16 %v3571_v60, %v3571_v60  ;;  %v6624_v9 = vld [vmem:[#allocation15 + $0x2e8] sm:$0xf]  ;;  %v3954_v60 = vunpack.c.h.b16 %v8661_v46 }
 0x1be   : > { %v6625_v12 = vor.u32 %v7644_v10, %v6624_v9  ;;  %v6704_v9 = vld [vmem:[#allocation15 + $0x388] sm:$0xf]  ;;  %v7664_v10 = vld [vmem:[#allocation15 + $0x394] sm:$0xf0] }
 0x1bf   : > { %3703 = vrot.lane.b32.xlu1 %v3702_v1, %s8289_s23  ;;  %3573 = vrot.lane.b32.xlu0 %v3572_v6, %s8289_s23  ;;  %v6464_v1 = vld [vmem:[#allocation15 + $0x1a8] sm:$0xf]  ;;  %v7604_v6 = vld [vmem:[#allocation15 + $0x1b4] sm:$0xf0]  ;;  %v3955_v49 = vpack.c.b16 %v3954_v60, %v3954_v60  ;;  %v6705_v54 = vor.u32 %v7664_v10, %v6704_v9 }
 0x1c0   : > { %3388 = vmatpush.bf16.msrb.mxu3 %v6653_v51  ;;  %3362 = vmatpush.bf16.msrb.mxu1 %v6397_v4  ;;  %v6465_v7 = vor.u32 %v7604_v6, %v6464_v1  ;;  %v6528_v48 = vld [vmem:[#allocation15 + $0x228] sm:$0xf]  ;;  %v7642_v1 = vld [vmem:[#allocation15 + $0x2ec] sm:$0xf]  ;;  %v6626_v6 = vld [vmem:[#allocation15 + $0x2f8] sm:$0xf0] }
 0x1c1   : > { %3402 = vmatpush.bf16.msra.mxu0 %v6257_v21  ;;  %3376 = vmatpush.bf16.msrb.mxu2 %v6509_v8  ;;  %v6378_v21 = vld [vmem:[#allocation15 + $0x110] sm:$0xf0]  ;;  %v8657_v32 = vpop.f32.mrf.mxu0  ;;  %v6577_v8 = vor.u32 %v7632_v3, %v6576_v2  ;;  %v6401_v2 = vor.u32 %v7588_v36, %v6400_v50  ;;  %v7674_v3 = vld [vmem:[#allocation15 + $0x3ec] sm:$0xf]  ;;  %v6629_v9 = vor.u32 %v7642_v1, %v6626_v6  ;;  %v6450_v36 = vld [vmem:[#allocation15 + $0x198] sm:$0xf0] }
 0x1c2   : > { %v6381_v27 = vor.u32 %v7581_v26, %v6378_v21  ;;  %v8659_v38 = vpop.f32.mrf.mxu1  ;;  %v6689_v21 = vor.u32 %v7660_v24, %v6688_v23  ;;  %v7598_v50 = vld [vmem:[#allocation15 + $0x18c] sm:$0xf]  ;;  %v6562_v1 = vld [vmem:[#allocation15 + $0x278] sm:$0xf0] }
 0x1c4   : > { %3403 = vmatmul.bf16.vlgmr.msra.gmra.mxu0 %v8578_v17  ;;  %3389 = vmatpush.bf16.msrb.mxu3 %v6637_v22  ;;  %v7628_v22 = vld [vmem:[#allocation15 + $0x274] sm:$0xf0] }
 0x1c5   : > { %3447 = vmatpush.bf16.msrb.mxu0 %v6373_v29  ;;  %3421 = vmatpush.bf16.msra.mxu2 %v6625_v12  ;;  %v6608_v29 = vld [vmem:[#allocation15 + $0x2c8] sm:$0xf]  ;;  %v6258_v12 = vld [vmem:[#allocation15 + $0x18] sm:$0xf0]  ;;  %v6561_v26 = vor.u32 %v7628_v22, %v6560_v16 }
 0x1c6   : > { %v6609_v40 = vor.u32 %v7640_v56, %v6608_v29  ;;  %3363 = vmatpush.bf16.msrb.mxu1 %v6381_v27  ;;  %3377 = vmatmul.bf16.vlgmr.msrb.gmra.mxu2 %v8576_v14  ;;  %v6261_v55 = vor.u32 %v7550_v11, %v6258_v12  ;;  %v6432_v27 = vld [vmem:[#allocation15 + $0x168] sm:$0xf]  ;;  %v7610_v11 = vld [vmem:[#allocation15 + $0x1ec] sm:$0xf]  ;;  %v6498_v12 = vld [vmem:[#allocation15 + $0x1f8] sm:$0xf0] }
 0x1c7   : > { %3698 = vrot.lane.b32.xlu1 %v3697_v30, %s8289_s23  ;;  %3568 = vrot.lane.b32.xlu0 %v3567_v35, %s8289_s23  ;;  %v6544_v30 = vld [vmem:[#allocation15 + $0x248] sm:$0xf]  ;;  %v7656_v35 = vld [vmem:[#allocation15 + $0x354] sm:$0xf0]  ;;  %v6501_v24 = vor.u32 %v7610_v11, %v6498_v12  ;;  %v6674_v11 = vld [vmem:[#allocation15 + $0x358] sm:$0xf0] }
 0x1c8   : > { %3434 = vmatpush.bf16.msra.mxu3 %v6753_v25  ;;  %v6672_v56 = vld [vmem:[#allocation15 + $0x348] sm:$0xf] }
 0x1c9   : > { %3448 = vmatpush.bf16.msrb.mxu0 %v6357_v47  ;;  %v6737_v47 = vor.u32 %v7672_v42, %v6736_v41  ;;  %3422 = vmatpush.bf16.msra.mxu2 %v6609_v40  ;;  %v8666_v31 = vpop.f32.mrf.mxu2  ;;  %v2416_v51 = vpop.f32.mrf.mxu0  ;;  %v3511_v40 = vsel %vm3506_vm0, %v3504_v28, 0  ;;  %v3638_v41 = vld [vmem:[#allocation3 + $0x4] sm:$0xf]  ;;  %v6673_v43 = vor.u32 %v7656_v35, %v6672_v56  ;;  %v7634_v28 = vld [vmem:[#allocation15 + $0x2ac] sm:$0xf] }
 0x1ca   : > { %3408 = vmatpush.bf16.msra.mxu1 %v6497_v33  ;;  %v8669_v63 = vpop.f32.mrf.mxu3  ;;  %3390 = vmatmul.bf16.vlgmr.msrb.gmra.mxu3 %v8580_v18  ;;  %v2429_v4 = vpop.f32.mrf.mxu1  ;;  %v7624_v33 = vld [vmem:[#allocation15 + $0x254] sm:$0xf0]  ;;  %v3644_v39 = vsel %vm3506_vm0, %v3638_v41, 0  ;;  %v6640_v51 = vld [vmem:[#allocation15 + $0x308] sm:$0xf] }
 0x1cb   : > { %3364 = vmatmul.bf16.vlgmr.msrb.gmra.mxu1 %v8582_v20  ;;  %v6545_v42 = vor.u32 %v7624_v33, %v6544_v30  ;;  %v7584_v4 = vld [vmem:[#allocation15 + $0x114] sm:$0xf0]  ;;  %v7666_v33 = vld [vmem:[#allocation15 + $0x3ac] sm:$0xf]  ;;  %v6722_v56 = vld [vmem:[#allocation15 + $0x3b8] sm:$0xf0] }
 0x1cc   : > { %3435 = vmatpush.bf16.msra.mxu3 %v6737_v47  ;;  %v7592_v47 = vld [vmem:[#allocation15 + $0x154] sm:$0xf0]  ;;  %v3503_v41 = vld [vmem:[#allocation2] sm:$0xf] }
 0x1cd   : > { %3449 = vmatpush.bf16.msrb.mxu0 %v6341_v62  ;;  %v7668_v62 = vld [vmem:[#allocation15 + $0x3b4] sm:$0xf0]  ;;  %3423 = vmatpush.bf16.msra.mxu2 %v6593_v57  ;;  %v6417_v59 = vor.u32 %v7592_v47, %v6416_v44  ;;  %v6656_v57 = vld [vmem:[#allocation15 + $0x328] sm:$0xf] }
 0x1ce   : > { %v6721_v5 = vor.u32 %v7668_v62, %v6720_v61  ;;  %3409 = vmatpush.bf16.msra.mxu1 %v6481_v52  ;;  %v7620_v52 = vld [vmem:[#allocation15 + $0x234] sm:$0xf0] }
 0x1cf   : > { %3956 = vrot.lane.b32.xlu1 %v3955_v49, %s8289_s23  ;;  %v6529_v60 = vor.u32 %v7620_v52, %v6528_v48  ;;  %v7652_v61 = vld [vmem:[#allocation15 + $0x334] sm:$0xf0]  ;;  %v7602_v48 = vld [vmem:[#allocation15 + $0x1ac] sm:$0xf] }
 0x1d0   : > { %3436 = vmatpush.bf16.msra.mxu3 %v6721_v5  ;;  %v6657_v62 = vor.u32 %v7652_v61, %v6656_v57  ;;  %v6512_v5 = vld [vmem:[#allocation15 + $0x208] sm:$0xf] }
 0x1d1   : > { %3450 = vmatpush.bf16.msrb.mxu0 %v6325_v15  ;;  %v7600_v15 = vld [vmem:[#allocation15 + $0x194] sm:$0xf0]  ;;  %3424 = vmatpush.bf16.msra.mxu2 %v6577_v8  ;;  %v2442_v25 = vpop.f32.mrf.mxu2  ;;  %v2415_v8 = vadd.f32 %v8657_v32, %v1655_v53 }
 0x1d2   : > { %3410 = vmatpush.bf16.msra.mxu1 %v6465_v7  ;;  %v6449_v19 = vor.u32 %v7600_v15, %v6448_v13  ;;  %v2455_v29 = vpop.f32.mrf.mxu3  ;;  %v7648_v7 = vld [vmem:[#allocation15 + $0x314] sm:$0xf0]  ;;  %v7638_v13 = vld [vmem:[#allocation15 + $0x2cc] sm:$0xf]  ;;  %v6610_v15 = vld [vmem:[#allocation15 + $0x2d8] sm:$0xf0] }
 0x1d3   : > { %v6641_v10 = vor.u32 %v7648_v7, %v6640_v51  ;;  %v6613_v32 = vor.u32 %v7638_v13, %v6610_v15  ;;  %v7670_v25 = vld [vmem:[#allocation15 + $0x3cc] sm:$0xf]  ;;  %v6594_v29 = vld [vmem:[#allocation15 + $0x2b8] sm:$0xf0]  ;;  %v6453_v7 = vor.u32 %v7598_v50, %v6450_v36 }
 0x1d4   : > { %3437 = vmatpush.bf16.msra.mxu3 %v6705_v54  ;;  %v6690_v51 = vld [vmem:[#allocation15 + $0x378] sm:$0xf0]  ;;  %v7590_v13 = vld [vmem:[#allocation15 + $0x14c] sm:$0xf] }
 0x1d5   : > { %3451 = vmatpush.bf16.msrb.mxu0 %v6309_v37  ;;  %3425 = vmatpush.bf16.msra.mxu2 %v6561_v26  ;;  %v6433_v37 = vor.u32 %v7596_v34, %v6432_v27  ;;  %v6738_v26 = vld [vmem:[#allocation15 + $0x3d8] sm:$0xf0] }
 0x1d6   : > { %3411 = vmatpush.bf16.msra.mxu1 %v6449_v19  ;;  %v6741_v27 = vor.u32 %v7670_v25, %v6738_v26  ;;  %v6482_v34 = vld [vmem:[#allocation15 + $0x1d8] sm:$0xf0] }
 0x1d7   : > { %v6418_v15 = vld [vmem:[#allocation15 + $0x158] sm:$0xf0] }
 0x1d8   : > { %3438 = vmatpush.bf16.msra.mxu3 %v6689_v21  ;;  %v7606_v21 = vld [vmem:[#allocation15 + $0x1cc] sm:$0xf]  ;;  %v6421_v26 = vor.u32 %v7590_v13, %v6418_v15 }
 0x1d9   : > { %3452 = vmatpush.bf16.msrb.mxu0 %v6293_v58  ;;  %v1656_v58 = vperm.slane %v8642_v45, 3  ;;  %3426 = vmatpush.bf16.msra.mxu2 %v6545_v42  ;;  %v6754_v45 = vld [vmem:[#allocation15 + $0x3f8] sm:$0xf0]  ;;  %v6485_v35 = vor.u32 %v7606_v21, %v6482_v34  ;;  %v6725_v42 = vor.u32 %v7666_v33, %v6722_v56 }
 0x1da   : > { %3412 = vmatpush.bf16.msra.mxu1 %v6433_v37  ;;  %v6757_v54 = vor.u32 %v7674_v3, %v6754_v45  ;;  %v6597_v37 = vor.u32 %v7634_v28, %v6594_v29  ;;  %v6434_v45 = vld [vmem:[#allocation15 + $0x178] sm:$0xf0]  ;;  %v3637_v29 = vld [vmem:[#allocation2 + $0x4] sm:$0xf] }
 0x1dc   : > { %3439 = vmatpush.bf16.msra.mxu3 %v6673_v43 }
 0x1dd   : > { %3453 = vmatpush.bf16.msrb.mxu0 %v6277_v0  ;;  %3427 = vmatpush.bf16.msra.mxu2 %v6529_v60  ;;  %v6384_v0 = vld [vmem:[#allocation15 + $0x108] sm:$0xf]  ;;  %v6706_v60 = vld [vmem:[#allocation15 + $0x398] sm:$0xf0] }
 0x1de   : > { %3413 = vmatpush.bf16.msra.mxu1 %v6417_v59  ;;  %v6385_v19 = vor.u32 %v7584_v4, %v6384_v0  ;;  %v7630_v59 = vld [vmem:[#allocation15 + $0x28c] sm:$0xf] }
 0x1df   : > { %v7622_v4 = vld [vmem:[#allocation15 + $0x24c] sm:$0xf] }
 0x1e0   : > { %3440 = vmatpush.bf16.msra.mxu3 %v6657_v62 }
 0x1e1   : > { %3454 = vmatpush.bf16.msrb.mxu0 %v6261_v55  ;;  %v2466_v16 = vpop.f32.mrf.mxu0  ;;  %v2428_v55 = vadd.f32 %v8659_v38, %v2415_v8  ;;  %v6546_v8 = vld [vmem:[#allocation15 + $0x258] sm:$0xf0] }
 0x1e2   : > { %3414 = vmatpush.bf16.msra.mxu1 %v6401_v2  ;;  %v2467_v22 = vadd.f32 %v2466_v16, %v1656_v58  ;;  %v2479_v23 = vpop.f32.mrf.mxu1  ;;  %v7662_v58 = vld [vmem:[#allocation15 + $0x38c] sm:$0xf] }
 0x1e3   : > { %v2441_v38 = vadd.f32 %v8666_v31, %v2428_v55  ;;  %v6578_v31 = vld [vmem:[#allocation15 + $0x298] sm:$0xf0]  ;;  %v7658_v2 = vld [vmem:[#allocation15 + $0x36c] sm:$0xf] }
 0x1e4   : > { %3455 = vmatmul.bf16.vlgmr.msrb.gmra.mxu0 %v8578_v17  ;;  %v7616_v17 = vld [vmem:[#allocation15 + $0x214] sm:$0xf0]  ;;  %3441 = vmatpush.bf16.msra.mxu3 %v6641_v10  ;;  %v2480_v30 = vadd.f32 %v2479_v23, %v2467_v22  ;;  %v6581_v62 = vor.u32 %v7630_v59, %v6578_v31  ;;  %v6693_v0 = vor.u32 %v7658_v2, %v6690_v51  ;;  %v7654_v10 = vld [vmem:[#allocation15 + $0x34c] sm:$0xf]  ;;  %v6530_v22 = vld [vmem:[#allocation15 + $0x238] sm:$0xf0] }
 0x1e5   : > { %3520 = vmatpush.bf16.xpose.msra.mxu0 %v3511_v40  ;;  %v6513_v49 = vor.u32 %v7616_v17, %v6512_v5  ;;  %v2454_v57 = vadd.f32 %v8669_v63, %v2441_v38  ;;  %v6709_v5 = vor.u32 %v7662_v58, %v6706_v60  ;;  %v7626_v17 = vld [vmem:[#allocation15 + $0x26c] sm:$0xf]  ;;  %v6677_v16 = vor.u32 %v7654_v10, %v6674_v11 }
 0x1e6   : > { %3415 = vmatpush.bf16.msra.mxu1 %v6385_v19  ;;  %v6565_v3 = vor.u32 %v7626_v17, %v6562_v1  ;;  %v7618_v19 = vld [vmem:[#allocation15 + $0x22c] sm:$0xf] }
 0x1e7   : > { %3428 = vmatpush.bf16.msra.mxu2 %v6513_v49  ;;  %3442 = vmatmul.bf16.vlgmr.msra.gmra.mxu3 %v8580_v18  ;;  %v7594_v49 = vld [vmem:[#allocation15 + $0x16c] sm:$0xf] }
 0x1e8   : > { %3486 = vmatpush.bf16.msrb.mxu3 %v6757_v54  ;;  %v6437_v12 = vor.u32 %v7594_v49, %v6434_v45  ;;  %v6549_v54 = vor.u32 %v7622_v4, %v6546_v8  ;;  %v7650_v23 = vld [vmem:[#allocation15 + $0x32c] sm:$0xf] }
 0x1e9   : > { %v2492_v40 = vpop.f32.mrf.mxu2  ;;  %3416 = vmatmul.bf16.vlgmr.msra.gmra.mxu1 %v8582_v20  ;;  %v2468_v47 = vpop.f32.mrf.mxu0  ;;  %v7586_v38 = vld [vmem:[#allocation15 + $0x12c] sm:$0xf] }
 0x1ea   : > { %3429 = vmatmul.bf16.vlgmr.msra.gmra.mxu2 %v8576_v14  ;;  %3460 = vmatpush.bf16.msrb.mxu1 %v6501_v24  ;;  %v2493_v43 = vadd.f32 %v2492_v40, %v2480_v30  ;;  %v2505_v44 = vpop.f32.mrf.mxu3  ;;  %v2481_v52 = vpop.f32.mrf.mxu1  ;;  %v6658_v24 = vld [vmem:[#allocation15 + $0x338] sm:$0xf0]  ;;  %v6533_v30 = vor.u32 %v7618_v19, %v6530_v22  ;;  %v7614_v40 = vld [vmem:[#allocation15 + $0x20c] sm:$0xf] }
 0x1eb   : > { %3473 = vmatpush.bf16.msrb.mxu2 %v6629_v9  ;;  %v6661_v33 = vor.u32 %v7650_v23, %v6658_v24  ;;  %v7582_v47 = vld [vmem:[#allocation15 + $0x10c] sm:$0xf]  ;;  %v3825_v52 = vunpack.c.l.b16 %v8661_v46  ;;  %v3895_v46 = vld [vmem:[#allocation2 + $0xc] sm:$0xf] }
 0x1ec   : > { %3487 = vmatpush.bf16.msrb.mxu3 %v6741_v27  ;;  %v2506_v61 = vadd.f32 %v2505_v44, %v2493_v43  ;;  %v7646_v43 = vld [vmem:[#allocation15 + $0x30c] sm:$0xf]  ;;  %v6642_v44 = vld [vmem:[#allocation15 + $0x318] sm:$0xf0] }
 0x1ed   : > { %3653 = vmatpush.bf16.xpose.msrb.mxu0 %v3644_v39  ;;  %v6466_v39 = vld [vmem:[#allocation15 + $0x1b8] sm:$0xf0]  ;;  %v6645_v59 = vor.u32 %v7646_v43, %v6642_v44  ;;  %v3826_v58 = vpack.c.b16 %v3825_v52, %v3825_v52 }
 0x1ee   : > { %3461 = vmatpush.bf16.msrb.mxu1 %v6485_v35  ;;  %v6469_v53 = vor.u32 %v7602_v48, %v6466_v39  ;;  %v2510_v6 = vpack.c.bf16 %v2506_v61, %v2454_v57  ;;  %v6386_v48 = vld [vmem:[#allocation15 + $0x118] sm:$0xf0]  ;;  %v3766_v57 = vld [vmem:[#allocation2 + $0x8] sm:$0xf] }
 0x1ef   : > { %3474 = vmatpush.bf16.msrb.mxu2 %v6613_v32 }
 0x1f0   : > { %3488 = vmatpush.bf16.msrb.mxu3 %v6725_v42  ;;  %2512 = vst [vmem:[#allocation3 + $0x8] sm:$0xff] %v2510_v6  ;;  %v6514_v42 = vld [vmem:[#allocation15 + $0x218] sm:$0xf0]  ;;  %v8704_v6 = vld [vmem:[#allocation17] sm:$0xf] }
 0x1f1   : > { %v2494_v63 = vpop.f32.mrf.mxu2  ;;  %v6517_v39 = vor.u32 %v7614_v40, %v6514_v42 }
 0x1f2   : > { %3462 = vmatpush.bf16.msrb.mxu1 %v6469_v53  ;;  %v2507_v9 = vpop.f32.mrf.mxu3  ;;  %v6389_v53 = vor.u32 %v7582_v47, %v6386_v48 }
 0x1f3   : > { %3475 = vmatpush.bf16.msrb.mxu2 %v6597_v37  ;;  %v6402_v37 = vld [vmem:[#allocation15 + $0x138] sm:$0xf0] }
 0x1f4   : > { %6758 = vmatmul.msk.bf16.vlgmr.msra.gmra.mxu0 %vm3506_vm0, %v3503_v41  ;;  %3489 = vmatpush.bf16.msrb.mxu3 %v6709_v5  ;;  %v6405_v41 = vor.u32 %v7586_v38, %v6402_v37 }
 0x1f6   : > { %3463 = vmatpush.bf16.msrb.mxu1 %v6453_v7  ;;  %v2643_v7 = vperm.slane %v8704_v6, 0 }
 0x1f7   : > { %3476 = vmatpush.bf16.msrb.mxu2 %v6581_v62  ;;  %v3767_v55 = vld [vmem:[#allocation3 + $0x8] sm:$0xf]  ;;  %v3896_v32 = vld [vmem:[#allocation3 + $0xc] sm:$0xf] }
 0x1f8   : > { %3490 = vmatpush.bf16.msrb.mxu3 %v6693_v0  ;;  %v3822_v25 = vld [vmem:[#allocation3 + $0x8] sm:$0xff]   ;;  %v3773_v21 = vsel %vm3506_vm0, %v3767_v55, 0  ;;  %v3902_v27 = vsel %vm3506_vm0, %v3896_v32, 0  ;;  %v2644_v0 = vperm.slane %v8704_v6, 1 }
 0x1f9   : > { %v3830_v34 = vunpack.c.l.b16 %v3822_v25  ;;  %v3959_v28 = vunpack.c.h.b16 %v3822_v25  ;;  %3782 = vmatpush.bf16.xpose.msra.mxu0 %v3773_v21 }
 0x1fa   : > { %3464 = vmatpush.bf16.msrb.mxu1 %v6437_v12 }
 0x1fb   : > { %3477 = vmatpush.bf16.msrb.mxu2 %v6565_v3  ;;  %v3831_v56 = vpack.c.b16 %v3830_v34, %v3830_v34  ;;  %v3960_v35 = vpack.c.b16 %v3959_v28, %v3959_v28 }
 0x1fc   : > { %3491 = vmatpush.bf16.msrb.mxu3 %v6677_v16 }
 0x1fd   : > { %3832 = vrot.lane.b32.xlu2 %v3831_v56, %s8289_s23  ;;  %3961 = vrot.lane.b32.xlu0 %v3960_v35, %s8289_s23 }
 0x1fe   : > { %3465 = vmatpush.bf16.msrb.mxu1 %v6421_v26 }
 0x1ff   : > { %3478 = vmatpush.bf16.msrb.mxu2 %v6549_v54 }
 0x200   : > { %3492 = vmatpush.bf16.msrb.mxu3 %v6661_v33 }
 0x201   : > { %v3300_v31 = vpop.f32.mrf.mxu0 }
 0x202   : > { %3466 = vmatpush.bf16.msrb.mxu1 %v6405_v41  ;;  %v3301_v3 = vadd.f32 %v3300_v31, %v2643_v7 }
 0x203   : > { %3479 = vmatpush.bf16.msrb.mxu2 %v6533_v30 }
 0x204   : > { %6762 = vmatmul.msk.bf16.vlgmr.msrb.gmra.mxu0 %vm3506_vm0, %v3637_v29  ;;  %3493 = vmatpush.bf16.msrb.mxu3 %v6645_v59  ;;  %v2645_v59 = vperm.slane %v8704_v6, 2 }
 0x205   : > { %3911 = vmatpush.bf16.xpose.msrb.mxu0 %v3902_v27  ;;  %3827 = vrot.lane.b32.xlu2 %v3826_v58, %s8289_s23  ;;  %v2646_v58 = vperm.slane %v8704_v6, 3 }
 0x206   : > { %3467 = vmatpush.bf16.msrb.mxu1 %v6389_v53 }
 0x207   : > { %3480 = vmatpush.bf16.msrb.mxu2 %v6517_v39  ;;  %3494 = vmatmul.bf16.vlgmr.msrb.gmra.mxu3 %v8580_v18 }
 0x209   : > { %3468 = vmatmul.bf16.vlgmr.msrb.gmra.mxu1 %v8582_v20  ;;  %v3302_v60 = vpop.f32.mrf.mxu0 }
 0x20a   : > { %3481 = vmatmul.bf16.vlgmr.msrb.gmra.mxu2 %v8576_v14 }
 0x214   : > { %6766 = vmatmul.msk.bf16.vlgmr.msra.gmra.mxu0 %vm3506_vm0, %v3766_v57 }
 0x21a   : > { %v3339_v2 = vpop.f32.mrf.mxu3 }
 0x221   : > { %v3352_v61 = vpop.f32.mrf.mxu0 }
 0x222   : > { %v3341_v63 = vpop.f32.mrf.mxu3  ;;  %v3353_v9 = vadd.f32 %v3352_v61, %v2644_v0 }
 0x224   : > { %6770 = vmatmul.msk.bf16.vlgmr.msrb.gmra.mxu0 %vm3506_vm0, %v3895_v46  ;;  %v3313_v20 = vpop.f32.mrf.mxu1 }
 0x225   : > { %v3326_v1 = vpop.f32.mrf.mxu2  ;;  %v3314_v8 = vadd.f32 %v3313_v20, %v3301_v3 }
 0x227   : > { %v3327_v10 = vadd.f32 %v3326_v1, %v3314_v8 }
 0x229   : > { %v3354_v62 = vpop.f32.mrf.mxu0  ;;  %v3340_v15 = vadd.f32 %v3339_v2, %v3327_v10 }
 0x22c   : > { %v3315_v49 = vpop.f32.mrf.mxu1 }
 0x22d   : > { %v3328_v45 = vpop.f32.mrf.mxu2 }
 0x231   : > { %v3704_v50 = vpop.permute.xlu1 %3703  ;;  %v3574_v36 = vpop.permute.xlu0 %3573 }
 0x232   : > { %v3709_v5 = vsel %vm3506_vm0, %v3704_v50, 0  ;;  %v3579_v17 = vsel %vm3506_vm0, %v3574_v36, 0 }
 0x233   : > { %3588 = vmatpush.bf16.xpose.msra.mxu2 %v3579_v17 }
 0x239   : > { %v3569_v18 = vpop.permute.xlu0 %3568  ;;  %v3699_v4 = vpop.permute.xlu1 %3698 }
 0x23a   : > { %6760 = vmatmul.msk.bf16.vlgmr.msra.gmra.mxu2 %vm3506_vm0, %v3569_v18 }
 0x23b   : > { %3718 = vmatpush.bf16.xpose.msrb.mxu2 %v3709_v5 }
 0x241   : > { %v8701_v14 = vpop.f32.mrf.mxu0  ;;  %v3957_v47 = vpop.permute.xlu1 %3956 }
 0x242   : > { %v3405_v31 = vadd.f32 %v8701_v14, %v2645_v59 }
 0x248   : > { %v3365_v11 = vpop.f32.mrf.mxu1 }
 0x249   : > { %v3406_v51 = vpop.f32.mrf.mxu0  ;;  %v3378_v12 = vpop.f32.mrf.mxu2  ;;  %v3366_v54 = vadd.f32 %v3365_v11, %v3353_v9 }
 0x24a   : > { %6764 = vmatmul.msk.bf16.vlgmr.msrb.gmra.mxu2 %vm3506_vm0, %v3699_v4 }
 0x24b   : > { %v3379_v16 = vadd.f32 %v3378_v12, %v3366_v54 }
 0x24d   : > { %v3391_v13 = vpop.f32.mrf.mxu3 }
 0x24e   : > { %v3392_v19 = vadd.f32 %v3391_v13, %v3379_v16 }
 0x250   : > { %v3499_v55 = vpack.c.bf16 %v3392_v19, %v3340_v15  ;;  %v3367_v32 = vpop.f32.mrf.mxu1 }
 0x251   : > { %v3380_v25 = vpop.f32.mrf.mxu2 }
 0x252   : > { %3501 = vst [vmem:[#allocation4] sm:$0xff] %v3499_v55 }
 0x255   : > { %v3393_v26 = vpop.f32.mrf.mxu3 }
 0x257   : > { %v3833_v22 = vpop.permute.xlu2 %3832 }
 0x258   : > { %v3838_v23 = vsel %vm3506_vm0, %v3833_v22, 0 }
 0x259   : > { %3847 = vmatpush.bf16.xpose.msra.mxu2 %v3838_v23  ;;  %v3505_v34 = vld [vmem:[#allocation4] sm:$0xf]  ;;  %v3639_v28 = vld [vmem:[#allocation4 + $0x4] sm:$0xf] }
 0x25a   : > { %v3544_v29 = vsel %vm3542_vm1, %v3505_v34, 0  ;;  %v3675_v30 = vsel %vm3542_vm1, %v3639_v28, 0  ;;  %v8713_v33 = vld [vmem:[#allocation4] sm:$0xff]  }
 0x25b   : > { %3553 = vmatpush.bf16.msra.mxu1 %v3544_v29  ;;  %v3607_v56 = vunpack.c.l.b16 %v8713_v33 }
 0x25d   : > { %v3608_v38 = vpack.c.b16 %v3607_v56, %v3607_v56 }
 0x25f   : > { %v3828_v21 = vpop.permute.xlu2 %3827  ;;  %3684 = vmatpush.bf16.msrb.mxu1 %v3675_v30  ;;  %3609 = vrot.lane.b32.xlu1 %v3608_v38, %s8289_s23 }
 0x260   : > { %6768 = vmatmul.msk.bf16.vlgmr.msra.gmra.mxu2 %vm3506_vm0, %v3828_v21  ;;  %v3737_v21 = vunpack.c.h.b16 %v8713_v33 }
 0x261   : > { %v3456_v24 = vpop.f32.mrf.mxu0 }
 0x262   : > { %v3457_v57 = vadd.f32 %v3456_v24, %v2646_v58 }
 0x266   : > { %v3417_v42 = vpop.f32.mrf.mxu1 }
 0x267   : > { %v3418_v46 = vadd.f32 %v3417_v42, %v3405_v31 }
 0x269   : > { %v3458_v27 = vpop.f32.mrf.mxu0 }
 0x26a   : > { %v3443_v44 = vpop.f32.mrf.mxu3  ;;  %v3738_v27 = vpack.c.b16 %v3737_v21, %v3737_v21 }
 0x26d   : > { %v3430_v43 = vpop.f32.mrf.mxu2 }
 0x26e   : > { %v3419_v39 = vpop.f32.mrf.mxu1  ;;  %v3431_v62 = vadd.f32 %v3430_v43, %v3418_v46 }
 0x26f   : > { %v3962_v37 = vpop.permute.xlu0 %3961 }
 0x270   : > { %v3967_v40 = vsel %vm3506_vm0, %v3962_v37, 0  ;;  %v3444_v17 = vadd.f32 %v3443_v44, %v3431_v62 }
 0x271   : > { %v8716_v35 = vpop.f32.mrf.mxu0  ;;  %3976 = vmatpush.bf16.xpose.msrb.mxu2 %v3967_v40 }
 0x272   : > { %v3445_v53 = vpop.f32.mrf.mxu3  ;;  %v3527_v4 = vsel %vm3526_vm2, %v8716_v35, -inf }
 0x275   : > { %v3432_v52 = vpop.f32.mrf.mxu2 }
 0x278   : > { %6772 = vmatmul.msk.bf16.vlgmr.msrb.gmra.mxu2 %vm3506_vm0, %v3957_v47 }
 0x279   : > { %v3524_v41 = vpop.f32.mrf.mxu0 }
 0x281   : > { %v8720_v48 = vpop.f32.mrf.mxu0 }
 0x282   : > { %v3659_v10 = vsel %vm3526_vm2, %v8720_v48, -inf }
 0x286   : > { %v3469_v61 = vpop.f32.mrf.mxu1 }
 0x287   : > { %v3470_v50 = vadd.f32 %v3469_v61, %v3457_v57 }
 0x289   : > { %v3657_v60 = vpop.f32.mrf.mxu0 }
 0x28a   : > { %v3495_v20 = vpop.f32.mrf.mxu3 }
 0x28d   : > { %v3482_v5 = vpop.f32.mrf.mxu2 }
 0x28e   : > { %v3483_v18 = vadd.f32 %v3482_v5, %v3470_v50  ;;  %v3471_v2 = vpop.f32.mrf.mxu1 }
 0x290   : > { %v3496_v1 = vadd.f32 %v3495_v20, %v3483_v18 }
 0x291   : > { %v8726_v36 = vpop.f32.mrf.mxu0 }
 0x292   : > { %v3500_v51 = vpack.c.bf16 %v3496_v1, %v3444_v17  ;;  %v3497_v3 = vpop.f32.mrf.mxu3  ;;  %v3788_v12 = vsel %vm3526_vm2, %v8726_v36, -inf }
 0x294   : > { %3502 = vst [vmem:[#allocation4 + $0x8] sm:$0xff] %v3500_v51 }
 0x295   : > { %v3484_v14 = vpop.f32.mrf.mxu2 }
 0x299   : > { %v3786_v7 = vpop.f32.mrf.mxu0 }
 0x29b   : > { %v3823_v23 = vld [vmem:[#allocation4 + $0x8] sm:$0xff]  }
 0x29c   : > { %v3866_v24 = vunpack.c.l.b16 %v3823_v23  ;;  %v3995_v20 = vunpack.c.h.b16 %v3823_v23 }
 0x29e   : > { %v3867_v25 = vpack.c.b16 %v3866_v24, %v3866_v24  ;;  %v3996_v2 = vpack.c.b16 %v3995_v20, %v3995_v20 }
 0x2a1   : > { %v8728_v6 = vpop.f32.mrf.mxu0 }
 0x2a2   : > { %v3917_v15 = vsel %vm3526_vm2, %v8728_v6, -inf }
 0x2a9   : > { %v3915_v49 = vpop.f32.mrf.mxu0 }
 0x2bd   : > { %v3590_v45 = vpop.f32.mrf.mxu2 }
 0x2be   : > { %v3594_v63 = vsel %vm3526_vm2, %v3590_v45, -inf }
 0x2bf   : > { %3595 = vmax.xlane.f32.xlu2 %v3594_v63 }
 0x2c5   : > { %v3592_v0 = vpop.f32.mrf.mxu2 }
 0x2c7   : > { %3528 = vmax.xlane.f32.xlu2 %v3527_v4 }
 0x2cd   : > { %v3720_v8 = vpop.f32.mrf.mxu2 }
 0x2ce   : > { %v3724_v9 = vsel %vm3526_vm2, %v3720_v8, -inf }
 0x2cf   : > { %3725 = vmax.xlane.f32.xlu0 %v3724_v9  ;;  %3660 = vmax.xlane.f32.xlu2 %v3659_v10 }
 0x2d1   : > { %v3610_v54 = vpop.permute.xlu1 %3609 }
 0x2d2   : > { %v3615_v13 = vsel %vm3542_vm1, %v3610_v54, 0 }
 0x2d3   : > { %3624 = vmatpush.bf16.msra.mxu3 %v3615_v13 }
 0x2d5   : > { %v3722_v11 = vpop.f32.mrf.mxu2 }
 0x2d7   : > { %3789 = vmax.xlane.f32.xlu0 %v3788_v12 }
 0x2df   : > { %3918 = vmax.xlane.f32.xlu0 %v3917_v15 }
 0x2e3   : > { %v3849_v16 = vpop.f32.mrf.mxu2 }
 0x2e4   : > { %v3853_v19 = vsel %vm3526_vm2, %v3849_v16, -inf }
 0x2e5   : > { %3854 = vmax.xlane.f32.xlu1 %v3853_v19  ;;  %v3768_v19 = vld [vmem:[#allocation4 + $0x8] sm:$0xf] }
 0x2e6   : > { %v3804_v23 = vsel %vm3542_vm1, %v3768_v19, 0 }
 0x2eb   : > { %v3851_v22 = vpop.f32.mrf.mxu2 }
 0x2fb   : > { %v3978_v55 = vpop.f32.mrf.mxu2 }
 0x2fc   : > { %v3982_v32 = vsel %vm3526_vm2, %v3978_v55, -inf }
 0x2fd   : > { %3983 = vmax.xlane.f32.xlu2 %v3982_v32 }
 0x2fe   : > { %3868 = vrot.lane.b32.xlu1 %v3867_v25, %s8289_s23 }
 0x303   : > { %v3980_v26 = vpop.f32.mrf.mxu2 }
 0x315   : > { %3739 = vrot.lane.b32.xlu2 %v3738_v27, %s8289_s23 }
 0x332   : > { %v3596_v34 = vpop.xlane.xlu2 %3595 }
 0x333   : > { %v3597_v28 = vsub.f32 %v3590_v45, %v3596_v34 }
 0x335   : > { %v3598_v29 = vmul.f32 1.442695, %v3597_v28 }
 0x337   : > { %7921 = vpow2.f32 %v3598_v29 }
 0x33a   : > { %v3529_v30 = vpop.xlane.xlu2 %3528 }
 0x33b   : > { %v3530_v56 = vsub.f32 %v8716_v35, %v3529_v30 }
 0x33d   : > { %v7922_v38 = vpop.eup %7921  ;;  %v3531_v37 = vmul.f32 1.442695, %v3530_v56 }
 0x33e   : > { %v3600_v40 = vsel %vm3526_vm2, %v7922_v38, 0.0 }
 0x33f   : > { %7923 = vpow2.f32 %v3531_v37  ;;  %3601 = vadd.xlane.f32.xlu0 %v3600_v40 }
 0x342   : > { %v3726_v41 = vpop.xlane.xlu0 %3725  ;;  %v3661_v62 = vpop.xlane.xlu2 %3660 }
 0x343   : > { %v3727_v42 = vsub.f32 %v3720_v8, %v3726_v41  ;;  %v3662_v45 = vsub.f32 %v8720_v48, %v3661_v62 }
 0x345   : > { %v7924_v43 = vpop.eup %7923  ;;  %v3728_v33 = vmul.f32 1.442695, %v3727_v42  ;;  %v3663_v63 = vmul.f32 1.442695, %v3662_v45  ;;  %v3897_v42 = vld [vmem:[#allocation4 + $0xc] sm:$0xf] }
 0x346   : > { %v3533_v44 = vsel %vm3526_vm2, %v7924_v43, 0.0 }
 0x347   : > { %7925 = vpow2.f32 %v3728_v33  ;;  %3534 = vadd.xlane.f32.xlu1 %v3533_v44  ;;  %v3933_v44 = vsel %vm3542_vm1, %v3897_v42, 0  ;;  %v6984_v42 = vld [vmem:[#allocation18 + $0x1a0] sm:$0xf] }
 0x34a   : > { %v3790_v47 = vpop.xlane.xlu0 %3789 }
 0x34b   : > { %v3791_v39 = vsub.f32 %v8726_v36, %v3790_v47 }
 0x34d   : > { %v8750_v59 = vpop.eup %7925  ;;  %v3792_v35 = vmul.f32 1.442695, %v3791_v39 }
 0x34e   : > { %v3730_v52 = vsel %vm3526_vm2, %v8750_v59, 0.0 }
 0x34f   : > { %7927 = vpow2.f32 %v3792_v35  ;;  %3731 = vadd.xlane.f32.xlu0 %v3730_v52 }
 0x352   : > { %v3919_v50 = vpop.xlane.xlu0 %3918 }
 0x353   : > { %v3920_v17 = vsub.f32 %v8728_v6, %v3919_v50 }
 0x355   : > { %v8754_v53 = vpop.eup %7927  ;;  %v3921_v1 = vmul.f32 1.442695, %v3920_v17 }
 0x356   : > { %v3794_v60 = vsel %vm3526_vm2, %v8754_v53, 0.0 }
 0x357   : > { %3795 = vadd.xlane.f32.xlu1 %v3794_v60 }
 0x358   : > { %v3855_v31 = vpop.xlane.xlu1 %3854 }
 0x359   : > { %v3856_v58 = vsub.f32 %v3849_v16, %v3855_v31 }
 0x35b   : > { %v3857_v57 = vmul.f32 1.442695, %v3856_v58 }
 0x35d   : > { %7929 = vpow2.f32 %v3857_v57 }
 0x363   : > { %v7930_v46 = vpop.eup %7929 }
 0x364   : > { %v3859_v61 = vsel %vm3526_vm2, %v7930_v46, 0.0 }
 0x365   : > { %3860 = vadd.xlane.f32.xlu0 %v3859_v61 }
 0x370   : > { %v3984_v36 = vpop.xlane.xlu2 %3983  ;;  %v3869_v8 = vpop.permute.xlu1 %3868 }
 0x371   : > { %v3985_v5 = vsub.f32 %v3978_v55, %v3984_v36  ;;  %v3874_v13 = vsel %vm3542_vm1, %v3869_v8, 0 }
 0x373   : > { %v3986_v18 = vmul.f32 1.442695, %v3985_v5 }
 0x375   : > { %7931 = vpow2.f32 %v3986_v18 }
 0x376   : > { %7933 = vpow2.f32 %v3921_v1 }
 0x377   : > { %7935 = vpow2.f32 %v3663_v63  ;;  %v7128_v63 = vld [vmem:[#allocation18 + $0x2c0] sm:$0xf] }
 0x378   : > { %v3740_v51 = vpop.permute.xlu2 %3739 }
 0x379   : > { %v3745_v7 = vsel %vm3542_vm1, %v3740_v51, 0  ;;  %3997 = vrot.lane.b32.xlu0 %v3996_v2, %s8289_s23 }
 0x37a   : > { %3754 = vmatpush.bf16.msrb.mxu3 %v3745_v7  ;;  %v7144_v7 = vld [vmem:[#allocation18 + $0x2e0] sm:$0xf] }
 0x37b   : > { %v7932_v14 = vpop.eup %7931 }
 0x37c   : > { %v3988_v3 = vsel %vm3526_vm2, %v7932_v14, 0.0  ;;  %v8763_v49 = vpop.eup %7933 }
 0x37d   : > { %3989 = vadd.xlane.f32.xlu2 %v3988_v3  ;;  %v3923_v6 = vsel %vm3526_vm2, %v8763_v49, 0.0  ;;  %v7936_v0 = vpop.eup %7935  ;;  %v7272_v3 = vld [vmem:[#allocation18 + $0x3e0] sm:$0xf] }
 0x37e   : > { %v3665_v4 = vsel %vm3526_vm2, %v7936_v0, 0.0 }
 0x385   : > { %3924 = vadd.xlane.f32.xlu2 %v3923_v6  ;;  %v7803_v6 = vld [vmem:[#allocation18 + $0x3ec] sm:$0xf0] }
 0x386   : > { %v7273_v45 = vor.u32 %v7803_v6, %v7272_v3  ;;  %v7723_v3 = vld [vmem:[#allocation18 + $0x16c] sm:$0xf0] }
 0x387   : > { %v7747_v6 = vld [vmem:[#allocation18 + $0x22c] sm:$0xf0] }
 0x3a3   : > { %3666 = vadd.xlane.f32.xlu0 %v3665_v4  ;;  %v7256_v4 = vld [vmem:[#allocation18 + $0x3c0] sm:$0xf] }
 0x3b2   : > { %v3602_v9 = vpop.xlane.xlu0 %3601 }
 0x3b3   : > { %7937 = vrcp.f32 %v3602_v9  ;;  %v7799_v9 = vld [vmem:[#allocation18 + $0x3cc] sm:$0xf0] }
 0x3b9   : > { %v7938_v10 = vpop.eup %7937 }
 0x3ba   : > { %v3604_v11 = vmul.f32 %v7938_v10, %v7922_v38  ;;  %v3535_v12 = vpop.xlane.xlu1 %3534  ;;  %v7257_v10 = vor.u32 %v7799_v9, %v7256_v4  ;;  %v7176_v4 = vld [vmem:[#allocation18 + $0x320] sm:$0xf] }
 0x3bb   : > { %7939 = vrcp.f32 %v3535_v12  ;;  %v7707_v12 = vld [vmem:[#allocation18 + $0xec] sm:$0xf0]  ;;  %v6808_v9 = vld [vmem:[#allocation18 + $0x40] sm:$0xf] }
 0x3bc   : > { %v3605_v54 = vpack.c.bf16 %v3604_v11, %v3604_v11  ;;  %v6888_v11 = vld [vmem:[#allocation18 + $0xe0] sm:$0xf] }
 0x3be   : > { %6761 = vmatmul.msk.bf16.vlgmr.msra.gmra.mxu3 %vm3526_vm2, %v3605_v54  ;;  %v7016_v54 = vld [vmem:[#allocation18 + $0x1e0] sm:$0xf] }
 0x3bf   : > { %3883 = vmatpush.bf16.msra.mxu3 %v3874_v13  ;;  %v6889_v13 = vor.u32 %v7707_v12, %v6888_v11  ;;  %v7687_v11 = vld [vmem:[#allocation18 + $0x4c] sm:$0xf0]  ;;  %v6936_v12 = vld [vmem:[#allocation18 + $0x140] sm:$0xf] }
 0x3c1   : > { %v7940_v48 = vpop.eup %7939  ;;  %4818 = vmatpush.bf16.msra.mxu0 %v6889_v13  ;;  %v6809_v13 = vor.u32 %v7687_v11, %v6808_v9  ;;  %v7753_v11 = vld [vmem:[#allocation18 + $0x264] sm:$0xf] }
 0x3c2   : > { %v3537_v15 = vmul.f32 %v7940_v48, %v7924_v43  ;;  %v3732_v16 = vpop.xlane.xlu0 %3731  ;;  %v7739_v48 = vld [vmem:[#allocation18 + $0x1ec] sm:$0xf0] }
 0x3c3   : > { %7941 = vrcp.f32 %v3732_v16  ;;  %v7763_v16 = vld [vmem:[#allocation18 + $0x2ac] sm:$0xf0]  ;;  %v7017_v19 = vor.u32 %v7739_v48, %v7016_v54 }
 0x3c4   : > { %v3538_v22 = vpack.c.bf16 %v3537_v15, %v3537_v15  ;;  %v7112_v15 = vld [vmem:[#allocation18 + $0x2a0] sm:$0xf]  ;;  %v7719_v54 = vld [vmem:[#allocation18 + $0x14c] sm:$0xf0] }
 0x3c5   : > { %v6937_v48 = vor.u32 %v7719_v54, %v6936_v12  ;;  %v7082_v12 = vld [vmem:[#allocation18 + $0x270] sm:$0xf0] }
 0x3c6   : > { %6759 = vmatmul.msk.bf16.vlgmr.msra.gmra.mxu1 %vm3526_vm2, %v3538_v22  ;;  %v7113_v22 = vor.u32 %v7763_v16, %v7112_v15  ;;  %v7032_v15 = vld [vmem:[#allocation18 + $0x200] sm:$0xf]  ;;  %v7743_v16 = vld [vmem:[#allocation18 + $0x20c] sm:$0xf0] }
 0x3c7   : > { %3813 = vmatpush.bf16.msra.mxu1 %v3804_v23  ;;  %v7240_v23 = vld [vmem:[#allocation18 + $0x3a0] sm:$0xf] }
 0x3c9   : > { %v7942_v24 = vpop.eup %7941 }
 0x3ca   : > { %v3734_v55 = vmul.f32 %v7942_v24, %v8750_v59  ;;  %v3796_v43 = vpop.xlane.xlu1 %3795  ;;  %v7795_v24 = vld [vmem:[#allocation18 + $0x3ac] sm:$0xf0] }
 0x3cc   : > { %v3735_v32 = vpack.c.bf16 %v3734_v55, %v3734_v55  ;;  %v7241_v55 = vor.u32 %v7795_v24, %v7240_v23  ;;  %v7775_v23 = vld [vmem:[#allocation18 + $0x30c] sm:$0xf0]  ;;  %v7769_v24 = vld [vmem:[#allocation18 + $0x2e4] sm:$0xf] }
 0x3ce   : > { %6765 = vmatmul.msk.bf16.vlgmr.msrb.gmra.mxu3 %vm3526_vm2, %v3735_v32  ;;  %v6872_v32 = vld [vmem:[#allocation18 + $0xc0] sm:$0xf] }
 0x3d8   : > { %v3861_v25 = vpop.xlane.xlu0 %3860 }
 0x3d9   : > { %7943 = vrcp.f32 %v3861_v25  ;;  %v7703_v25 = vld [vmem:[#allocation18 + $0xcc] sm:$0xf0] }
 0x3df   : > { %v7944_v26 = vpop.eup %7943 }
 0x3e0   : > { %v3863_v21 = vmul.f32 %v7944_v26, %v7930_v46  ;;  %v7000_v26 = vld [vmem:[#allocation18 + $0x1c0] sm:$0xf] }
 0x3e2   : > { %v3864_v27 = vpack.c.bf16 %v3863_v21, %v3863_v21  ;;  %v6873_v21 = vor.u32 %v7703_v25, %v6872_v32 }
 0x3e4   : > { %6769 = vmatmul.msk.bf16.vlgmr.msra.gmra.mxu3 %vm3526_vm2, %v3864_v27  ;;  %v7735_v27 = vld [vmem:[#allocation18 + $0x1cc] sm:$0xf0]  ;;  %4819 = vmatpush.bf16.msra.mxu0 %v6873_v21  ;;  %v7274_v21 = vld [vmem:[#allocation18 + $0x3f0] sm:$0xf0] }
 0x3eb   : > { %v3998_v34 = vpop.permute.xlu0 %3997 }
 0x3ec   : > { %v4003_v28 = vsel %vm3542_vm1, %v3998_v34, 0  ;;  %v7096_v34 = vld [vmem:[#allocation18 + $0x280] sm:$0xf] }
 0x3ed   : > { %4012 = vmatpush.bf16.msrb.mxu3 %v4003_v28  ;;  %v7759_v28 = vld [vmem:[#allocation18 + $0x28c] sm:$0xf0] }
 0x3f0   : > { %v3990_v29 = vpop.xlane.xlu2 %3989 }
 0x3f1   : > { %7945 = vrcp.f32 %v3990_v29  ;;  %4857 = vmatpush.bf16.msra.mxu3 %v7273_v45  ;;  %v7001_v29 = vor.u32 %v7735_v27, %v7000_v26  ;;  %v7801_v26 = vld [vmem:[#allocation18 + $0x3e4] sm:$0xf]  ;;  %v6792_v27 = vld [vmem:[#allocation18 + $0x20] sm:$0xf] }
 0x3f5   : > { %4858 = vmatpush.bf16.msra.mxu3 %v7257_v10 }
 0x3f7   : > { %v7946_v30 = vpop.eup %7945 }
 0x3f8   : > { %v3992_v56 = vmul.f32 %v7946_v30, %v7932_v14  ;;  %v3925_v35 = vpop.xlane.xlu2 %3924  ;;  %v7771_v14 = vld [vmem:[#allocation18 + $0x2ec] sm:$0xf0]  ;;  %v7097_v30 = vor.u32 %v7759_v28, %v7096_v34  ;;  %v7277_v34 = vor.u32 %v7801_v26, %v7274_v21 }
 0x3f9   : > { %4859 = vmatpush.bf16.msra.mxu3 %v7241_v55  ;;  %v7146_v55 = vld [vmem:[#allocation18 + $0x2f0] sm:$0xf0]  ;;  %v7683_v28 = vld [vmem:[#allocation18 + $0x2c] sm:$0xf0] }
 0x3fa   : > { %v3993_v38 = vpack.c.bf16 %v3992_v56, %v3992_v56  ;;  %v7224_v56 = vld [vmem:[#allocation18 + $0x380] sm:$0xf]  ;;  %v7149_v25 = vor.u32 %v7769_v24, %v7146_v55  ;;  %v7693_v55 = vld [vmem:[#allocation18 + $0x84] sm:$0xf] }
 0x3fc   : > { %6773 = vmatmul.msk.bf16.vlgmr.msrb.gmra.mxu3 %vm3526_vm2, %v3993_v38  ;;  %v7791_v38 = vld [vmem:[#allocation18 + $0x38c] sm:$0xf0] }
 0x416   : > { %v3667_v37 = vpop.xlane.xlu0 %3666 }
 0x417   : > { %7947 = vrcp.f32 %v3667_v37  ;;  %v7225_v37 = vor.u32 %v7791_v38, %v7224_v56  ;;  %v6793_v56 = vor.u32 %v7683_v28, %v6792_v27  ;;  %v6970_v27 = vld [vmem:[#allocation18 + $0x190] sm:$0xf0] }
 0x418   : > { %7949 = vrcp.f32 %v3796_v43  ;;  %v7066_v28 = vld [vmem:[#allocation18 + $0x250] sm:$0xf0] }
 0x419   : > { %7951 = vrcp.f32 %v3925_v35  ;;  %4860 = vmatpush.bf16.msra.mxu3 %v7225_v37  ;;  %v7765_v37 = vld [vmem:[#allocation18 + $0x2c4] sm:$0xf] }
 0x41d   : > { %v7948_v40 = vpop.eup %7947 }
 0x41e   : > { %v3669_v41 = vmul.f32 %v7948_v40, %v7936_v0  ;;  %v7950_v47 = vpop.eup %7949  ;;  %v7767_v0 = vld [vmem:[#allocation18 + $0x2cc] sm:$0xf0]  ;;  %v6856_v40 = vld [vmem:[#allocation18 + $0xa0] sm:$0xf] }
 0x41f   : > { %v3798_v39 = vmul.f32 %v7950_v47, %v8754_v53  ;;  %v7952_v52 = vpop.eup %7951  ;;  %v7129_v8 = vor.u32 %v7767_v0, %v7128_v63  ;;  %v7755_v47 = vld [vmem:[#allocation18 + $0x26c] sm:$0xf0] }
 0x420   : > { %v3670_v33 = vpack.c.bf16 %v3669_v41, %v3669_v41  ;;  %v3927_v31 = vmul.f32 %v7952_v52, %v8763_v49  ;;  %v7145_v49 = vor.u32 %v7771_v14, %v7144_v7  ;;  %v7699_v41 = vld [vmem:[#allocation18 + $0xac] sm:$0xf0]  ;;  %v7208_v52 = vld [vmem:[#allocation18 + $0x360] sm:$0xf] }
 0x421   : > { %v3799_v59 = vpack.c.bf16 %v3798_v39, %v3798_v39  ;;  %v6857_v43 = vor.u32 %v7699_v41, %v6856_v40  ;;  %v6952_v7 = vld [vmem:[#allocation18 + $0x160] sm:$0xf]  ;;  %v7130_v40 = vld [vmem:[#allocation18 + $0x2d0] sm:$0xf0]  ;;  %v7797_v41 = vld [vmem:[#allocation18 + $0x3c4] sm:$0xf] }
 0x422   : > { %6763 = vmatmul.msk.bf16.vlgmr.msrb.gmra.mxu1 %vm3526_vm2, %v3670_v33  ;;  %v3928_v58 = vpack.c.bf16 %v3927_v31, %v3927_v31  ;;  %4844 = vmatpush.bf16.msra.mxu2 %v7145_v49  ;;  %v7731_v33 = vld [vmem:[#allocation18 + $0x1ac] sm:$0xf0]  ;;  %v7048_v49 = vld [vmem:[#allocation18 + $0x220] sm:$0xf]  ;;  %v6953_v63 = vor.u32 %v7723_v3, %v6952_v7  ;;  %v7002_v7 = vld [vmem:[#allocation18 + $0x1d0] sm:$0xf0] }
 0x423   : > { %3942 = vmatpush.bf16.msrb.mxu1 %v3933_v44  ;;  %v7080_v44 = vld [vmem:[#allocation18 + $0x260] sm:$0xf]  ;;  %v7787_v31 = vld [vmem:[#allocation18 + $0x36c] sm:$0xf0]  ;;  %4820 = vmatpush.bf16.msra.mxu0 %v6857_v43  ;;  %v7049_v0 = vor.u32 %v7747_v6, %v7048_v49  ;;  %v7098_v3 = vld [vmem:[#allocation18 + $0x290] sm:$0xf0] }
 0x424   : > { %v7081_v35 = vor.u32 %v7755_v47, %v7080_v44  ;;  %v6776_v43 = vld [vmem:[#allocation18] sm:$0xf]  ;;  %v7133_v47 = vor.u32 %v7765_v37, %v7130_v40  ;;  %v7789_v49 = vld [vmem:[#allocation18 + $0x384] sm:$0xf]  ;;  %v7194_v37 = vld [vmem:[#allocation18 + $0x350] sm:$0xf0] }
 0x425   : > { %v7689_v40 = vld [vmem:[#allocation18 + $0x64] sm:$0xf] }
 0x426   : > { %4845 = vmatpush.bf16.msra.mxu2 %v7129_v8  ;;  %v7779_v8 = vld [vmem:[#allocation18 + $0x32c] sm:$0xf0] }
 0x427   : > { %v7177_v10 = vor.u32 %v7779_v8, %v7176_v4  ;;  %v6858_v4 = vld [vmem:[#allocation18 + $0xb0] sm:$0xf0] }
 0x42a   : > { %4846 = vmatpush.bf16.msra.mxu2 %v7113_v22  ;;  %v7033_v22 = vor.u32 %v7743_v16, %v7032_v15  ;;  %v7210_v15 = vld [vmem:[#allocation18 + $0x370] sm:$0xf0]  ;;  %v7085_v16 = vor.u32 %v7753_v11, %v7082_v12  ;;  %v7152_v11 = vld [vmem:[#allocation18 + $0x2e8] sm:$0xf] }
 0x42e   : > { %4847 = vmatpush.bf16.msra.mxu2 %v7097_v30  ;;  %v7715_v30 = vld [vmem:[#allocation18 + $0x12c] sm:$0xf0] }
 0x432   : > { %6767 = vmatmul.msk.bf16.vlgmr.msra.gmra.mxu1 %vm3526_vm2, %v3799_v59  ;;  %v6985_v59 = vor.u32 %v7731_v33, %v6984_v42  ;;  %4848 = vmatpush.bf16.msra.mxu2 %v7081_v35  ;;  %v7258_v42 = vld [vmem:[#allocation18 + $0x3d0] sm:$0xf0]  ;;  %v7679_v33 = vld [vmem:[#allocation18 + $0xc] sm:$0xf0] }
 0x433   : > { %4831 = vmatpush.bf16.msra.mxu1 %v7017_v19  ;;  %v7160_v19 = vld [vmem:[#allocation18 + $0x300] sm:$0xf]  ;;  %v7711_v35 = vld [vmem:[#allocation18 + $0x10c] sm:$0xf0] }
 0x434   : > { %v7161_v32 = vor.u32 %v7775_v23, %v7160_v19  ;;  %v6986_v23 = vld [vmem:[#allocation18 + $0x1b0] sm:$0xf0] }
 0x437   : > { %4832 = vmatpush.bf16.msra.mxu1 %v7001_v29  ;;  %v6920_v29 = vld [vmem:[#allocation18 + $0x120] sm:$0xf] }
 0x438   : > { %v6921_v38 = vor.u32 %v7715_v30, %v6920_v29 }
 0x43b   : > { %4833 = vmatpush.bf16.msra.mxu1 %v6985_v59  ;;  %v6904_v59 = vld [vmem:[#allocation18 + $0x100] sm:$0xf] }
 0x441   : > { %v3626_v60 = vpop.f32.mrf.mxu3 }
 0x442   : > { %6771 = vmatmul.msk.bf16.vlgmr.msrb.gmra.mxu1 %vm3526_vm2, %v3928_v58  ;;  %v3630_v57 = vpack.c.bf16 %v3626_v60, %v3626_v60  ;;  %v7209_v60 = vor.u32 %v7787_v31, %v7208_v52  ;;  %v7705_v52 = vld [vmem:[#allocation18 + $0xe4] sm:$0xf] }
 0x443   : > { %v3555_v46 = vpop.f32.mrf.mxu1 }
 0x444   : > { %v3559_v61 = vpack.c.bf16 %v3555_v46, %v3555_v46  ;;  %3632 = vrot.lane.b32.xlu0 %v3630_v57, %s8289_s23  ;;  %v6840_v57 = vld [vmem:[#allocation18 + $0x80] sm:$0xf]  ;;  %v7695_v46 = vld [vmem:[#allocation18 + $0x8c] sm:$0xf0]  ;;  %4861 = vmatpush.bf16.msra.mxu3 %v7209_v60  ;;  %v6890_v60 = vld [vmem:[#allocation18 + $0xf0] sm:$0xf0] }
 0x446   : > { %3561 = vst.msk [vmem:[#allocation5] sm:$0xf] %vm3560_vm3, %v3559_v61  ;;  %v6968_v61 = vld [vmem:[#allocation18 + $0x180] sm:$0xf] }
 0x449   : > { %v3628_v53 = vpop.f32.mrf.mxu3 }
 0x44a   : > { %v6841_v53 = vor.u32 %v7695_v46, %v6840_v57  ;;  %v7737_v57 = vld [vmem:[#allocation18 + $0x1e4] sm:$0xf]  ;;  %v7018_v46 = vld [vmem:[#allocation18 + $0x1f0] sm:$0xf0] }
 0x44b   : > { %v3557_v62 = vpop.f32.mrf.mxu1 }
 0x44c   : > { %v7727_v62 = vld [vmem:[#allocation18 + $0x18c] sm:$0xf0]  ;;  %4821 = vmatpush.bf16.msra.mxu0 %v6841_v53  ;;  %v6893_v53 = vor.u32 %v7705_v52, %v6890_v60  ;;  %v7777_v52 = vld [vmem:[#allocation18 + $0x324] sm:$0xf] }
 0x44d   : > { %v7685_v60 = vld [vmem:[#allocation18 + $0x44] sm:$0xf] }
 0x451   : > { %v3756_v50 = vpop.f32.mrf.mxu3 }
 0x452   : > { %v3760_v20 = vpack.c.bf16 %v3756_v50, %v3756_v50  ;;  %v7064_v50 = vld [vmem:[#allocation18 + $0x240] sm:$0xf] }
 0x459   : > { %v3758_v36 = vpop.f32.mrf.mxu3 }
 0x45a   : > { %v6969_v36 = vor.u32 %v7727_v62, %v6968_v61  ;;  %v6905_v61 = vor.u32 %v7711_v35, %v6904_v59  ;;  %v7761_v62 = vld [vmem:[#allocation18 + $0x2a4] sm:$0xf] }
 0x45c   : > { %4834 = vmatpush.bf16.msra.mxu1 %v6969_v36  ;;  %v7793_v36 = vld [vmem:[#allocation18 + $0x3a4] sm:$0xf] }
 0x460   : > { %4835 = vmatpush.bf16.msra.mxu1 %v6953_v63 }
 0x464   : > { %4836 = vmatpush.bf16.msra.mxu1 %v6937_v48  ;;  %v7785_v48 = vld [vmem:[#allocation18 + $0x364] sm:$0xf] }
 0x465   : > { %v7213_v19 = vor.u32 %v7785_v48, %v7210_v15  ;;  %v7804_v48 = vld [vmem:[#allocation18 + $0x3f4] sm:$0xf0] }
 0x467   : > { %v3885_v5 = vpop.f32.mrf.mxu3 }
 0x468   : > { %v3889_v17 = vpack.c.bf16 %v3885_v5, %v3885_v5  ;;  %v7751_v5 = vld [vmem:[#allocation18 + $0x24c] sm:$0xf0]  ;;  %4837 = vmatpush.bf16.msra.mxu1 %v6921_v38  ;;  %v7781_v38 = vld [vmem:[#allocation18 + $0x344] sm:$0xf] }
 0x46a   : > { %3891 = vrot.lane.b32.xlu1 %v3889_v17, %s8289_s23  ;;  %v7192_v17 = vld [vmem:[#allocation18 + $0x340] sm:$0xf] }
 0x46c   : > { %4838 = vmatpush.bf16.msra.mxu1 %v6905_v61 }
 0x46f   : > { %v3887_v18 = vpop.f32.mrf.mxu3 }
 0x470   : > { %v7783_v18 = vld [vmem:[#allocation18 + $0x34c] sm:$0xf0] }
 0x472   : > { %3762 = vrot.lane.b32.xlu1 %v3760_v20, %s8289_s23  ;;  %v7065_v20 = vor.u32 %v7751_v5, %v7064_v50  ;;  %v7114_v50 = vld [vmem:[#allocation18 + $0x2b0] sm:$0xf0]  ;;  %v7021_v5 = vor.u32 %v7737_v57, %v7018_v46  ;;  %v7717_v46 = vld [vmem:[#allocation18 + $0x144] sm:$0xf] }
 0x473   : > { %v6810_v57 = vld [vmem:[#allocation18 + $0x50] sm:$0xf0] }
 0x474   : > { %4849 = vmatpush.bf16.msra.mxu2 %v7065_v20  ;;  %v7117_v20 = vor.u32 %v7761_v62, %v7114_v50  ;;  %4883 = vmatpush.bf16.msrb.mxu1 %v7021_v5  ;;  %v6813_v61 = vor.u32 %v7685_v60, %v6810_v57  ;;  %v7741_v62 = vld [vmem:[#allocation18 + $0x204] sm:$0xf]  ;;  %v7034_v50 = vld [vmem:[#allocation18 + $0x210] sm:$0xf0]  ;;  %v7008_v60 = vld [vmem:[#allocation18 + $0x1c8] sm:$0xf] }
 0x475   : > { %v7736_v57 = vld [vmem:[#allocation18 + $0x1d4] sm:$0xf0] }
 0x478   : > { %4850 = vmatpush.bf16.msra.mxu2 %v7049_v0  ;;  %v7697_v0 = vld [vmem:[#allocation18 + $0xa4] sm:$0xf] }
 0x47c   : > { %4851 = vmatpush.bf16.msra.mxu2 %v7033_v22  ;;  %v7729_v22 = vld [vmem:[#allocation18 + $0x1a4] sm:$0xf] }
 0x47d   : > { %v6989_v24 = vor.u32 %v7729_v22, %v6986_v23 }
 0x47f   : > { %v4014_v1 = vpop.f32.mrf.mxu3 }
 0x480   : > { %v4018_v2 = vpack.c.bf16 %v4014_v1, %v4014_v1  ;;  %v7193_v1 = vor.u32 %v7783_v18, %v7192_v17  ;;  %4896 = vmatpush.bf16.msrb.mxu2 %v7149_v25  ;;  %v7242_v17 = vld [vmem:[#allocation18 + $0x3b0] sm:$0xf0]  ;;  %v7701_v18 = vld [vmem:[#allocation18 + $0xc4] sm:$0xf] }
 0x481   : > { %v7725_v25 = vld [vmem:[#allocation18 + $0x184] sm:$0xf] }
 0x482   : > { %4020 = vrot.lane.b32.xlu2 %v4018_v2, %s8289_s23  ;;  %v6824_v2 = vld [vmem:[#allocation18 + $0x60] sm:$0xf]  ;;  %4862 = vmatpush.bf16.msra.mxu3 %v7193_v1  ;;  %v7245_v1 = vor.u32 %v7793_v36, %v7242_v17  ;;  %v6973_v30 = vor.u32 %v7725_v25, %v6970_v27  ;;  %v7037_v17 = vor.u32 %v7741_v62, %v7034_v50  ;;  %v7768_v25 = vld [vmem:[#allocation18 + $0x2d4] sm:$0xf0]  ;;  %v6896_v27 = vld [vmem:[#allocation18 + $0xe8] sm:$0xf] }
 0x483   : > { %v7792_v62 = vld [vmem:[#allocation18 + $0x394] sm:$0xf0] }
 0x484   : > { %4897 = vmatpush.bf16.msrb.mxu2 %v7133_v47  ;;  %v7721_v47 = vld [vmem:[#allocation18 + $0x164] sm:$0xf] }
 0x486   : > { %4863 = vmatpush.bf16.msra.mxu3 %v7177_v10 }
 0x487   : > { %v4016_v51 = vpop.f32.mrf.mxu3 }
 0x488   : > { %v7691_v51 = vld [vmem:[#allocation18 + $0x6c] sm:$0xf0]  ;;  %4898 = vmatpush.bf16.msrb.mxu2 %v7117_v20  ;;  %v7162_v20 = vld [vmem:[#allocation18 + $0x310] sm:$0xf0] }
 0x489   : > { %v6825_v14 = vor.u32 %v7691_v51, %v6824_v2  ;;  %v6874_v2 = vld [vmem:[#allocation18 + $0xd0] sm:$0xf0]  ;;  %v7733_v51 = vld [vmem:[#allocation18 + $0x1c4] sm:$0xf] }
 0x48a   : > { %4864 = vmatpush.bf16.msra.mxu3 %v7161_v32  ;;  %v6877_v6 = vor.u32 %v7701_v18, %v6874_v2  ;;  %v7005_v63 = vor.u32 %v7733_v51, %v7002_v7  ;;  %v6842_v32 = vld [vmem:[#allocation18 + $0x90] sm:$0xf0]  ;;  %v7773_v18 = vld [vmem:[#allocation18 + $0x304] sm:$0xf] }
 0x48b   : > { %4822 = vmatpush.bf16.msra.mxu0 %v6825_v14  ;;  %v7757_v14 = vld [vmem:[#allocation18 + $0x284] sm:$0xf]  ;;  %v6845_v21 = vor.u32 %v7693_v55, %v6842_v32  ;;  %v6794_v51 = vld [vmem:[#allocation18 + $0x30] sm:$0xf0] }
 0x48c   : > { %v7101_v9 = vor.u32 %v7757_v14, %v7098_v3  ;;  %4884 = vmatpush.bf16.msrb.mxu1 %v7005_v63  ;;  %v7681_v2 = vld [vmem:[#allocation18 + $0x24] sm:$0xf]  ;;  %v6922_v3 = vld [vmem:[#allocation18 + $0x130] sm:$0xf0] }
 0x48d   : > { %v7713_v7 = vld [vmem:[#allocation18 + $0x124] sm:$0xf]  ;;  %v6797_v14 = vor.u32 %v7681_v2, %v6794_v51  ;;  %v7732_v2 = vld [vmem:[#allocation18 + $0x1b4] sm:$0xf0]  ;;  %v7088_v51 = vld [vmem:[#allocation18 + $0x268] sm:$0xf] }
 0x48e   : > { %4909 = vmatpush.bf16.msrb.mxu3 %v7277_v34  ;;  %4899 = vmatpush.bf16.msrb.mxu2 %v7101_v9  ;;  %v7749_v34 = vld [vmem:[#allocation18 + $0x244] sm:$0xf] }
 0x48f   : > { %4823 = vmatpush.bf16.msra.mxu0 %v6809_v13  ;;  %v6861_v13 = vor.u32 %v7697_v0, %v6858_v4  ;;  %v7709_v63 = vld [vmem:[#allocation18 + $0x104] sm:$0xf]  ;;  %v6906_v4 = vld [vmem:[#allocation18 + $0x110] sm:$0xf0] }
 0x490   : > { %4885 = vmatpush.bf16.msrb.mxu1 %v6989_v24  ;;  %v7136_v24 = vld [vmem:[#allocation18 + $0x2c8] sm:$0xf] }
 0x492   : > { %4900 = vmatpush.bf16.msrb.mxu2 %v7085_v16 }
 0x493   : > { %4824 = vmatpush.bf16.msra.mxu0 %v6793_v56  ;;  %v7069_v56 = vor.u32 %v7749_v34, %v7066_v28  ;;  %v7708_v34 = vld [vmem:[#allocation18 + $0xf4] sm:$0xf0]  ;;  %v7024_v28 = vld [vmem:[#allocation18 + $0x1e8] sm:$0xf] }
 0x494   : > { %4886 = vmatpush.bf16.msrb.mxu1 %v6973_v30 }
 0x496   : > { %4901 = vmatpush.bf16.msrb.mxu2 %v7069_v56  ;;  %v7740_v56 = vld [vmem:[#allocation18 + $0x1f4] sm:$0xf0] }
 0x49f   : > { %v3686_v39 = vpop.f32.mrf.mxu1 }
 0x4a0   : > { %v3690_v58 = vpack.c.bf16 %v3686_v39, %v3686_v39  ;;  %v7261_v39 = vor.u32 %v7797_v41, %v7258_v42  ;;  %v7197_v41 = vor.u32 %v7781_v38, %v7194_v37  ;;  %v6826_v42 = vld [vmem:[#allocation18 + $0x70] sm:$0xf0]  ;;  %v7120_v38 = vld [vmem:[#allocation18 + $0x2a8] sm:$0xf]  ;;  %v7764_v37 = vld [vmem:[#allocation18 + $0x2b4] sm:$0xf0] }
 0x4a2   : > { %3691 = vst.msk [vmem:[#allocation5 + $0x4] sm:$0xf] %vm3560_vm3, %v3690_v58  ;;  %v6777_v58 = vor.u32 %v7679_v33, %v6776_v43  ;;  %4910 = vmatpush.bf16.msrb.mxu3 %v7261_v39  ;;  %v7745_v43 = vld [vmem:[#allocation18 + $0x224] sm:$0xf]  ;;  %v7050_v33 = vld [vmem:[#allocation18 + $0x230] sm:$0xf0] }
 0x4a3   : > { %v6954_v39 = vld [vmem:[#allocation18 + $0x170] sm:$0xf0]  ;;  %v7053_v59 = vor.u32 %v7745_v43, %v7050_v33 }
 0x4a4   : > { %4825 = vmatpush.bf16.msra.mxu0 %v6777_v58  ;;  %v6957_v35 = vor.u32 %v7721_v47, %v6954_v39  ;;  %v7025_v47 = vor.u32 %v7740_v56, %v7024_v28  ;;  %v7121_v39 = vor.u32 %v7764_v37, %v7120_v38  ;;  %v6944_v56 = vld [vmem:[#allocation18 + $0x148] sm:$0xf] }
 0x4a5   : > { %4902 = vmatpush.bf16.msrb.mxu2 %v7053_v59  ;;  %v6880_v59 = vld [vmem:[#allocation18 + $0xc8] sm:$0xf] }
 0x4a6   : > { %4911 = vmatpush.bf16.msrb.mxu3 %v7245_v1  ;;  %4887 = vmatpush.bf16.msrb.mxu1 %v6957_v35  ;;  %v7165_v1 = vor.u32 %v7773_v18, %v7162_v20  ;;  %v7704_v35 = vld [vmem:[#allocation18 + $0xd4] sm:$0xf0]  ;;  %v6864_v18 = vld [vmem:[#allocation18 + $0xa8] sm:$0xf] }
 0x4a7   : > { %v3688_v45 = vpop.f32.mrf.mxu1  ;;  %v6881_v50 = vor.u32 %v7704_v35, %v6880_v59  ;;  %v7700_v20 = vld [vmem:[#allocation18 + $0xb4] sm:$0xf0]  ;;  %v7282_v59 = vld [vmem:[#allocation18 + $0x3f8] sm:$0xf0] }
 0x4a8   : > { %4870 = vmatpush.bf16.msrb.mxu0 %v6893_v53  ;;  %v7226_v45 = vld [vmem:[#allocation18 + $0x390] sm:$0xf0] }
 0x4a9   : > { %v7229_v10 = vor.u32 %v7789_v49, %v7226_v45  ;;  %v6938_v53 = vld [vmem:[#allocation18 + $0x150] sm:$0xf0]  ;;  %4903 = vmatpush.bf16.msrb.mxu2 %v7037_v17  ;;  %v6925_v49 = vor.u32 %v7713_v7, %v6922_v3  ;;  %v7756_v7 = vld [vmem:[#allocation18 + $0x274] sm:$0xf0] }
 0x4aa   : > { %v6941_v5 = vor.u32 %v7717_v46, %v6938_v53  ;;  %v6778_v45 = vld [vmem:[#allocation18 + $0x10] sm:$0xf0]  ;;  %v7104_v46 = vld [vmem:[#allocation18 + $0x288] sm:$0xf]  ;;  %v7788_v3 = vld [vmem:[#allocation18 + $0x374] sm:$0xf0] }
 0x4ab   : > { %4912 = vmatpush.bf16.msrb.mxu3 %v7229_v10  ;;  %v7232_v53 = vld [vmem:[#allocation18 + $0x388] sm:$0xf] }
 0x4ac   : > { %4871 = vmatpush.bf16.msrb.mxu0 %v6877_v6  ;;  %4888 = vmatpush.bf16.msrb.mxu1 %v6941_v5  ;;  %v7677_v6 = vld [vmem:[#allocation18 + $0x4] sm:$0xf]  ;;  %v7233_v17 = vor.u32 %v7792_v62, %v7232_v53  ;;  %v6928_v53 = vld [vmem:[#allocation18 + $0x128] sm:$0xf]  ;;  %v7716_v62 = vld [vmem:[#allocation18 + $0x134] sm:$0xf0] }
 0x4ad   : > { %v6781_v0 = vor.u32 %v7677_v6, %v6778_v45  ;;  %v6848_v45 = vld [vmem:[#allocation18 + $0x88] sm:$0xf] }
 0x4af   : > { %v3815_v44 = vpop.f32.mrf.mxu1  ;;  %4913 = vmatpush.bf16.msrb.mxu3 %v7213_v19 }
 0x4b0   : > { %v3819_v31 = vpack.c.bf16 %v3815_v44, %v3815_v44  ;;  %4872 = vmatpush.bf16.msrb.mxu0 %v6861_v13  ;;  %v6829_v44 = vor.u32 %v7689_v40, %v6826_v42  ;;  %4889 = vmatpush.bf16.msrb.mxu1 %v6925_v49  ;;  %v7280_v13 = vld [vmem:[#allocation18 + $0x3e8] sm:$0xf]  ;;  %v7796_v42 = vld [vmem:[#allocation18 + $0x3b4] sm:$0xf0]  ;;  %v6865_v49 = vor.u32 %v7700_v20, %v6864_v18  ;;  %v7798_v18 = vld [vmem:[#allocation18 + $0x3cc] sm:$0xf] }
 0x4b1   : > { %v7281_v23 = vor.u32 %v7804_v48, %v7280_v13  ;;  %v7266_v20 = vld [vmem:[#allocation18 + $0x3d8] sm:$0xf0] }
 0x4b2   : > { %3820 = vst.msk [vmem:[#allocation5 + $0x8] sm:$0xf] %vm3560_vm3, %v3819_v31  ;;  %v7178_v31 = vld [vmem:[#allocation18 + $0x330] sm:$0xf0] }
 0x4b3   : > { %4914 = vmatpush.bf16.msrb.mxu3 %v7197_v41  ;;  %v7181_v58 = vor.u32 %v7777_v52, %v7178_v31  ;;  %v7248_v41 = vld [vmem:[#allocation18 + $0x3a8] sm:$0xf] }
 0x4b4   : > { %4873 = vmatpush.bf16.msrb.mxu0 %v6845_v21  ;;  %v7800_v21 = vld [vmem:[#allocation18 + $0x3d4] sm:$0xf0] }
 0x4b6   : > { %v3633_v54 = vpop.permute.xlu0 %3632 }
 0x4b7   : > { %v3817_v8 = vpop.f32.mrf.mxu1  ;;  %3636 = vst.msk [vmem:[#allocation5] sm:$0xf] %vm3635_vm4, %v3633_v54  ;;  %4915 = vmatpush.bf16.msrb.mxu3 %v7181_v58  ;;  %v7772_v54 = vld [vmem:[#allocation18 + $0x2f4] sm:$0xf0]  ;;  %v7249_v58 = vor.u32 %v7796_v42, %v7248_v41  ;;  %v7040_v41 = vld [vmem:[#allocation18 + $0x208] sm:$0xf] }
 0x4b8   : > { %4874 = vmatpush.bf16.msrb.mxu0 %v6829_v44  ;;  %v6909_v8 = vor.u32 %v7709_v63, %v6906_v4  ;;  %v7153_v22 = vor.u32 %v7772_v54, %v7152_v11  ;;  %v6897_v44 = vor.u32 %v7708_v34, %v6896_v27  ;;  %v7696_v63 = vld [vmem:[#allocation18 + $0x94] sm:$0xf0] }
 0x4b9   : > { %v7752_v11 = vld [vmem:[#allocation18 + $0x254] sm:$0xf0]  ;;  %v6849_v13 = vor.u32 %v7696_v63, %v6848_v45  ;;  %v7269_v63 = vor.u32 %v7798_v18, %v7266_v20 }
 0x4ba   : > { %4890 = vmatpush.bf16.msrb.mxu1 %v6909_v8  ;;  %v6976_v8 = vld [vmem:[#allocation18 + $0x188] sm:$0xf]  ;;  %v7784_v54 = vld [vmem:[#allocation18 + $0x354] sm:$0xf0] }
 0x4bb   : > { %4916 = vmatpush.bf16.msrb.mxu3 %v7165_v1  ;;  %v6992_v1 = vld [vmem:[#allocation18 + $0x1a8] sm:$0xf]  ;;  %v7780_v27 = vld [vmem:[#allocation18 + $0x334] sm:$0xf0] }
 0x4bc   : > { %4875 = vmatpush.bf16.msrb.mxu0 %v6813_v61  ;;  %v7760_v61 = vld [vmem:[#allocation18 + $0x294] sm:$0xf0]  ;;  %v6993_v6 = vor.u32 %v7732_v2, %v6992_v1  ;;  %v6929_v2 = vor.u32 %v7716_v62, %v6928_v53  ;;  %v7782_v53 = vld [vmem:[#allocation18 + $0x34c] sm:$0xf]  ;;  %v7202_v62 = vld [vmem:[#allocation18 + $0x358] sm:$0xf0] }
 0x4bd   : > { %v7105_v5 = vor.u32 %v7760_v61, %v7104_v46  ;;  %v7744_v42 = vld [vmem:[#allocation18 + $0x214] sm:$0xf0]  ;;  %v7205_v20 = vor.u32 %v7782_v53, %v7202_v62 }
 0x4be   : > { %v7684_v61 = vld [vmem:[#allocation18 + $0x34] sm:$0xf0] }
 0x4bf   : > { %v3944_v26 = vpop.f32.mrf.mxu1 }
 0x4c0   : > { %v3948_v29 = vpack.c.bf16 %v3944_v26, %v3944_v26  ;;  %4876 = vmatpush.bf16.msrb.mxu0 %v6797_v14  ;;  %v7264_v26 = vld [vmem:[#allocation18 + $0x3c8] sm:$0xf] }
 0x4c1   : > { %v7265_v30 = vor.u32 %v7800_v21, %v7264_v26  ;;  %v7216_v14 = vld [vmem:[#allocation18 + $0x368] sm:$0xf]  ;;  %v7748_v26 = vld [vmem:[#allocation18 + $0x234] sm:$0xf0] }
 0x4c2   : > { %3949 = vst.msk [vmem:[#allocation5 + $0xc] sm:$0xf] %vm3560_vm3, %v3948_v29  ;;  %v7137_v29 = vor.u32 %v7768_v25, %v7136_v24  ;;  %v7217_v4 = vor.u32 %v7788_v3, %v7216_v14  ;;  %v7724_v24 = vld [vmem:[#allocation18 + $0x174] sm:$0xf0]  ;;  %v7056_v25 = vld [vmem:[#allocation18 + $0x228] sm:$0xf] }
 0x4c3   : > { %v7184_v21 = vld [vmem:[#allocation18 + $0x328] sm:$0xf]  ;;  %v7057_v38 = vor.u32 %v7748_v26, %v7056_v25  ;;  %v7712_v3 = vld [vmem:[#allocation18 + $0x114] sm:$0xf0]  ;;  %v7758_v25 = vld [vmem:[#allocation18 + $0x28c] sm:$0xf] }
 0x4c4   : > { %4877 = vmatpush.bf16.msrb.mxu0 %v6781_v0  ;;  %v7089_v0 = vor.u32 %v7756_v7, %v7088_v51  ;;  %v7185_v37 = vor.u32 %v7780_v27, %v7184_v21  ;;  %v6784_v51 = vld [vmem:[#allocation18 + $0x8] sm:$0xf]  ;;  %v7680_v7 = vld [vmem:[#allocation18 + $0x14] sm:$0xf0]  ;;  %v7106_v26 = vld [vmem:[#allocation18 + $0x298] sm:$0xf0] }
 0x4c5   : > { %v6912_v14 = vld [vmem:[#allocation18 + $0x108] sm:$0xf]  ;;  %v7790_v21 = vld [vmem:[#allocation18 + $0x38c] sm:$0xf]  ;;  %v7234_v27 = vld [vmem:[#allocation18 + $0x398] sm:$0xf0] }
 0x4c7   : > { %v3946_v36 = vpop.f32.mrf.mxu1 }
 0x4c8   : > { %v7009_v36 = vor.u32 %v7736_v57, %v7008_v60  ;;  %v6800_v60 = vld [vmem:[#allocation18 + $0x28] sm:$0xf]  ;;  %v7041_v57 = vor.u32 %v7744_v42, %v7040_v41  ;;  %v7754_v41 = vld [vmem:[#allocation18 + $0x26c] sm:$0xf]  ;;  %v7090_v42 = vld [vmem:[#allocation18 + $0x278] sm:$0xf0] }
 0x4c9   : > { %v6801_v1 = vor.u32 %v7684_v61, %v6800_v60  ;;  %v7726_v60 = vld [vmem:[#allocation18 + $0x18c] sm:$0xf]  ;;  %v7074_v61 = vld [vmem:[#allocation18 + $0x258] sm:$0xf0] }
 0x4dc   : > { %v3892_v9 = vpop.permute.xlu1 %3891  ;;  %v4021_v10 = vpop.permute.xlu2 %4020 }
 0x4dd   : > { %3894 = vst.msk [vmem:[#allocation5 + $0x8] sm:$0xf] %vm3635_vm4, %v3892_v9  ;;  %v7728_v9 = vld [vmem:[#allocation18 + $0x194] sm:$0xf0] }
 0x4de   : > { %4023 = vst.msk [vmem:[#allocation5 + $0xc] sm:$0xf] %vm3635_vm4, %v4021_v10  ;;  %v7072_v10 = vld [vmem:[#allocation18 + $0x248] sm:$0xf]  ;;  %v6977_v48 = vor.u32 %v7728_v9, %v6976_v8  ;;  %v7762_v8 = vld [vmem:[#allocation18 + $0x2ac] sm:$0xf] }
 0x4df   : > { %v7122_v9 = vld [vmem:[#allocation18 + $0x2b8] sm:$0xf0] }
 0x4e4   : > { %v3763_v12 = vpop.permute.xlu1 %3762 }
 0x4e5   : > { %3765 = vst.msk [vmem:[#allocation5 + $0x4] sm:$0xf] %vm3635_vm4, %v3763_v12  ;;  %v4025_v15 = vld [vmem:[#allocation5 + $0x8] sm:$0xff]  ;;  %v7200_v12 = vld [vmem:[#allocation18 + $0x348] sm:$0xf] }
 0x4e6   : > { %v4168_v16 = vunpack.c.l.b16 %v4025_v15  ;;  %v4169_v19 = vunpack.c.h.b16 %v4025_v15  ;;  %v6832_v15 = vld [vmem:[#allocation18 + $0x68] sm:$0xf] }
 0x4e8   : > { %v8796_v55 = vpack.c.b16 %v4168_v16, %v4168_v16  ;;  %v8798_v32 = vpack.c.b16 %v4169_v19, %v4169_v19  ;;  %v7692_v16 = vld [vmem:[#allocation18 + $0x74] sm:$0xf0]  ;;  %v7073_v19 = vor.u32 %v7752_v11, %v7072_v10  ;;  %v7794_v10 = vld [vmem:[#allocation18 + $0x3ac] sm:$0xf]  ;;  %v7250_v11 = vld [vmem:[#allocation18 + $0x3b8] sm:$0xf0] }
 0x4e9   : > { %v6833_v34 = vor.u32 %v7692_v16, %v6832_v15  ;;  %v7702_v15 = vld [vmem:[#allocation18 + $0xcc] sm:$0xf]  ;;  %v6882_v16 = vld [vmem:[#allocation18 + $0xd8] sm:$0xf0] }
 0x4ea   : > { %4852 = vmatmul.bf16.vlgmr.msra.gmra.mxu2 %v8796_v55  ;;  %4865 = vmatmul.bf16.vlgmr.msra.gmra.mxu3 %v8798_v32 }
 0x4eb   : > { %4948 = vmatpush.bf16.msra.mxu2 %v7153_v22  ;;  %4961 = vmatpush.bf16.msra.mxu3 %v7281_v23  ;;  %v7201_v22 = vor.u32 %v7784_v54, %v7200_v12  ;;  %v6960_v23 = vld [vmem:[#allocation18 + $0x168] sm:$0xf]  ;;  %v6785_v12 = vor.u32 %v7680_v7, %v6784_v51  ;;  %v6913_v54 = vor.u32 %v7712_v3, %v6912_v14  ;;  %v7746_v51 = vld [vmem:[#allocation18 + $0x22c] sm:$0xf]  ;;  %v7058_v7 = vld [vmem:[#allocation18 + $0x238] sm:$0xf0] }
 0x4ec   : > { %v4024_v40 = vld [vmem:[#allocation5] sm:$0xff]  ;;  %v6961_v28 = vor.u32 %v7724_v24, %v6960_v23  ;;  %v7010_v24 = vld [vmem:[#allocation18 + $0x1d8] sm:$0xf0] }
 0x4ed   : > { %v4166_v43 = vunpack.c.l.b16 %v4024_v40  ;;  %v4167_v33 = vunpack.c.h.b16 %v4024_v40  ;;  %v7720_v40 = vld [vmem:[#allocation18 + $0x154] sm:$0xf0]  ;;  %v7734_v23 = vld [vmem:[#allocation18 + $0x1cc] sm:$0xf]  ;;  %v7186_v3 = vld [vmem:[#allocation18 + $0x338] sm:$0xf0] }
 0x4ee   : > { %v7778_v14 = vld [vmem:[#allocation18 + $0x32c] sm:$0xf] }
 0x4ef   : > { %4949 = vmatpush.bf16.msra.mxu2 %v7137_v29  ;;  %4962 = vmatpush.bf16.msra.mxu3 %v7265_v30  ;;  %v8802_v52 = vpack.c.b16 %v4166_v43, %v4166_v43  ;;  %v8804_v31 = vpack.c.b16 %v4167_v33, %v4167_v33  ;;  %v6816_v29 = vld [vmem:[#allocation18 + $0x48] sm:$0xf]  ;;  %v7688_v30 = vld [vmem:[#allocation18 + $0x54] sm:$0xf0] }
 0x4f0   : > { %v7168_v43 = vld [vmem:[#allocation18 + $0x308] sm:$0xf]  ;;  %v7776_v33 = vld [vmem:[#allocation18 + $0x314] sm:$0xf0]  ;;  %v6817_v35 = vor.u32 %v7688_v30, %v6816_v29  ;;  %v7698_v29 = vld [vmem:[#allocation18 + $0xac] sm:$0xf] }
 0x4f1   : > { %4826 = vmatmul.bf16.vlgmr.msra.gmra.mxu0 %v8802_v52  ;;  %4839 = vmatmul.bf16.vlgmr.msra.gmra.mxu1 %v8804_v31  ;;  %v7169_v46 = vor.u32 %v7776_v33, %v7168_v43  ;;  %v6866_v30 = vld [vmem:[#allocation18 + $0xb8] sm:$0xf0]  ;;  %v7786_v43 = vld [vmem:[#allocation18 + $0x36c] sm:$0xf] }
 0x4f2   : > { %4922 = vmatpush.bf16.msra.mxu0 %v6897_v44  ;;  %4935 = vmatpush.bf16.msra.mxu1 %v7025_v47  ;;  %v7770_v44 = vld [vmem:[#allocation18 + $0x2ec] sm:$0xf]  ;;  %v7154_v47 = vld [vmem:[#allocation18 + $0x2f8] sm:$0xf0] }
 0x4f3   : > { %4950 = vmatpush.bf16.msra.mxu2 %v7121_v39  ;;  %4963 = vmatpush.bf16.msra.mxu3 %v7249_v58  ;;  %v7802_v39 = vld [vmem:[#allocation18 + $0x3ec] sm:$0xf]  ;;  %v6945_v58 = vor.u32 %v7720_v40, %v6944_v56  ;;  %v7109_v56 = vor.u32 %v7758_v25, %v7106_v26  ;;  %v6994_v40 = vld [vmem:[#allocation18 + $0x1b8] sm:$0xf0] }
 0x4f4   : > { %v7218_v33 = vld [vmem:[#allocation18 + $0x378] sm:$0xf0] }
 0x4f6   : > { %4923 = vmatpush.bf16.msra.mxu0 %v6881_v50  ;;  %4936 = vmatpush.bf16.msra.mxu1 %v7009_v36  ;;  %v7157_v50 = vor.u32 %v7770_v44, %v7154_v47  ;;  %v7285_v36 = vor.u32 %v7802_v39, %v7282_v59  ;;  %v6869_v44 = vor.u32 %v7698_v29, %v6866_v30  ;;  %v7694_v39 = vld [vmem:[#allocation18 + $0x8c] sm:$0xf]  ;;  %v6850_v59 = vld [vmem:[#allocation18 + $0x98] sm:$0xf0] }
 0x4f7   : > { %4951 = vmatpush.bf16.msra.mxu2 %v7105_v5  ;;  %4964 = vmatpush.bf16.msra.mxu3 %v7233_v17  ;;  %v7766_v5 = vld [vmem:[#allocation18 + $0x2cc] sm:$0xf]  ;;  %v7138_v17 = vld [vmem:[#allocation18 + $0x2d8] sm:$0xf0] }
 0x4f8   : > { %v7141_v45 = vor.u32 %v7766_v5, %v7138_v17  ;;  %v7690_v5 = vld [vmem:[#allocation18 + $0x6c] sm:$0xf]  ;;  %v6834_v17 = vld [vmem:[#allocation18 + $0x78] sm:$0xf0] }
 0x4fa   : > { %4904 = vmatmul.bf16.vlgmr.msrb.gmra.mxu2 %v8796_v55  ;;  %4917 = vmatmul.bf16.vlgmr.msrb.gmra.mxu3 %v8798_v32 }
 0x4fb   : > { %4924 = vmatpush.bf16.msra.mxu0 %v6865_v49  ;;  %4937 = vmatpush.bf16.msra.mxu1 %v6993_v6  ;;  %v7706_v49 = vld [vmem:[#allocation18 + $0xec] sm:$0xf]  ;;  %v6898_v6 = vld [vmem:[#allocation18 + $0xf8] sm:$0xf0] }
 0x4fc   : > { %4952 = vmatpush.bf16.msra.mxu2 %v7089_v0  ;;  %4965 = vmatpush.bf16.msra.mxu3 %v7217_v4  ;;  %v7738_v0 = vld [vmem:[#allocation18 + $0x1ec] sm:$0xf]  ;;  %v7026_v4 = vld [vmem:[#allocation18 + $0x1f8] sm:$0xf0] }
 0x4ff   : > { %4925 = vmatpush.bf16.msra.mxu0 %v6849_v13  ;;  %4938 = vmatpush.bf16.msra.mxu1 %v6977_v48  ;;  %v6901_v13 = vor.u32 %v7706_v49, %v6898_v6  ;;  %v7029_v48 = vor.u32 %v7738_v0, %v7026_v4  ;;  %v6837_v49 = vor.u32 %v7690_v5, %v6834_v17 }
 0x500   : > { %4953 = vmatpush.bf16.msra.mxu2 %v7073_v19  ;;  %4966 = vmatpush.bf16.msra.mxu3 %v7201_v22  ;;  %v7125_v19 = vor.u32 %v7762_v8, %v7122_v9  ;;  %v7253_v22 = vor.u32 %v7794_v10, %v7250_v11  ;;  %v7061_v0 = vor.u32 %v7746_v51, %v7058_v7  ;;  %v7718_v8 = vld [vmem:[#allocation18 + $0x14c] sm:$0xf]  ;;  %v6946_v9 = vld [vmem:[#allocation18 + $0x158] sm:$0xf0] }
 0x501   : > { %4878 = vmatmul.bf16.vlgmr.msrb.gmra.mxu0 %v8802_v52  ;;  %4891 = vmatmul.bf16.vlgmr.msrb.gmra.mxu1 %v8804_v31  ;;  %v7189_v4 = vor.u32 %v7778_v14, %v7186_v3  ;;  %v7742_v10 = vld [vmem:[#allocation18 + $0x20c] sm:$0xf]  ;;  %v7042_v11 = vld [vmem:[#allocation18 + $0x218] sm:$0xf0] }
 0x503   : > { %4926 = vmatpush.bf16.msra.mxu0 %v6833_v34  ;;  %4939 = vmatpush.bf16.msra.mxu1 %v6961_v28  ;;  %v6885_v34 = vor.u32 %v7702_v15, %v6882_v16  ;;  %v7013_v28 = vor.u32 %v7734_v23, %v7010_v24  ;;  %v7045_v15 = vor.u32 %v7742_v10, %v7042_v11  ;;  %v7714_v23 = vld [vmem:[#allocation18 + $0x12c] sm:$0xf]  ;;  %v6930_v24 = vld [vmem:[#allocation18 + $0x138] sm:$0xf0] }
 0x504   : > { %4954 = vmatpush.bf16.msra.mxu2 %v7057_v38  ;;  %4967 = vmatpush.bf16.msra.mxu3 %v7185_v37  ;;  %v7237_v38 = vor.u32 %v7790_v21, %v7234_v27  ;;  %v7730_v37 = vld [vmem:[#allocation18 + $0x1ac] sm:$0xf]  ;;  %v6933_v26 = vor.u32 %v7714_v23, %v6930_v24  ;;  %v6786_v27 = vld [vmem:[#allocation18 + $0x18] sm:$0xf0] }
 0x505   : > { %v6997_v47 = vor.u32 %v7730_v37, %v6994_v40  ;;  %v7678_v21 = vld [vmem:[#allocation18 + $0xc] sm:$0xf] }
 0x506   : > { %v6789_v29 = vor.u32 %v7678_v21, %v6786_v27 }
 0x507   : > { %4927 = vmatpush.bf16.msra.mxu0 %v6817_v35  ;;  %4940 = vmatpush.bf16.msra.mxu1 %v6945_v58  ;;  %v7093_v35 = vor.u32 %v7754_v41, %v7090_v42  ;;  %v7221_v58 = vor.u32 %v7786_v43, %v7218_v33 }
 0x508   : > { %4955 = vmatpush.bf16.msra.mxu2 %v7041_v57  ;;  %4968 = vmatpush.bf16.msra.mxu3 %v7169_v46  ;;  %v6978_v57 = vld [vmem:[#allocation18 + $0x198] sm:$0xf0]  ;;  %v7750_v46 = vld [vmem:[#allocation18 + $0x24c] sm:$0xf] }
 0x509   : > { %v7077_v18 = vor.u32 %v7750_v46, %v7074_v61 }
 0x50b   : > { %4928 = vmatpush.bf16.msra.mxu0 %v6801_v1  ;;  %4941 = vmatpush.bf16.msra.mxu1 %v6929_v2  ;;  %v7722_v1 = vld [vmem:[#allocation18 + $0x16c] sm:$0xf]  ;;  %v6962_v2 = vld [vmem:[#allocation18 + $0x178] sm:$0xf0] }
 0x50c   : > { %5000 = vmatpush.bf16.msrb.mxu2 %v7157_v50  ;;  %5013 = vmatpush.bf16.msrb.mxu3 %v7285_v36  ;;  %v6853_v50 = vor.u32 %v7694_v39, %v6850_v59  ;;  %v6981_v36 = vor.u32 %v7726_v60, %v6978_v57  ;;  %v6965_v6 = vor.u32 %v7722_v1, %v6962_v2 }
 0x50d   : > { %4956 = vmatmul.bf16.vlgmr.msra.gmra.mxu2 %v8796_v55  ;;  %4969 = vmatmul.bf16.vlgmr.msra.gmra.mxu3 %v8798_v32 }
 0x50f   : > { %4929 = vmatpush.bf16.msra.mxu0 %v6785_v12  ;;  %4942 = vmatpush.bf16.msra.mxu1 %v6913_v54  ;;  %v7774_v12 = vld [vmem:[#allocation18 + $0x30c] sm:$0xf]  ;;  %v7170_v54 = vld [vmem:[#allocation18 + $0x318] sm:$0xf0] }
 0x510   : > { %5001 = vmatpush.bf16.msrb.mxu2 %v7141_v45  ;;  %5014 = vmatpush.bf16.msrb.mxu3 %v7269_v63  ;;  %v7686_v45 = vld [vmem:[#allocation18 + $0x4c] sm:$0xf]  ;;  %v6818_v63 = vld [vmem:[#allocation18 + $0x58] sm:$0xf0]  ;;  %v7173_v16 = vor.u32 %v7774_v12, %v7170_v54 }
 0x512   : > { %4930 = vmatmul.bf16.vlgmr.msra.gmra.mxu0 %v8802_v52  ;;  %4943 = vmatmul.bf16.vlgmr.msra.gmra.mxu1 %v8804_v31 }
 0x513   : > { %4974 = vmatpush.bf16.msrb.mxu0 %v6901_v13  ;;  %4987 = vmatpush.bf16.msrb.mxu1 %v7029_v48  ;;  %v6821_v13 = vor.u32 %v7686_v45, %v6818_v63  ;;  %v6949_v48 = vor.u32 %v7718_v8, %v6946_v9 }
 0x514   : > { %5002 = vmatpush.bf16.msrb.mxu2 %v7125_v19  ;;  %5015 = vmatpush.bf16.msrb.mxu3 %v7253_v22  ;;  %v7682_v19 = vld [vmem:[#allocation18 + $0x2c] sm:$0xf]  ;;  %v6802_v22 = vld [vmem:[#allocation18 + $0x38] sm:$0xf0] }
 0x515   : > { %v6805_v25 = vor.u32 %v7682_v19, %v6802_v22 }
 0x517   : > { %4975 = vmatpush.bf16.msrb.mxu0 %v6885_v34  ;;  %4988 = vmatpush.bf16.msrb.mxu1 %v7013_v28  ;;  %v7710_v34 = vld [vmem:[#allocation18 + $0x10c] sm:$0xf]  ;;  %v6914_v28 = vld [vmem:[#allocation18 + $0x118] sm:$0xf0] }
 0x518   : > { %5003 = vmatpush.bf16.msrb.mxu2 %v7109_v56  ;;  %5016 = vmatpush.bf16.msrb.mxu3 %v7237_v38  ;;  %v6917_v30 = vor.u32 %v7710_v34, %v6914_v28  ;;  %v4154_v56 = vld [vmem:[%s8873_s9] sm:$0xf] }
 0x519   : > { %v4156_v38 = vperm.slane %v4154_v56, 0  ;;  %v4158_v17 = vperm.slane %v4154_v56, 2 }
 0x51b   : > { %4976 = vmatpush.bf16.msrb.mxu0 %v6869_v44  ;;  %4989 = vmatpush.bf16.msrb.mxu1 %v6997_v47 }
 0x51c   : > { %5004 = vmatpush.bf16.msrb.mxu2 %v7093_v35  ;;  %5017 = vmatpush.bf16.msrb.mxu3 %v7221_v58 }
 0x51f   : > { %4977 = vmatpush.bf16.msrb.mxu0 %v6853_v50  ;;  %4990 = vmatpush.bf16.msrb.mxu1 %v6981_v36 }
 0x520   : > { %5005 = vmatpush.bf16.msrb.mxu2 %v7077_v18  ;;  %5018 = vmatpush.bf16.msrb.mxu3 %v7205_v20 }
 0x523   : > { %4978 = vmatpush.bf16.msrb.mxu0 %v6837_v49  ;;  %4991 = vmatpush.bf16.msrb.mxu1 %v6965_v6 }
 0x524   : > { %5006 = vmatpush.bf16.msrb.mxu2 %v7061_v0  ;;  %5019 = vmatpush.bf16.msrb.mxu3 %v7189_v4  ;;  %v4159_v0 = vperm.slane %v4154_v56, 3 }
 0x527   : > { %4979 = vmatpush.bf16.msrb.mxu0 %v6821_v13  ;;  %4992 = vmatpush.bf16.msrb.mxu1 %v6949_v48 }
 0x528   : > { %5007 = vmatpush.bf16.msrb.mxu2 %v7045_v15  ;;  %5020 = vmatpush.bf16.msrb.mxu3 %v7173_v16 }
 0x52b   : > { %5008 = vmatmul.bf16.vlgmr.msrb.gmra.mxu2 %v8796_v55  ;;  %5021 = vmatmul.bf16.vlgmr.msrb.gmra.mxu3 %v8798_v32 }
 0x52c   : > { %4980 = vmatpush.bf16.msrb.mxu0 %v6805_v25  ;;  %4993 = vmatpush.bf16.msrb.mxu1 %v6933_v26 }
 0x530   : > { %4981 = vmatpush.bf16.msrb.mxu0 %v6789_v29  ;;  %4994 = vmatpush.bf16.msrb.mxu1 %v6917_v30 }
 0x533   : > { %4982 = vmatmul.bf16.vlgmr.msrb.gmra.mxu0 %v8802_v52  ;;  %4995 = vmatmul.bf16.vlgmr.msrb.gmra.mxu1 %v8804_v31  ;;  %v4157_v31 = vperm.slane %v4154_v56, 1 }
 0x56d   : > { %v4853_v37 = vpop.f32.mrf.mxu2  ;;  %v4866_v55 = vpop.f32.mrf.mxu3 }
 0x56e   : > { %v4827_v40 = vpop.f32.mrf.mxu0  ;;  %v4840_v32 = vpop.f32.mrf.mxu1 }
 0x56f   : > { %v4828_v41 = vadd.f32 %v4827_v40, %v4156_v38 }
 0x571   : > { %v4841_v42 = vadd.f32 %v4840_v32, %v4828_v41 }
 0x573   : > { %v4854_v43 = vadd.f32 %v4853_v37, %v4841_v42 }
 0x575   : > { %v4867_v33 = vadd.f32 %v4866_v55, %v4854_v43  ;;  %v4855_v44 = vpop.f32.mrf.mxu2  ;;  %v4868_v47 = vpop.f32.mrf.mxu3 }
 0x576   : > { %v4829_v39 = vpop.f32.mrf.mxu0  ;;  %v4842_v52 = vpop.f32.mrf.mxu1 }
 0x577   : > { %5026 = vst [vmem:[%s8824_s29] sm:$0xff] %v4867_v33 }
 0x57d   : > { %v4905_v59 = vpop.f32.mrf.mxu2  ;;  %v4918_v35 = vpop.f32.mrf.mxu3 }
 0x57e   : > { %v4879_v58 = vpop.f32.mrf.mxu0  ;;  %v4892_v60 = vpop.f32.mrf.mxu1 }
 0x57f   : > { %v4880_v57 = vadd.f32 %v4879_v58, %v4157_v31 }
 0x581   : > { %v4893_v46 = vadd.f32 %v4892_v60, %v4880_v57 }
 0x583   : > { %v4906_v61 = vadd.f32 %v4905_v59, %v4893_v46 }
 0x585   : > { %v4919_v53 = vadd.f32 %v4918_v35, %v4906_v61  ;;  %v4907_v62 = vpop.f32.mrf.mxu2  ;;  %v4920_v50 = vpop.f32.mrf.mxu3 }
 0x586   : > { %v4881_v36 = vpop.f32.mrf.mxu0  ;;  %v4894_v5 = vpop.f32.mrf.mxu1 }
 0x587   : > { %5027 = vst [vmem:[%s8824_s29 + $0x8] sm:$0xff] %v4919_v53 }
 0x58f   : > { %v4931_v1 = vpop.f32.mrf.mxu0  ;;  %v4944_v2 = vpop.f32.mrf.mxu1 }
 0x590   : > { %v4957_v18 = vpop.f32.mrf.mxu2  ;;  %v4970_v20 = vpop.f32.mrf.mxu3  ;;  %v4932_v51 = vadd.f32 %v4931_v1, %v4158_v17 }
 0x592   : > { %v4945_v7 = vadd.f32 %v4944_v2, %v4932_v51 }
 0x594   : > { %v4958_v14 = vadd.f32 %v4957_v18, %v4945_v7 }
 0x596   : > { %v4971_v3 = vadd.f32 %v4970_v20, %v4958_v14 }
 0x597   : > { %v4933_v45 = vpop.f32.mrf.mxu0  ;;  %v4946_v63 = vpop.f32.mrf.mxu1 }
 0x598   : > { %v4959_v49 = vpop.f32.mrf.mxu2  ;;  %v4972_v6 = vpop.f32.mrf.mxu3  ;;  %5028 = vst [vmem:[%s8824_s29 + $0x10] sm:$0xff] %v4971_v3 }
 0x5ae   : > { %v5009_v4 = vpop.f32.mrf.mxu2  ;;  %v5022_v8 = vpop.f32.mrf.mxu3 }
 0x5b0   : > { %v4983_v9 = vpop.f32.mrf.mxu0  ;;  %v4996_v10 = vpop.f32.mrf.mxu1 }
 0x5b1   : > { %v4984_v11 = vadd.f32 %v4983_v9, %v4159_v0 }
 0x5b3   : > { %v4997_v12 = vadd.f32 %v4996_v10, %v4984_v11 }
 0x5b5   : > { %v5010_v54 = vadd.f32 %v5009_v4, %v4997_v12 }
 0x5b6   : > { %v5011_v13 = vpop.f32.mrf.mxu2  ;;  %v5024_v48 = vpop.f32.mrf.mxu3 }
 0x5b7   : > { %v5023_v15 = vadd.f32 %v5022_v8, %v5010_v54 }
 0x5b8   : > { %v4985_v16 = vpop.f32.mrf.mxu0  ;;  %v4998_v19 = vpop.f32.mrf.mxu1 }
 0x5b9   : > { %5029 = vst [vmem:[%s8824_s29 + $0x18] sm:$0xff] %v5023_v15 }
 0x5ba   : > { %8220 = shalt.err (!%p8217_p10)
}
 0x5bb   : > { %7834 = dma.vmem_to_hbm [thread:$0]  (%p8454_p4), %s5045_s22, 512, %s5047_s4, %s5031_s20  }
 0x5bc PF: > { %s5058_s7 = sand.u32 1, %s8267_s13   ;;  %p8900_p11 = scmp.ge.s32.totalorder %s8279_s16, 2 }
 0x5bd   : > { %s5059_s17 = scalar_lea.sflag [#allocation8], %s5058_s7 }
 0x5be   : > { %p7863_p5 = pnand %p8900_p11, %p8458_p6 }
 0x5c0   : > { %p7864_p13 = pneg %p7863_p5 }
 0x5c2   : > { %8262 = dma.done.wait (%p7864_p13), %s5059_s17, 512  }
 0x5c3   : > { %8264 = vsyncadd (%p7864_p13), %s5059_s17, 4294966784  ;;  %s8901_s16 = sld [smem:[#allocation29_spill]]  ;;  %s8904_s13 = smov %s8271_s14 }
 0x5c4   : > { %s8902_s28 = sld [smem:[#allocation28_spill]] }
 0x5c5   : > { %s8903_s15 = sld [smem:[#allocation30_spill]] }
 0x5c9   : > { %p29_p0 = scmp.ge.s32.totalorder %s8901_s16, 4  }
 0x5ca   : > { %s8905_s14 = smov %s8902_s28 }
 0x5cb   :  { %31 = sbr.rel (!%p29_p0) target bundleno = 17 (0x11), region = 142 }
 0x5d0   :  { %5065 = vsyncpa [#allocation7], 1 }
 0x5d1   :  { %5067 = vsyncpa [#allocation7 + $0x1], 1 }
 0x5d2   :  { %5068 = vsyncpa [#allocation10], 1 }
 0x5d3   :  { %5070 = vsyncpa [#allocation10 + $0x1], 1 }
 0x5d4   :  { %5071 = vsyncpa [#allocation13], 1 }
 0x5d5   :  { %5072 = vsyncpa [#allocation16], 1 }
 0x5d6   :  { %5073 = vsyncpa [#allocation19], 1 }
 0x5d7   :  { %5074 = vsyncpa [#allocation8], 1 }
 0x5d8   :  { %5076 = vsyncpa [#allocation8 + $0x1], 1 }

</bundles_post_ra>
